<compile_context>
chip_gen: v5e
topology: v5e:2x2
jax: 0.10.0
libtpu: 0.0.40
codegen_flags: <defaults>
</compile_context>

<pallas_src>
import functools
import math

import jax
import jax.numpy as jnp
import numpy as np
from jax import lax
from jax.experimental import pallas as pl
from jax.experimental.pallas import tpu as pltpu

CLAMP = 1.0
HIDDEN = 32


# ---------------- constant operators (built host-side, become kernel inputs) ----------------

def _haar_sel(H, W):
    """(4, H*W, (H//2)*(W//2)) Haar analysis operators (filters a=b=c=1, d=-1, /4),
    acting on row-major flattened pixels from the right: out_f = X @ sel[f]."""
    H2, W2 = H // 2, W // 2
    sel = np.zeros((4, H * W, H2 * W2), np.float32)
    sign = np.array([[1, 1, 1, 1],      # f0 = (tl+tr+bl+br)/4
                     [1, -1, 1, -1],    # f1 = (tl-tr+bl-br)/4
                     [1, 1, -1, -1],    # f2 = (tl+tr-bl-br)/4
                     [1, -1, -1, 1]],   # f3 = (tl-tr-bl+br)/4
                    np.float32) * 0.25
    for yy in range(H2):
        for xx in range(W2):
            q = yy * W2 + xx
            srcs = [(2 * yy) * W + 2 * xx, (2 * yy) * W + 2 * xx + 1,
                    (2 * yy + 1) * W + 2 * xx, (2 * yy + 1) * W + 2 * xx + 1]
            for f in range(4):
                for j, p in enumerate(srcs):
                    sel[f, p, q] = sign[f, j]
    return jnp.asarray(sel)


def _conv_shift_mats(H, W):
    """(9, H*W, H*W) tap shift/zero-pad operators P: (X @ P[t])[c, p] = X[c, tap_t(p)]
    with zero padding outside the image, taps ordered (dy, dx) in {-1,0,1}^2."""
    HW = H * W
    P = np.zeros((9, HW, HW), np.float32)
    t = 0
    for dy in (-1, 0, 1):
        for dx in (-1, 0, 1):
            for p in range(HW):
                y, x = divmod(p, W)
                yy, xx = y + dy, x + dx
                if 0 <= yy < H and 0 <= xx < W:
                    P[t, yy * W + xx, p] = 1.0
            t += 1
    return jnp.asarray(P)


# ---------------- weight packing (wrapper-side, tiny) ----------------

def _pack_subnet_F(p):
    """Flatten a 2-layer subnet for channel-major im2col matmuls."""
    cin = p["w1"].shape[2]
    cout = p["w2"].shape[3]
    w1 = p["w1"].reshape(9 * cin, HIDDEN).T            # (32, 9*cin)
    b1 = p["b1"].reshape(HIDDEN, 1)
    w2 = p["w2"].reshape(9 * HIDDEN, cout).T           # (cout, 288)
    b2 = p["b2"].reshape(cout, 1)
    return w1, b1, w2, b2


def _pack_subnets_GH(pg, ph):
    """Fuse G and H (both read y1): one 64-ch hidden, one combined 2nd-layer matmul.
    Hidden channels [0:32]=G, [32:64]=H.  Output rows [0:s2c]=H(y1), [s2c:2*s2c]=G(y1)."""
    s2c = pg["w2"].shape[3]
    gw1 = pg["w1"].reshape(9 * 3, HIDDEN)
    hw1 = ph["w1"].reshape(9 * 3, HIDDEN)
    ghw1 = jnp.concatenate([gw1, hw1], axis=1).T                       # (64, 27)
    ghb1 = jnp.concatenate([pg["b1"], ph["b1"]]).reshape(2 * HIDDEN, 1)
    w2 = jnp.zeros((3, 3, 2 * HIDDEN, 2 * s2c), jnp.float32)
    w2 = w2.at[:, :, HIDDEN:, :s2c].set(ph["w2"])
    w2 = w2.at[:, :, :HIDDEN, s2c:].set(pg["w2"])
    hgw2 = w2.reshape(9 * 2 * HIDDEN, 2 * s2c).T                       # (2*s2c, 576)
    hgb2 = jnp.concatenate([ph["b2"], pg["b2"]]).reshape(2 * s2c, 1)
    return ghw1, ghb1, hgw2, hgb2


# ---------------- in-kernel helpers (traced inside the fused kernel) ----------------

def _im2col_mm(x, shift_ref):
    """x: (C, HW) channel-major image -> (9*C, HW) 3x3 zero-padded im2col."""
    taps = [jnp.dot(x, shift_ref[t], preferred_element_type=jnp.float32)
            for t in range(9)]
    return jnp.concatenate(taps, axis=0)


def _conv3x3(x, w_ref, b_ref, shift_ref, relu):
    """Same-padding 3x3 conv as a single K=9*Cin matmul.  Returns (Cout, HW)."""
    y = jnp.dot(w_ref[...], _im2col_mm(x, shift_ref),
                preferred_element_type=jnp.float32) + b_ref[...]
    return jnp.maximum(y, 0.0) if relu else y


def _haar_mm(x, sel_ref):
    """HaarDownsampling.forward(rev=False): (C, HW) -> (4*C, HW/4), filter-major channels."""
    parts = [jnp.dot(x, sel_ref[k], preferred_element_type=jnp.float32)
             for k in range(4)]
    return jnp.concatenate(parts, axis=0)


def _inv_block(x, split1, clamp, fw1, fb1, fw2, fb2,
               ghw1, ghb1, hgw2, hgb2, shift_ref):
    """InvBlockExp.forward(rev=False) with fused F residual + fused G/H + coupling."""
    s2c = x.shape[0] - split1
    x1, x2 = x[:split1], x[split1:]
    y1 = x1 + _conv3x3(_conv3x3(x2, fw1, fb1, shift_ref, True),
                       fw2, fb2, shift_ref, False)
    hid = _conv3x3(y1, ghw1, ghb1, shift_ref, True)      # (64, HW): shared G/H hidden
    hg = _conv3x3(hid, hgw2, hgb2, shift_ref, False)     # (2*s2c, HW): [H(y1) | G(y1)]
    s = clamp * (jax.nn.sigmoid(hg[:s2c]) * 2.0 - 1.0)
    y2 = x2 * jnp.exp(s) + hg[s2c:]
    return jnp.concatenate([y1, y2], axis=0)


def _fused_irn_kernel(x_ref, sel1_ref, sel2_ref, sh1_ref, sh2_ref,
                      f1w1, f1b1, f1w2, f1b2, gh1w1, gh1b1, hg1w2, hg1b2,
                      f2w1, f2b1, f2w2, f2b2, gh2w1, gh2b1, hg2w2, hg2b2,
                      o_ref, *, split1, clamp):
    z = _haar_mm(x_ref[0], sel1_ref)                               # (4*C,  HW/4)
    z = _inv_block(z, split1, clamp, f1w1, f1b1, f1w2, f1b2,
                   gh1w1, gh1b1, hg1w2, hg1b2, sh1_ref)
    z = _haar_mm(z, sel2_ref)                                      # (16*C, HW/16)
    z = _inv_block(z, split1, clamp, f2w1, f2b1, f2w2, f2b2,
                   gh2w1, gh2b1, hg2w2, hg2b2, sh2_ref)
    o_ref[0] = z.astype(o_ref.dtype)


# ---------------- network build + fused forward wrapper ----------------

def init_subnet(key, cin, cout, hidden=HIDDEN):
    k1, k2, k3, k4 = jax.random.split(key, 4)
    return {
        "w1": jax.random.normal(k1, (3, 3, cin, hidden), jnp.float32)
              * (1.0 / math.sqrt(9 * cin)),
        "b1": jax.random.normal(k2, (hidden,), jnp.float32) * 0.01,
        "w2": jax.random.normal(k3, (3, 3, hidden, cout), jnp.float32)
              * (1.0 / math.sqrt(9 * hidden)),
        "b2": jax.random.normal(k4, (cout,), jnp.float32) * 0.01,
    }


def build_inv_rescale_net(key, channel_in=3, channel_out=3,
                          block_num=(1, 1), down_num=2):
    ops = []
    current = channel_in
    for i in range(down_num):
        ops.append(("haar", None))
        current *= 4
        for _ in range(block_num[i]):
            split1 = channel_out
            split2 = current - split1
            key, kF, kG, kH = jax.random.split(key, 4)
            ops.append(("block", {
                "split1": split1,
                "F": init_subnet(kF, split2, split1),
                "G": init_subnet(kG, split1, split2),
                "H": init_subnet(kH, split1, split2),
            }))
    return ops


def _const_index_map(ndim):
    zeros = (0,) * ndim

    def idx(i):
        return zeros
    return idx


def inv_rescale_net_forward(ops, x_nchw, clamp=CLAMP):
    """InvRescaleNet.forward(x, rev=False, cal_jacobian=False) as one fused Pallas kernel."""
    B, C, H, W = x_nchw.shape
    kinds = [k for k, _ in ops]
    assert kinds == ["haar", "block", "haar", "block"], \
        "fused kernel is specialised to down_num=2, block_num=(1, 1)"
    blk1, blk2 = ops[1][1], ops[3][1]
    assert blk1["split1"] == blk2["split1"]
    split1 = blk1["split1"]

    operands = [
        _haar_sel(H, W),                      # haar1 analysis operators
        _haar_sel(H // 2, W // 2),            # haar2 analysis operators
        _conv_shift_mats(H // 2, W // 2),     # tap shift operators for (H/2,W/2) convs
        _conv_shift_mats(H // 4, W // 4),     # tap shift operators for (H/4,W/4) convs
    ]
    for blk in (blk1, blk2):
        operands += list(_pack_subnet_F(blk["F"]))
        operands += list(_pack_subnets_GH(blk["G"], blk["H"]))

    x_flat = x_nchw.reshape(B, C, H * W)      # NCHW is already channel-major: no transpose
    c_out = C * 16
    hw_out = (H // 4) * (W // 4)

    in_specs = [pl.BlockSpec((1, C, H * W), lambda i: (i, 0, 0))]
    in_specs += [pl.BlockSpec(tuple(a.shape), _const_index_map(a.ndim)) for a in operands]

    out_flat = pl.pallas_call(
        functools.partial(_fused_irn_kernel, split1=split1, clamp=clamp),
        out_shape=jax.ShapeDtypeStruct((B, c_out, hw_out), x_nchw.dtype),
        grid=(B,),
        in_specs=in_specs,
        out_specs=pl.BlockSpec((1, c_out, hw_out), lambda i: (i, 0, 0)),
        compiler_params=pltpu.CompilerParams(dimension_semantics=("parallel",)),
    )(x_flat, *operands)
    return out_flat.reshape(B, c_out, H // 4, W // 4)
    # TODO(synk): rev=True path, cal_jacobian accumulation and the plus=True block
    # variant are not exercised by the default forward and are not implemented here.


# ---------------- plain-JAX reference (NCHW) ----------------

def _ref_conv(x, w, b, relu):
    w_oihw = jnp.transpose(w, (3, 2, 0, 1))
    y = lax.conv_general_dilated(x, w_oihw, (1, 1), ((1, 1), (1, 1)),
                                 dimension_numbers=("NCHW", "OIHW", "NCHW"),
                                 precision=lax.Precision.HIGHEST)
    y = y + b.reshape(1, -1, 1, 1)
    return jnp.maximum(y, 0.0) if relu else y


def _ref_subnet(p, x):
    return _ref_conv(_ref_conv(x, p["w1"], p["b1"], True), p["w2"], p["b2"], False)


def _ref_haar(x):
    B, C, H, W = x.shape
    xr = x.reshape(B, C, H // 2, 2, W // 2, 2)
    tl, tr = xr[:, :, :, 0, :, 0], xr[:, :, :, 0, :, 1]
    bl, br = xr[:, :, :, 1, :, 0], xr[:, :, :, 1, :, 1]
    f0 = (tl + tr + bl + br) * 0.25
    f1 = (tl - tr + bl - br) * 0.25
    f2 = (tl + tr - bl - br) * 0.25
    f3 = (tl - tr - bl + br) * 0.25
    return jnp.concatenate([f0, f1, f2, f3], axis=1)


def _ref_block(blk, x):
    s1 = blk["split1"]
    x1, x2 = x[:, :s1], x[:, s1:]
    y1 = x1 + _ref_subnet(blk["F"], x2)
    s = CLAMP * (jax.nn.sigmoid(_ref_subnet(blk["H"], y1)) * 2.0 - 1.0)
    y2 = x2 * jnp.exp(s) + _ref_subnet(blk["G"], y1)
    return jnp.concatenate([y1, y2], axis=1)


def _ref_forward(ops, x):
    out = x
    for kind, p in ops:
        out = _ref_haar(out) if kind == "haar" else _ref_block(p, out)
    return out


# ---------------- main ----------------

if __name__ == "__main__":
    key = jax.random.PRNGKey(0)
    k_params, k_x = jax.random.split(key)

    ops = build_inv_rescale_net(k_params, channel_in=3, channel_out=3,
                                block_num=(1, 1), down_num=2)

    x = jax.random.normal(k_x, (2, 3, 16, 16), jnp.float32)   # NCHW, like PyTorch

    forward = jax.jit(lambda inp: inv_rescale_net_forward(ops, inp))
    out = jax.block_until_ready(forward(x))

    ref = jax.block_until_ready(_ref_forward(ops, x))

    assert out.shape == (2, 48, 4, 4), out.shape
    err = float(jnp.max(jnp.abs(out - ref)))
    assert err < 2e-3, f"max abs error too large: {err}"

    print("KERNEL_OK")
</pallas_src>

<mosaic_0001>
module attributes {stable_mosaic.version = 11 : i64} {
  func.func @_fused_irn_kernel(%arg0: i32, %arg1: memref<1x3x256xf32, #tpu.memory_space<vmem>>, %arg2: memref<4x256x64xf32, #tpu.memory_space<vmem>>, %arg3: memref<4x64x16xf32, #tpu.memory_space<vmem>>, %arg4: memref<9x64x64xf32, #tpu.memory_space<vmem>>, %arg5: memref<9x16x16xf32, #tpu.memory_space<vmem>>, %arg6: memref<32x81xf32, #tpu.memory_space<vmem>>, %arg7: memref<32x1xf32, #tpu.memory_space<vmem>>, %arg8: memref<3x288xf32, #tpu.memory_space<vmem>>, %arg9: memref<3x1xf32, #tpu.memory_space<vmem>>, %arg10: memref<64x27xf32, #tpu.memory_space<vmem>>, %arg11: memref<64x1xf32, #tpu.memory_space<vmem>>, %arg12: memref<18x576xf32, #tpu.memory_space<vmem>>, %arg13: memref<18x1xf32, #tpu.memory_space<vmem>>, %arg14: memref<32x405xf32, #tpu.memory_space<vmem>>, %arg15: memref<32x1xf32, #tpu.memory_space<vmem>>, %arg16: memref<3x288xf32, #tpu.memory_space<vmem>>, %arg17: memref<3x1xf32, #tpu.memory_space<vmem>>, %arg18: memref<64x27xf32, #tpu.memory_space<vmem>>, %arg19: memref<64x1xf32, #tpu.memory_space<vmem>>, %arg20: memref<90x576xf32, #tpu.memory_space<vmem>>, %arg21: memref<90x1xf32, #tpu.memory_space<vmem>>, %arg22: memref<1x48x16xf32, #tpu.memory_space<vmem>>) attributes {dimension_semantics = [#tpu.dimension_semantics<parallel>], iteration_bounds = array<i64: 2>, scalar_prefetch = 0 : i64, scratch_operands = 0 : i64, tpu.core_type = #tpu.core_type<tc>, window_params = [{transform_indices = @transform_0, window_bounds = array<i64: 1, 3, 256>}, {pipeline_mode = #tpu.pipeline_mode<synchronous>, transform_indices = @transform_1, window_bounds = array<i64: 4, 256, 64>}, {pipeline_mode = #tpu.pipeline_mode<synchronous>, transform_indices = @transform_2, window_bounds = array<i64: 4, 64, 16>}, {pipeline_mode = #tpu.pipeline_mode<synchronous>, transform_indices = @transform_3, window_bounds = array<i64: 9, 64, 64>}, {pipeline_mode = #tpu.pipeline_mode<synchronous>, transform_indices = @transform_4, window_bounds = array<i64: 9, 16, 16>}, {pipeline_mode = #tpu.pipeline_mode<synchronous>, transform_indices = @transform_5, window_bounds = array<i64: 32, 81>}, {pipeline_mode = #tpu.pipeline_mode<synchronous>, transform_indices = @transform_6, window_bounds = array<i64: 32, 1>}, {pipeline_mode = #tpu.pipeline_mode<synchronous>, transform_indices = @transform_7, window_bounds = array<i64: 3, 288>}, {pipeline_mode = #tpu.pipeline_mode<synchronous>, transform_indices = @transform_8, window_bounds = array<i64: 3, 1>}, {pipeline_mode = #tpu.pipeline_mode<synchronous>, transform_indices = @transform_9, window_bounds = array<i64: 64, 27>}, {pipeline_mode = #tpu.pipeline_mode<synchronous>, transform_indices = @transform_10, window_bounds = array<i64: 64, 1>}, {pipeline_mode = #tpu.pipeline_mode<synchronous>, transform_indices = @transform_11, window_bounds = array<i64: 18, 576>}, {pipeline_mode = #tpu.pipeline_mode<synchronous>, transform_indices = @transform_12, window_bounds = array<i64: 18, 1>}, {pipeline_mode = #tpu.pipeline_mode<synchronous>, transform_indices = @transform_13, window_bounds = array<i64: 32, 405>}, {pipeline_mode = #tpu.pipeline_mode<synchronous>, transform_indices = @transform_14, window_bounds = array<i64: 32, 1>}, {pipeline_mode = #tpu.pipeline_mode<synchronous>, transform_indices = @transform_15, window_bounds = array<i64: 3, 288>}, {pipeline_mode = #tpu.pipeline_mode<synchronous>, transform_indices = @transform_16, window_bounds = array<i64: 3, 1>}, {pipeline_mode = #tpu.pipeline_mode<synchronous>, transform_indices = @transform_17, window_bounds = array<i64: 64, 27>}, {pipeline_mode = #tpu.pipeline_mode<synchronous>, transform_indices = @transform_18, window_bounds = array<i64: 64, 1>}, {pipeline_mode = #tpu.pipeline_mode<synchronous>, transform_indices = @transform_19, window_bounds = array<i64: 90, 576>}, {pipeline_mode = #tpu.pipeline_mode<synchronous>, transform_indices = @transform_20, window_bounds = array<i64: 90, 1>}, {transform_indices = @transform_21, window_bounds = array<i64: 1, 48, 16>}]} {
    %c0 = arith.constant 0 : index
    %c0_0 = arith.constant 0 : index
    %c0_1 = arith.constant 0 : index
    %0 = vector.load %arg1[%c0, %c0_0, %c0_1] : memref<1x3x256xf32, #tpu.memory_space<vmem>>, vector<1x3x256xf32>
    %1 = vector.shape_cast %0 : vector<1x3x256xf32> to vector<3x256xf32>
    %c0_2 = arith.constant 0 : index
    %c0_3 = arith.constant 0 : index
    %c0_4 = arith.constant 0 : index
    %2 = vector.load %arg2[%c0_2, %c0_3, %c0_4] : memref<4x256x64xf32, #tpu.memory_space<vmem>>, vector<1x256x64xf32>
    %3 = vector.shape_cast %2 : vector<1x256x64xf32> to vector<256x64xf32>
    %cst = arith.constant dense<0.000000e+00> : vector<3x64xf32>
    %4 = tpu.matmul %1, %3, %cst {dimension_numbers = #tpu.dot_dimension_numbers<[1], [0], [0], [1], [0, 0, 1, 1], [], []>} : vector<3x256xf32>, vector<256x64xf32>, vector<3x64xf32> -> vector<3x64xf32>
    %c1 = arith.constant 1 : index
    %c0_5 = arith.constant 0 : index
    %c0_6 = arith.constant 0 : index
    %5 = vector.load %arg2[%c1, %c0_5, %c0_6] : memref<4x256x64xf32, #tpu.memory_space<vmem>>, vector<1x256x64xf32>
    %6 = vector.shape_cast %5 : vector<1x256x64xf32> to vector<256x64xf32>
    %cst_7 = arith.constant dense<0.000000e+00> : vector<3x64xf32>
    %7 = tpu.matmul %1, %6, %cst_7 {dimension_numbers = #tpu.dot_dimension_numbers<[1], [0], [0], [1], [0, 0, 1, 1], [], []>} : vector<3x256xf32>, vector<256x64xf32>, vector<3x64xf32> -> vector<3x64xf32>
    %c2 = arith.constant 2 : index
    %c0_8 = arith.constant 0 : index
    %c0_9 = arith.constant 0 : index
    %8 = vector.load %arg2[%c2, %c0_8, %c0_9] : memref<4x256x64xf32, #tpu.memory_space<vmem>>, vector<1x256x64xf32>
    %9 = vector.shape_cast %8 : vector<1x256x64xf32> to vector<256x64xf32>
    %cst_10 = arith.constant dense<0.000000e+00> : vector<3x64xf32>
    %10 = tpu.matmul %1, %9, %cst_10 {dimension_numbers = #tpu.dot_dimension_numbers<[1], [0], [0], [1], [0, 0, 1, 1], [], []>} : vector<3x256xf32>, vector<256x64xf32>, vector<3x64xf32> -> vector<3x64xf32>
    %c3 = arith.constant 3 : index
    %c0_11 = arith.constant 0 : index
    %c0_12 = arith.constant 0 : index
    %11 = vector.load %arg2[%c3, %c0_11, %c0_12] : memref<4x256x64xf32, #tpu.memory_space<vmem>>, vector<1x256x64xf32>
    %12 = vector.shape_cast %11 : vector<1x256x64xf32> to vector<256x64xf32>
    %cst_13 = arith.constant dense<0.000000e+00> : vector<3x64xf32>
    %13 = tpu.matmul %1, %12, %cst_13 {dimension_numbers = #tpu.dot_dimension_numbers<[1], [0], [0], [1], [0, 0, 1, 1], [], []>} : vector<3x256xf32>, vector<256x64xf32>, vector<3x64xf32> -> vector<3x64xf32>
    %14 = tpu.concatenate %4, %7, %10, %13 in 0 : vector<3x64xf32>, vector<3x64xf32>, vector<3x64xf32>, vector<3x64xf32> -> vector<12x64xf32>
    %15 = vector.extract_strided_slice %14 {offsets = [0, 0], sizes = [3, 64], strides = [1, 1]} : vector<12x64xf32> to vector<3x64xf32>
    %16 = vector.extract_strided_slice %14 {offsets = [3, 0], sizes = [9, 64], strides = [1, 1]} : vector<12x64xf32> to vector<9x64xf32>
    %c0_14 = arith.constant 0 : index
    %c0_15 = arith.constant 0 : index
    %17 = vector.load %arg6[%c0_14, %c0_15] : memref<32x81xf32, #tpu.memory_space<vmem>>, vector<32x81xf32>
    %c0_16 = arith.constant 0 : index
    %c0_17 = arith.constant 0 : index
    %c0_18 = arith.constant 0 : index
    %18 = vector.load %arg4[%c0_16, %c0_17, %c0_18] : memref<9x64x64xf32, #tpu.memory_space<vmem>>, vector<1x64x64xf32>
    %19 = vector.shape_cast %18 : vector<1x64x64xf32> to vector<64x64xf32>
    %cst_19 = arith.constant dense<0.000000e+00> : vector<9x64xf32>
    %20 = tpu.matmul %16, %19, %cst_19 {dimension_numbers = #tpu.dot_dimension_numbers<[1], [0], [0], [1], [0, 0, 1, 1], [], []>} : vector<9x64xf32>, vector<64x64xf32>, vector<9x64xf32> -> vector<9x64xf32>
    %c1_20 = arith.constant 1 : index
    %c0_21 = arith.constant 0 : index
    %c0_22 = arith.constant 0 : index
    %21 = vector.load %arg4[%c1_20, %c0_21, %c0_22] : memref<9x64x64xf32, #tpu.memory_space<vmem>>, vector<1x64x64xf32>
    %22 = vector.shape_cast %21 : vector<1x64x64xf32> to vector<64x64xf32>
    %cst_23 = arith.constant dense<0.000000e+00> : vector<9x64xf32>
    %23 = tpu.matmul %16, %22, %cst_23 {dimension_numbers = #tpu.dot_dimension_numbers<[1], [0], [0], [1], [0, 0, 1, 1], [], []>} : vector<9x64xf32>, vector<64x64xf32>, vector<9x64xf32> -> vector<9x64xf32>
    %c2_24 = arith.constant 2 : index
    %c0_25 = arith.constant 0 : index
    %c0_26 = arith.constant 0 : index
    %24 = vector.load %arg4[%c2_24, %c0_25, %c0_26] : memref<9x64x64xf32, #tpu.memory_space<vmem>>, vector<1x64x64xf32>
    %25 = vector.shape_cast %24 : vector<1x64x64xf32> to vector<64x64xf32>
    %cst_27 = arith.constant dense<0.000000e+00> : vector<9x64xf32>
    %26 = tpu.matmul %16, %25, %cst_27 {dimension_numbers = #tpu.dot_dimension_numbers<[1], [0], [0], [1], [0, 0, 1, 1], [], []>} : vector<9x64xf32>, vector<64x64xf32>, vector<9x64xf32> -> vector<9x64xf32>
    %c3_28 = arith.constant 3 : index
    %c0_29 = arith.constant 0 : index
    %c0_30 = arith.constant 0 : index
    %27 = vector.load %arg4[%c3_28, %c0_29, %c0_30] : memref<9x64x64xf32, #tpu.memory_space<vmem>>, vector<1x64x64xf32>
    %28 = vector.shape_cast %27 : vector<1x64x64xf32> to vector<64x64xf32>
    %cst_31 = arith.constant dense<0.000000e+00> : vector<9x64xf32>
    %29 = tpu.matmul %16, %28, %cst_31 {dimension_numbers = #tpu.dot_dimension_numbers<[1], [0], [0], [1], [0, 0, 1, 1], [], []>} : vector<9x64xf32>, vector<64x64xf32>, vector<9x64xf32> -> vector<9x64xf32>
    %c4 = arith.constant 4 : index
    %c0_32 = arith.constant 0 : index
    %c0_33 = arith.constant 0 : index
    %30 = vector.load %arg4[%c4, %c0_32, %c0_33] : memref<9x64x64xf32, #tpu.memory_space<vmem>>, vector<1x64x64xf32>
    %31 = vector.shape_cast %30 : vector<1x64x64xf32> to vector<64x64xf32>
    %cst_34 = arith.constant dense<0.000000e+00> : vector<9x64xf32>
    %32 = tpu.matmul %16, %31, %cst_34 {dimension_numbers = #tpu.dot_dimension_numbers<[1], [0], [0], [1], [0, 0, 1, 1], [], []>} : vector<9x64xf32>, vector<64x64xf32>, vector<9x64xf32> -> vector<9x64xf32>
    %c5 = arith.constant 5 : index
    %c0_35 = arith.constant 0 : index
    %c0_36 = arith.constant 0 : index
    %33 = vector.load %arg4[%c5, %c0_35, %c0_36] : memref<9x64x64xf32, #tpu.memory_space<vmem>>, vector<1x64x64xf32>
    %34 = vector.shape_cast %33 : vector<1x64x64xf32> to vector<64x64xf32>
    %cst_37 = arith.constant dense<0.000000e+00> : vector<9x64xf32>
    %35 = tpu.matmul %16, %34, %cst_37 {dimension_numbers = #tpu.dot_dimension_numbers<[1], [0], [0], [1], [0, 0, 1, 1], [], []>} : vector<9x64xf32>, vector<64x64xf32>, vector<9x64xf32> -> vector<9x64xf32>
    %c6 = arith.constant 6 : index
    %c0_38 = arith.constant 0 : index
    %c0_39 = arith.constant 0 : index
    %36 = vector.load %arg4[%c6, %c0_38, %c0_39] : memref<9x64x64xf32, #tpu.memory_space<vmem>>, vector<1x64x64xf32>
    %37 = vector.shape_cast %36 : vector<1x64x64xf32> to vector<64x64xf32>
    %cst_40 = arith.constant dense<0.000000e+00> : vector<9x64xf32>
    %38 = tpu.matmul %16, %37, %cst_40 {dimension_numbers = #tpu.dot_dimension_numbers<[1], [0], [0], [1], [0, 0, 1, 1], [], []>} : vector<9x64xf32>, vector<64x64xf32>, vector<9x64xf32> -> vector<9x64xf32>
    %c7 = arith.constant 7 : index
    %c0_41 = arith.constant 0 : index
    %c0_42 = arith.constant 0 : index
    %39 = vector.load %arg4[%c7, %c0_41, %c0_42] : memref<9x64x64xf32, #tpu.memory_space<vmem>>, vector<1x64x64xf32>
    %40 = vector.shape_cast %39 : vector<1x64x64xf32> to vector<64x64xf32>
    %cst_43 = arith.constant dense<0.000000e+00> : vector<9x64xf32>
    %41 = tpu.matmul %16, %40, %cst_43 {dimension_numbers = #tpu.dot_dimension_numbers<[1], [0], [0], [1], [0, 0, 1, 1], [], []>} : vector<9x64xf32>, vector<64x64xf32>, vector<9x64xf32> -> vector<9x64xf32>
    %c8 = arith.constant 8 : index
    %c0_44 = arith.constant 0 : index
    %c0_45 = arith.constant 0 : index
    %42 = vector.load %arg4[%c8, %c0_44, %c0_45] : memref<9x64x64xf32, #tpu.memory_space<vmem>>, vector<1x64x64xf32>
    %43 = vector.shape_cast %42 : vector<1x64x64xf32> to vector<64x64xf32>
    %cst_46 = arith.constant dense<0.000000e+00> : vector<9x64xf32>
    %44 = tpu.matmul %16, %43, %cst_46 {dimension_numbers = #tpu.dot_dimension_numbers<[1], [0], [0], [1], [0, 0, 1, 1], [], []>} : vector<9x64xf32>, vector<64x64xf32>, vector<9x64xf32> -> vector<9x64xf32>
    %45 = tpu.concatenate %20, %23, %26, %29, %32, %35, %38, %41, %44 in 0 : vector<9x64xf32>, vector<9x64xf32>, vector<9x64xf32>, vector<9x64xf32>, vector<9x64xf32>, vector<9x64xf32>, vector<9x64xf32>, vector<9x64xf32>, vector<9x64xf32> -> vector<81x64xf32>
    %cst_47 = arith.constant dense<0.000000e+00> : vector<32x64xf32>
    %46 = tpu.matmul %17, %45, %cst_47 {dimension_numbers = #tpu.dot_dimension_numbers<[1], [0], [0], [1], [0, 0, 1, 1], [], []>} : vector<32x81xf32>, vector<81x64xf32>, vector<32x64xf32> -> vector<32x64xf32>
    %c0_48 = arith.constant 0 : index
    %c0_49 = arith.constant 0 : index
    %47 = vector.load %arg7[%c0_48, %c0_49] : memref<32x1xf32, #tpu.memory_space<vmem>>, vector<32x1xf32>
    %48 = vector.broadcast %47 : vector<32x1xf32> to vector<32x64xf32>
    %49 = arith.addf %46, %48 : vector<32x64xf32>
    %cst_50 = arith.constant 0.000000e+00 : f32
    %50 = vector.broadcast %cst_50 : f32 to vector<32x64xf32>
    %51 = arith.maximumf %49, %50 : vector<32x64xf32>
    %c0_51 = arith.constant 0 : index
    %c0_52 = arith.constant 0 : index
    %52 = vector.load %arg8[%c0_51, %c0_52] : memref<3x288xf32, #tpu.memory_space<vmem>>, vector<3x288xf32>
    %c0_53 = arith.constant 0 : index
    %c0_54 = arith.constant 0 : index
    %c0_55 = arith.constant 0 : index
    %53 = vector.load %arg4[%c0_53, %c0_54, %c0_55] : memref<9x64x64xf32, #tpu.memory_space<vmem>>, vector<1x64x64xf32>
    %54 = vector.shape_cast %53 : vector<1x64x64xf32> to vector<64x64xf32>
    %cst_56 = arith.constant dense<0.000000e+00> : vector<32x64xf32>
    %55 = tpu.matmul %51, %54, %cst_56 {dimension_numbers = #tpu.dot_dimension_numbers<[1], [0], [0], [1], [0, 0, 1, 1], [], []>} : vector<32x64xf32>, vector<64x64xf32>, vector<32x64xf32> -> vector<32x64xf32>
    %c1_57 = arith.constant 1 : index
    %c0_58 = arith.constant 0 : index
    %c0_59 = arith.constant 0 : index
    %56 = vector.load %arg4[%c1_57, %c0_58, %c0_59] : memref<9x64x64xf32, #tpu.memory_space<vmem>>, vector<1x64x64xf32>
    %57 = vector.shape_cast %56 : vector<1x64x64xf32> to vector<64x64xf32>
    %cst_60 = arith.constant dense<0.000000e+00> : vector<32x64xf32>
    %58 = tpu.matmul %51, %57, %cst_60 {dimension_numbers = #tpu.dot_dimension_numbers<[1], [0], [0], [1], [0, 0, 1, 1], [], []>} : vector<32x64xf32>, vector<64x64xf32>, vector<32x64xf32> -> vector<32x64xf32>
    %c2_61 = arith.constant 2 : index
    %c0_62 = arith.constant 0 : index
    %c0_63 = arith.constant 0 : index
    %59 = vector.load %arg4[%c2_61, %c0_62, %c0_63] : memref<9x64x64xf32, #tpu.memory_space<vmem>>, vector<1x64x64xf32>
    %60 = vector.shape_cast %59 : vector<1x64x64xf32> to vector<64x64xf32>
    %cst_64 = arith.constant dense<0.000000e+00> : vector<32x64xf32>
    %61 = tpu.matmul %51, %60, %cst_64 {dimension_numbers = #tpu.dot_dimension_numbers<[1], [0], [0], [1], [0, 0, 1, 1], [], []>} : vector<32x64xf32>, vector<64x64xf32>, vector<32x64xf32> -> vector<32x64xf32>
    %c3_65 = arith.constant 3 : index
    %c0_66 = arith.constant 0 : index
    %c0_67 = arith.constant 0 : index
    %62 = vector.load %arg4[%c3_65, %c0_66, %c0_67] : memref<9x64x64xf32, #tpu.memory_space<vmem>>, vector<1x64x64xf32>
    %63 = vector.shape_cast %62 : vector<1x64x64xf32> to vector<64x64xf32>
    %cst_68 = arith.constant dense<0.000000e+00> : vector<32x64xf32>
    %64 = tpu.matmul %51, %63, %cst_68 {dimension_numbers = #tpu.dot_dimension_numbers<[1], [0], [0], [1], [0, 0, 1, 1], [], []>} : vector<32x64xf32>, vector<64x64xf32>, vector<32x64xf32> -> vector<32x64xf32>
    %c4_69 = arith.constant 4 : index
    %c0_70 = arith.constant 0 : index
    %c0_71 = arith.constant 0 : index
    %65 = vector.load %arg4[%c4_69, %c0_70, %c0_71] : memref<9x64x64xf32, #tpu.memory_space<vmem>>, vector<1x64x64xf32>
    %66 = vector.shape_cast %65 : vector<1x64x64xf32> to vector<64x64xf32>
    %cst_72 = arith.constant dense<0.000000e+00> : vector<32x64xf32>
    %67 = tpu.matmul %51, %66, %cst_72 {dimension_numbers = #tpu.dot_dimension_numbers<[1], [0], [0], [1], [0, 0, 1, 1], [], []>} : vector<32x64xf32>, vector<64x64xf32>, vector<32x64xf32> -> vector<32x64xf32>
    %c5_73 = arith.constant 5 : index
    %c0_74 = arith.constant 0 : index
    %c0_75 = arith.constant 0 : index
    %68 = vector.load %arg4[%c5_73, %c0_74, %c0_75] : memref<9x64x64xf32, #tpu.memory_space<vmem>>, vector<1x64x64xf32>
    %69 = vector.shape_cast %68 : vector<1x64x64xf32> to vector<64x64xf32>
    %cst_76 = arith.constant dense<0.000000e+00> : vector<32x64xf32>
    %70 = tpu.matmul %51, %69, %cst_76 {dimension_numbers = #tpu.dot_dimension_numbers<[1], [0], [0], [1], [0, 0, 1, 1], [], []>} : vector<32x64xf32>, vector<64x64xf32>, vector<32x64xf32> -> vector<32x64xf32>
    %c6_77 = arith.constant 6 : index
    %c0_78 = arith.constant 0 : index
    %c0_79 = arith.constant 0 : index
    %71 = vector.load %arg4[%c6_77, %c0_78, %c0_79] : memref<9x64x64xf32, #tpu.memory_space<vmem>>, vector<1x64x64xf32>
    %72 = vector.shape_cast %71 : vector<1x64x64xf32> to vector<64x64xf32>
    %cst_80 = arith.constant dense<0.000000e+00> : vector<32x64xf32>
    %73 = tpu.matmul %51, %72, %cst_80 {dimension_numbers = #tpu.dot_dimension_numbers<[1], [0], [0], [1], [0, 0, 1, 1], [], []>} : vector<32x64xf32>, vector<64x64xf32>, vector<32x64xf32> -> vector<32x64xf32>
    %c7_81 = arith.constant 7 : index
    %c0_82 = arith.constant 0 : index
    %c0_83 = arith.constant 0 : index
    %74 = vector.load %arg4[%c7_81, %c0_82, %c0_83] : memref<9x64x64xf32, #tpu.memory_space<vmem>>, vector<1x64x64xf32>
    %75 = vector.shape_cast %74 : vector<1x64x64xf32> to vector<64x64xf32>
    %cst_84 = arith.constant dense<0.000000e+00> : vector<32x64xf32>
    %76 = tpu.matmul %51, %75, %cst_84 {dimension_numbers = #tpu.dot_dimension_numbers<[1], [0], [0], [1], [0, 0, 1, 1], [], []>} : vector<32x64xf32>, vector<64x64xf32>, vector<32x64xf32> -> vector<32x64xf32>
    %c8_85 = arith.constant 8 : index
    %c0_86 = arith.constant 0 : index
    %c0_87 = arith.constant 0 : index
    %77 = vector.load %arg4[%c8_85, %c0_86, %c0_87] : memref<9x64x64xf32, #tpu.memory_space<vmem>>, vector<1x64x64xf32>
    %78 = vector.shape_cast %77 : vector<1x64x64xf32> to vector<64x64xf32>
    %cst_88 = arith.constant dense<0.000000e+00> : vector<32x64xf32>
    %79 = tpu.matmul %51, %78, %cst_88 {dimension_numbers = #tpu.dot_dimension_numbers<[1], [0], [0], [1], [0, 0, 1, 1], [], []>} : vector<32x64xf32>, vector<64x64xf32>, vector<32x64xf32> -> vector<32x64xf32>
    %80 = tpu.concatenate %55, %58, %61, %64, %67, %70, %73, %76, %79 in 0 : vector<32x64xf32>, vector<32x64xf32>, vector<32x64xf32>, vector<32x64xf32>, vector<32x64xf32>, vector<32x64xf32>, vector<32x64xf32>, vector<32x64xf32>, vector<32x64xf32> -> vector<288x64xf32>
    %cst_89 = arith.constant dense<0.000000e+00> : vector<3x64xf32>
    %81 = tpu.matmul %52, %80, %cst_89 {dimension_numbers = #tpu.dot_dimension_numbers<[1], [0], [0], [1], [0, 0, 1, 1], [], []>} : vector<3x288xf32>, vector<288x64xf32>, vector<3x64xf32> -> vector<3x64xf32>
    %c0_90 = arith.constant 0 : index
    %c0_91 = arith.constant 0 : index
    %82 = vector.load %arg9[%c0_90, %c0_91] : memref<3x1xf32, #tpu.memory_space<vmem>>, vector<3x1xf32>
    %83 = vector.broadcast %82 : vector<3x1xf32> to vector<3x64xf32>
    %84 = arith.addf %81, %83 : vector<3x64xf32>
    %85 = arith.addf %15, %84 : vector<3x64xf32>
    %c0_92 = arith.constant 0 : index
    %c0_93 = arith.constant 0 : index
    %86 = vector.load %arg10[%c0_92, %c0_93] : memref<64x27xf32, #tpu.memory_space<vmem>>, vector<64x27xf32>
    %c0_94 = arith.constant 0 : index
    %c0_95 = arith.constant 0 : index
    %c0_96 = arith.constant 0 : index
    %87 = vector.load %arg4[%c0_94, %c0_95, %c0_96] : memref<9x64x64xf32, #tpu.memory_space<vmem>>, vector<1x64x64xf32>
    %88 = vector.shape_cast %87 : vector<1x64x64xf32> to vector<64x64xf32>
    %cst_97 = arith.constant dense<0.000000e+00> : vector<3x64xf32>
    %89 = tpu.matmul %85, %88, %cst_97 {dimension_numbers = #tpu.dot_dimension_numbers<[1], [0], [0], [1], [0, 0, 1, 1], [], []>} : vector<3x64xf32>, vector<64x64xf32>, vector<3x64xf32> -> vector<3x64xf32>
    %c1_98 = arith.constant 1 : index
    %c0_99 = arith.constant 0 : index
    %c0_100 = arith.constant 0 : index
    %90 = vector.load %arg4[%c1_98, %c0_99, %c0_100] : memref<9x64x64xf32, #tpu.memory_space<vmem>>, vector<1x64x64xf32>
    %91 = vector.shape_cast %90 : vector<1x64x64xf32> to vector<64x64xf32>
    %cst_101 = arith.constant dense<0.000000e+00> : vector<3x64xf32>
    %92 = tpu.matmul %85, %91, %cst_101 {dimension_numbers = #tpu.dot_dimension_numbers<[1], [0], [0], [1], [0, 0, 1, 1], [], []>} : vector<3x64xf32>, vector<64x64xf32>, vector<3x64xf32> -> vector<3x64xf32>
    %c2_102 = arith.constant 2 : index
    %c0_103 = arith.constant 0 : index
    %c0_104 = arith.constant 0 : index
    %93 = vector.load %arg4[%c2_102, %c0_103, %c0_104] : memref<9x64x64xf32, #tpu.memory_space<vmem>>, vector<1x64x64xf32>
    %94 = vector.shape_cast %93 : vector<1x64x64xf32> to vector<64x64xf32>
    %cst_105 = arith.constant dense<0.000000e+00> : vector<3x64xf32>
    %95 = tpu.matmul %85, %94, %cst_105 {dimension_numbers = #tpu.dot_dimension_numbers<[1], [0], [0], [1], [0, 0, 1, 1], [], []>} : vector<3x64xf32>, vector<64x64xf32>, vector<3x64xf32> -> vector<3x64xf32>
    %c3_106 = arith.constant 3 : index
    %c0_107 = arith.constant 0 : index
    %c0_108 = arith.constant 0 : index
    %96 = vector.load %arg4[%c3_106, %c0_107, %c0_108] : memref<9x64x64xf32, #tpu.memory_space<vmem>>, vector<1x64x64xf32>
    %97 = vector.shape_cast %96 : vector<1x64x64xf32> to vector<64x64xf32>
    %cst_109 = arith.constant dense<0.000000e+00> : vector<3x64xf32>
    %98 = tpu.matmul %85, %97, %cst_109 {dimension_numbers = #tpu.dot_dimension_numbers<[1], [0], [0], [1], [0, 0, 1, 1], [], []>} : vector<3x64xf32>, vector<64x64xf32>, vector<3x64xf32> -> vector<3x64xf32>
    %c4_110 = arith.constant 4 : index
    %c0_111 = arith.constant 0 : index
    %c0_112 = arith.constant 0 : index
    %99 = vector.load %arg4[%c4_110, %c0_111, %c0_112] : memref<9x64x64xf32, #tpu.memory_space<vmem>>, vector<1x64x64xf32>
    %100 = vector.shape_cast %99 : vector<1x64x64xf32> to vector<64x64xf32>
    %cst_113 = arith.constant dense<0.000000e+00> : vector<3x64xf32>
    %101 = tpu.matmul %85, %100, %cst_113 {dimension_numbers = #tpu.dot_dimension_numbers<[1], [0], [0], [1], [0, 0, 1, 1], [], []>} : vector<3x64xf32>, vector<64x64xf32>, vector<3x64xf32> -> vector<3x64xf32>
    %c5_114 = arith.constant 5 : index
    %c0_115 = arith.constant 0 : index
    %c0_116 = arith.constant 0 : index
    %102 = vector.load %arg4[%c5_114, %c0_115, %c0_116] : memref<9x64x64xf32, #tpu.memory_space<vmem>>, vector<1x64x64xf32>
    %103 = vector.shape_cast %102 : vector<1x64x64xf32> to vector<64x64xf32>
    %cst_117 = arith.constant dense<0.000000e+00> : vector<3x64xf32>
    %104 = tpu.matmul %85, %103, %cst_117 {dimension_numbers = #tpu.dot_dimension_numbers<[1], [0], [0], [1], [0, 0, 1, 1], [], []>} : vector<3x64xf32>, vector<64x64xf32>, vector<3x64xf32> -> vector<3x64xf32>
    %c6_118 = arith.constant 6 : index
    %c0_119 = arith.constant 0 : index
    %c0_120 = arith.constant 0 : index
    %105 = vector.load %arg4[%c6_118, %c0_119, %c0_120] : memref<9x64x64xf32, #tpu.memory_space<vmem>>, vector<1x64x64xf32>
    %106 = vector.shape_cast %105 : vector<1x64x64xf32> to vector<64x64xf32>
    %cst_121 = arith.constant dense<0.000000e+00> : vector<3x64xf32>
    %107 = tpu.matmul %85, %106, %cst_121 {dimension_numbers = #tpu.dot_dimension_numbers<[1], [0], [0], [1], [0, 0, 1, 1], [], []>} : vector<3x64xf32>, vector<64x64xf32>, vector<3x64xf32> -> vector<3x64xf32>
    %c7_122 = arith.constant 7 : index
    %c0_123 = arith.constant 0 : index
    %c0_124 = arith.constant 0 : index
    %108 = vector.load %arg4[%c7_122, %c0_123, %c0_124] : memref<9x64x64xf32, #tpu.memory_space<vmem>>, vector<1x64x64xf32>
    %109 = vector.shape_cast %108 : vector<1x64x64xf32> to vector<64x64xf32>
    %cst_125 = arith.constant dense<0.000000e+00> : vector<3x64xf32>
    %110 = tpu.matmul %85, %109, %cst_125 {dimension_numbers = #tpu.dot_dimension_numbers<[1], [0], [0], [1], [0, 0, 1, 1], [], []>} : vector<3x64xf32>, vector<64x64xf32>, vector<3x64xf32> -> vector<3x64xf32>
    %c8_126 = arith.constant 8 : index
    %c0_127 = arith.constant 0 : index
    %c0_128 = arith.constant 0 : index
    %111 = vector.load %arg4[%c8_126, %c0_127, %c0_128] : memref<9x64x64xf32, #tpu.memory_space<vmem>>, vector<1x64x64xf32>
    %112 = vector.shape_cast %111 : vector<1x64x64xf32> to vector<64x64xf32>
    %cst_129 = arith.constant dense<0.000000e+00> : vector<3x64xf32>
    %113 = tpu.matmul %85, %112, %cst_129 {dimension_numbers = #tpu.dot_dimension_numbers<[1], [0], [0], [1], [0, 0, 1, 1], [], []>} : vector<3x64xf32>, vector<64x64xf32>, vector<3x64xf32> -> vector<3x64xf32>
    %114 = tpu.concatenate %89, %92, %95, %98, %101, %104, %107, %110, %113 in 0 : vector<3x64xf32>, vector<3x64xf32>, vector<3x64xf32>, vector<3x64xf32>, vector<3x64xf32>, vector<3x64xf32>, vector<3x64xf32>, vector<3x64xf32>, vector<3x64xf32> -> vector<27x64xf32>
    %cst_130 = arith.constant dense<0.000000e+00> : vector<64x64xf32>
    %115 = tpu.matmul %86, %114, %cst_130 {dimension_numbers = #tpu.dot_dimension_numbers<[1], [0], [0], [1], [0, 0, 1, 1], [], []>} : vector<64x27xf32>, vector<27x64xf32>, vector<64x64xf32> -> vector<64x64xf32>
    %c0_131 = arith.constant 0 : index
    %c0_132 = arith.constant 0 : index
    %116 = vector.load %arg11[%c0_131, %c0_132] : memref<64x1xf32, #tpu.memory_space<vmem>>, vector<64x1xf32>
    %117 = vector.broadcast %116 : vector<64x1xf32> to vector<64x64xf32>
    %118 = arith.addf %115, %117 : vector<64x64xf32>
    %cst_133 = arith.constant 0.000000e+00 : f32
    %119 = vector.broadcast %cst_133 : f32 to vector<64x64xf32>
    %120 = arith.maximumf %118, %119 : vector<64x64xf32>
    %c0_134 = arith.constant 0 : index
    %c0_135 = arith.constant 0 : index
    %121 = vector.load %arg12[%c0_134, %c0_135] : memref<18x576xf32, #tpu.memory_space<vmem>>, vector<18x576xf32>
    %c0_136 = arith.constant 0 : index
    %c0_137 = arith.constant 0 : index
    %c0_138 = arith.constant 0 : index
    %122 = vector.load %arg4[%c0_136, %c0_137, %c0_138] : memref<9x64x64xf32, #tpu.memory_space<vmem>>, vector<1x64x64xf32>
    %123 = vector.shape_cast %122 : vector<1x64x64xf32> to vector<64x64xf32>
    %cst_139 = arith.constant dense<0.000000e+00> : vector<64x64xf32>
    %124 = tpu.matmul %120, %123, %cst_139 {dimension_numbers = #tpu.dot_dimension_numbers<[1], [0], [0], [1], [0, 0, 1, 1], [], []>} : vector<64x64xf32>, vector<64x64xf32>, vector<64x64xf32> -> vector<64x64xf32>
    %c1_140 = arith.constant 1 : index
    %c0_141 = arith.constant 0 : index
    %c0_142 = arith.constant 0 : index
    %125 = vector.load %arg4[%c1_140, %c0_141, %c0_142] : memref<9x64x64xf32, #tpu.memory_space<vmem>>, vector<1x64x64xf32>
    %126 = vector.shape_cast %125 : vector<1x64x64xf32> to vector<64x64xf32>
    %cst_143 = arith.constant dense<0.000000e+00> : vector<64x64xf32>
    %127 = tpu.matmul %120, %126, %cst_143 {dimension_numbers = #tpu.dot_dimension_numbers<[1], [0], [0], [1], [0, 0, 1, 1], [], []>} : vector<64x64xf32>, vector<64x64xf32>, vector<64x64xf32> -> vector<64x64xf32>
    %c2_144 = arith.constant 2 : index
    %c0_145 = arith.constant 0 : index
    %c0_146 = arith.constant 0 : index
    %128 = vector.load %arg4[%c2_144, %c0_145, %c0_146] : memref<9x64x64xf32, #tpu.memory_space<vmem>>, vector<1x64x64xf32>
    %129 = vector.shape_cast %128 : vector<1x64x64xf32> to vector<64x64xf32>
    %cst_147 = arith.constant dense<0.000000e+00> : vector<64x64xf32>
    %130 = tpu.matmul %120, %129, %cst_147 {dimension_numbers = #tpu.dot_dimension_numbers<[1], [0], [0], [1], [0, 0, 1, 1], [], []>} : vector<64x64xf32>, vector<64x64xf32>, vector<64x64xf32> -> vector<64x64xf32>
    %c3_148 = arith.constant 3 : index
    %c0_149 = arith.constant 0 : index
    %c0_150 = arith.constant 0 : index
    %131 = vector.load %arg4[%c3_148, %c0_149, %c0_150] : memref<9x64x64xf32, #tpu.memory_space<vmem>>, vector<1x64x64xf32>
    %132 = vector.shape_cast %131 : vector<1x64x64xf32> to vector<64x64xf32>
    %cst_151 = arith.constant dense<0.000000e+00> : vector<64x64xf32>
    %133 = tpu.matmul %120, %132, %cst_151 {dimension_numbers = #tpu.dot_dimension_numbers<[1], [0], [0], [1], [0, 0, 1, 1], [], []>} : vector<64x64xf32>, vector<64x64xf32>, vector<64x64xf32> -> vector<64x64xf32>
    %c4_152 = arith.constant 4 : index
    %c0_153 = arith.constant 0 : index
    %c0_154 = arith.constant 0 : index
    %134 = vector.load %arg4[%c4_152, %c0_153, %c0_154] : memref<9x64x64xf32, #tpu.memory_space<vmem>>, vector<1x64x64xf32>
    %135 = vector.shape_cast %134 : vector<1x64x64xf32> to vector<64x64xf32>
    %cst_155 = arith.constant dense<0.000000e+00> : vector<64x64xf32>
    %136 = tpu.matmul %120, %135, %cst_155 {dimension_numbers = #tpu.dot_dimension_numbers<[1], [0], [0], [1], [0, 0, 1, 1], [], []>} : vector<64x64xf32>, vector<64x64xf32>, vector<64x64xf32> -> vector<64x64xf32>
    %c5_156 = arith.constant 5 : index
    %c0_157 = arith.constant 0 : index
    %c0_158 = arith.constant 0 : index
    %137 = vector.load %arg4[%c5_156, %c0_157, %c0_158] : memref<9x64x64xf32, #tpu.memory_space<vmem>>, vector<1x64x64xf32>
    %138 = vector.shape_cast %137 : vector<1x64x64xf32> to vector<64x64xf32>
    %cst_159 = arith.constant dense<0.000000e+00> : vector<64x64xf32>
    %139 = tpu.matmul %120, %138, %cst_159 {dimension_numbers = #tpu.dot_dimension_numbers<[1], [0], [0], [1], [0, 0, 1, 1], [], []>} : vector<64x64xf32>, vector<64x64xf32>, vector<64x64xf32> -> vector<64x64xf32>
    %c6_160 = arith.constant 6 : index
    %c0_161 = arith.constant 0 : index
    %c0_162 = arith.constant 0 : index
    %140 = vector.load %arg4[%c6_160, %c0_161, %c0_162] : memref<9x64x64xf32, #tpu.memory_space<vmem>>, vector<1x64x64xf32>
    %141 = vector.shape_cast %140 : vector<1x64x64xf32> to vector<64x64xf32>
    %cst_163 = arith.constant dense<0.000000e+00> : vector<64x64xf32>
    %142 = tpu.matmul %120, %141, %cst_163 {dimension_numbers = #tpu.dot_dimension_numbers<[1], [0], [0], [1], [0, 0, 1, 1], [], []>} : vector<64x64xf32>, vector<64x64xf32>, vector<64x64xf32> -> vector<64x64xf32>
    %c7_164 = arith.constant 7 : index
    %c0_165 = arith.constant 0 : index
    %c0_166 = arith.constant 0 : index
    %143 = vector.load %arg4[%c7_164, %c0_165, %c0_166] : memref<9x64x64xf32, #tpu.memory_space<vmem>>, vector<1x64x64xf32>
    %144 = vector.shape_cast %143 : vector<1x64x64xf32> to vector<64x64xf32>
    %cst_167 = arith.constant dense<0.000000e+00> : vector<64x64xf32>
    %145 = tpu.matmul %120, %144, %cst_167 {dimension_numbers = #tpu.dot_dimension_numbers<[1], [0], [0], [1], [0, 0, 1, 1], [], []>} : vector<64x64xf32>, vector<64x64xf32>, vector<64x64xf32> -> vector<64x64xf32>
    %c8_168 = arith.constant 8 : index
    %c0_169 = arith.constant 0 : index
    %c0_170 = arith.constant 0 : index
    %146 = vector.load %arg4[%c8_168, %c0_169, %c0_170] : memref<9x64x64xf32, #tpu.memory_space<vmem>>, vector<1x64x64xf32>
    %147 = vector.shape_cast %146 : vector<1x64x64xf32> to vector<64x64xf32>
    %cst_171 = arith.constant dense<0.000000e+00> : vector<64x64xf32>
    %148 = tpu.matmul %120, %147, %cst_171 {dimension_numbers = #tpu.dot_dimension_numbers<[1], [0], [0], [1], [0, 0, 1, 1], [], []>} : vector<64x64xf32>, vector<64x64xf32>, vector<64x64xf32> -> vector<64x64xf32>
    %149 = tpu.concatenate %124, %127, %130, %133, %136, %139, %142, %145, %148 in 0 : vector<64x64xf32>, vector<64x64xf32>, vector<64x64xf32>, vector<64x64xf32>, vector<64x64xf32>, vector<64x64xf32>, vector<64x64xf32>, vector<64x64xf32>, vector<64x64xf32> -> vector<576x64xf32>
    %cst_172 = arith.constant dense<0.000000e+00> : vector<18x64xf32>
    %150 = tpu.matmul %121, %149, %cst_172 {dimension_numbers = #tpu.dot_dimension_numbers<[1], [0], [0], [1], [0, 0, 1, 1], [], []>} : vector<18x576xf32>, vector<576x64xf32>, vector<18x64xf32> -> vector<18x64xf32>
    %c0_173 = arith.constant 0 : index
    %c0_174 = arith.constant 0 : index
    %151 = vector.load %arg13[%c0_173, %c0_174] : memref<18x1xf32, #tpu.memory_space<vmem>>, vector<18x1xf32>
    %152 = vector.broadcast %151 : vector<18x1xf32> to vector<18x64xf32>
    %153 = arith.addf %150, %152 : vector<18x64xf32>
    %154 = vector.extract_strided_slice %153 {offsets = [0, 0], sizes = [9, 64], strides = [1, 1]} : vector<18x64xf32> to vector<9x64xf32>
    %155 = arith.negf %154 : vector<9x64xf32>
    %156 = math.exp %155 : vector<9x64xf32>
    %cst_175 = arith.constant 1.000000e+00 : f32
    %157 = vector.broadcast %cst_175 : f32 to vector<9x64xf32>
    %158 = arith.addf %157, %156 : vector<9x64xf32>
    %159 = arith.divf %157, %158 : vector<9x64xf32>
    %cst_176 = arith.constant 2.000000e+00 : f32
    %160 = vector.broadcast %cst_176 : f32 to vector<9x64xf32>
    %161 = arith.mulf %159, %160 : vector<9x64xf32>
    %cst_177 = arith.constant 1.000000e+00 : f32
    %162 = vector.broadcast %cst_177 : f32 to vector<9x64xf32>
    %163 = arith.subf %161, %162 : vector<9x64xf32>
    %cst_178 = arith.constant 1.000000e+00 : f32
    %164 = vector.broadcast %cst_178 : f32 to vector<9x64xf32>
    %165 = arith.mulf %164, %163 : vector<9x64xf32>
    %166 = math.exp %165 : vector<9x64xf32>
    %167 = arith.mulf %16, %166 : vector<9x64xf32>
    %168 = vector.extract_strided_slice %153 {offsets = [9, 0], sizes = [9, 64], strides = [1, 1]} : vector<18x64xf32> to vector<9x64xf32>
    %169 = arith.addf %167, %168 : vector<9x64xf32>
    %170 = tpu.concatenate %85, %169 in 0 : vector<3x64xf32>, vector<9x64xf32> -> vector<12x64xf32>
    %c0_179 = arith.constant 0 : index
    %c0_180 = arith.constant 0 : index
    %c0_181 = arith.constant 0 : index
    %171 = vector.load %arg3[%c0_179, %c0_180, %c0_181] : memref<4x64x16xf32, #tpu.memory_space<vmem>>, vector<1x64x16xf32>
    %172 = vector.shape_cast %171 : vector<1x64x16xf32> to vector<64x16xf32>
    %cst_182 = arith.constant dense<0.000000e+00> : vector<12x16xf32>
    %173 = tpu.matmul %170, %172, %cst_182 {dimension_numbers = #tpu.dot_dimension_numbers<[1], [0], [0], [1], [0, 0, 1, 1], [], []>} : vector<12x64xf32>, vector<64x16xf32>, vector<12x16xf32> -> vector<12x16xf32>
    %c1_183 = arith.constant 1 : index
    %c0_184 = arith.constant 0 : index
    %c0_185 = arith.constant 0 : index
    %174 = vector.load %arg3[%c1_183, %c0_184, %c0_185] : memref<4x64x16xf32, #tpu.memory_space<vmem>>, vector<1x64x16xf32>
    %175 = vector.shape_cast %174 : vector<1x64x16xf32> to vector<64x16xf32>
    %cst_186 = arith.constant dense<0.000000e+00> : vector<12x16xf32>
    %176 = tpu.matmul %170, %175, %cst_186 {dimension_numbers = #tpu.dot_dimension_numbers<[1], [0], [0], [1], [0, 0, 1, 1], [], []>} : vector<12x64xf32>, vector<64x16xf32>, vector<12x16xf32> -> vector<12x16xf32>
    %c2_187 = arith.constant 2 : index
    %c0_188 = arith.constant 0 : index
    %c0_189 = arith.constant 0 : index
    %177 = vector.load %arg3[%c2_187, %c0_188, %c0_189] : memref<4x64x16xf32, #tpu.memory_space<vmem>>, vector<1x64x16xf32>
    %178 = vector.shape_cast %177 : vector<1x64x16xf32> to vector<64x16xf32>
    %cst_190 = arith.constant dense<0.000000e+00> : vector<12x16xf32>
    %179 = tpu.matmul %170, %178, %cst_190 {dimension_numbers = #tpu.dot_dimension_numbers<[1], [0], [0], [1], [0, 0, 1, 1], [], []>} : vector<12x64xf32>, vector<64x16xf32>, vector<12x16xf32> -> vector<12x16xf32>
    %c3_191 = arith.constant 3 : index
    %c0_192 = arith.constant 0 : index
    %c0_193 = arith.constant 0 : index
    %180 = vector.load %arg3[%c3_191, %c0_192, %c0_193] : memref<4x64x16xf32, #tpu.memory_space<vmem>>, vector<1x64x16xf32>
    %181 = vector.shape_cast %180 : vector<1x64x16xf32> to vector<64x16xf32>
    %cst_194 = arith.constant dense<0.000000e+00> : vector<12x16xf32>
    %182 = tpu.matmul %170, %181, %cst_194 {dimension_numbers = #tpu.dot_dimension_numbers<[1], [0], [0], [1], [0, 0, 1, 1], [], []>} : vector<12x64xf32>, vector<64x16xf32>, vector<12x16xf32> -> vector<12x16xf32>
    %183 = tpu.concatenate %173, %176, %179, %182 in 0 : vector<12x16xf32>, vector<12x16xf32>, vector<12x16xf32>, vector<12x16xf32> -> vector<48x16xf32>
    %184 = vector.extract_strided_slice %183 {offsets = [0, 0], sizes = [3, 16], strides = [1, 1]} : vector<48x16xf32> to vector<3x16xf32>
    %185 = vector.extract_strided_slice %183 {offsets = [3, 0], sizes = [45, 16], strides = [1, 1]} : vector<48x16xf32> to vector<45x16xf32>
    %c0_195 = arith.constant 0 : index
    %c0_196 = arith.constant 0 : index
    %186 = vector.load %arg14[%c0_195, %c0_196] : memref<32x405xf32, #tpu.memory_space<vmem>>, vector<32x405xf32>
    %c0_197 = arith.constant 0 : index
    %c0_198 = arith.constant 0 : index
    %c0_199 = arith.constant 0 : index
    %187 = vector.load %arg5[%c0_197, %c0_198, %c0_199] : memref<9x16x16xf32, #tpu.memory_space<vmem>>, vector<1x16x16xf32>
    %188 = vector.shape_cast %187 : vector<1x16x16xf32> to vector<16x16xf32>
    %cst_200 = arith.constant dense<0.000000e+00> : vector<45x16xf32>
    %189 = tpu.matmul %185, %188, %cst_200 {dimension_numbers = #tpu.dot_dimension_numbers<[1], [0], [0], [1], [0, 0, 1, 1], [], []>} : vector<45x16xf32>, vector<16x16xf32>, vector<45x16xf32> -> vector<45x16xf32>
    %c1_201 = arith.constant 1 : index
    %c0_202 = arith.constant 0 : index
    %c0_203 = arith.constant 0 : index
    %190 = vector.load %arg5[%c1_201, %c0_202, %c0_203] : memref<9x16x16xf32, #tpu.memory_space<vmem>>, vector<1x16x16xf32>
    %191 = vector.shape_cast %190 : vector<1x16x16xf32> to vector<16x16xf32>
    %cst_204 = arith.constant dense<0.000000e+00> : vector<45x16xf32>
    %192 = tpu.matmul %185, %191, %cst_204 {dimension_numbers = #tpu.dot_dimension_numbers<[1], [0], [0], [1], [0, 0, 1, 1], [], []>} : vector<45x16xf32>, vector<16x16xf32>, vector<45x16xf32> -> vector<45x16xf32>
    %c2_205 = arith.constant 2 : index
    %c0_206 = arith.constant 0 : index
    %c0_207 = arith.constant 0 : index
    %193 = vector.load %arg5[%c2_205, %c0_206, %c0_207] : memref<9x16x16xf32, #tpu.memory_space<vmem>>, vector<1x16x16xf32>
    %194 = vector.shape_cast %193 : vector<1x16x16xf32> to vector<16x16xf32>
    %cst_208 = arith.constant dense<0.000000e+00> : vector<45x16xf32>
    %195 = tpu.matmul %185, %194, %cst_208 {dimension_numbers = #tpu.dot_dimension_numbers<[1], [0], [0], [1], [0, 0, 1, 1], [], []>} : vector<45x16xf32>, vector<16x16xf32>, vector<45x16xf32> -> vector<45x16xf32>
    %c3_209 = arith.constant 3 : index
    %c0_210 = arith.constant 0 : index
    %c0_211 = arith.constant 0 : index
    %196 = vector.load %arg5[%c3_209, %c0_210, %c0_211] : memref<9x16x16xf32, #tpu.memory_space<vmem>>, vector<1x16x16xf32>
    %197 = vector.shape_cast %196 : vector<1x16x16xf32> to vector<16x16xf32>
    %cst_212 = arith.constant dense<0.000000e+00> : vector<45x16xf32>
    %198 = tpu.matmul %185, %197, %cst_212 {dimension_numbers = #tpu.dot_dimension_numbers<[1], [0], [0], [1], [0, 0, 1, 1], [], []>} : vector<45x16xf32>, vector<16x16xf32>, vector<45x16xf32> -> vector<45x16xf32>
    %c4_213 = arith.constant 4 : index
    %c0_214 = arith.constant 0 : index
    %c0_215 = arith.constant 0 : index
    %199 = vector.load %arg5[%c4_213, %c0_214, %c0_215] : memref<9x16x16xf32, #tpu.memory_space<vmem>>, vector<1x16x16xf32>
    %200 = vector.shape_cast %199 : vector<1x16x16xf32> to vector<16x16xf32>
    %cst_216 = arith.constant dense<0.000000e+00> : vector<45x16xf32>
    %201 = tpu.matmul %185, %200, %cst_216 {dimension_numbers = #tpu.dot_dimension_numbers<[1], [0], [0], [1], [0, 0, 1, 1], [], []>} : vector<45x16xf32>, vector<16x16xf32>, vector<45x16xf32> -> vector<45x16xf32>
    %c5_217 = arith.constant 5 : index
    %c0_218 = arith.constant 0 : index
    %c0_219 = arith.constant 0 : index
    %202 = vector.load %arg5[%c5_217, %c0_218, %c0_219] : memref<9x16x16xf32, #tpu.memory_space<vmem>>, vector<1x16x16xf32>
    %203 = vector.shape_cast %202 : vector<1x16x16xf32> to vector<16x16xf32>
    %cst_220 = arith.constant dense<0.000000e+00> : vector<45x16xf32>
    %204 = tpu.matmul %185, %203, %cst_220 {dimension_numbers = #tpu.dot_dimension_numbers<[1], [0], [0], [1], [0, 0, 1, 1], [], []>} : vector<45x16xf32>, vector<16x16xf32>, vector<45x16xf32> -> vector<45x16xf32>
    %c6_221 = arith.constant 6 : index
    %c0_222 = arith.constant 0 : index
    %c0_223 = arith.constant 0 : index
    %205 = vector.load %arg5[%c6_221, %c0_222, %c0_223] : memref<9x16x16xf32, #tpu.memory_space<vmem>>, vector<1x16x16xf32>
    %206 = vector.shape_cast %205 : vector<1x16x16xf32> to vector<16x16xf32>
    %cst_224 = arith.constant dense<0.000000e+00> : vector<45x16xf32>
    %207 = tpu.matmul %185, %206, %cst_224 {dimension_numbers = #tpu.dot_dimension_numbers<[1], [0], [0], [1], [0, 0, 1, 1], [], []>} : vector<45x16xf32>, vector<16x16xf32>, vector<45x16xf32> -> vector<45x16xf32>
    %c7_225 = arith.constant 7 : index
    %c0_226 = arith.constant 0 : index
    %c0_227 = arith.constant 0 : index
    %208 = vector.load %arg5[%c7_225, %c0_226, %c0_227] : memref<9x16x16xf32, #tpu.memory_space<vmem>>, vector<1x16x16xf32>
    %209 = vector.shape_cast %208 : vector<1x16x16xf32> to vector<16x16xf32>
    %cst_228 = arith.constant dense<0.000000e+00> : vector<45x16xf32>
    %210 = tpu.matmul %185, %209, %cst_228 {dimension_numbers = #tpu.dot_dimension_numbers<[1], [0], [0], [1], [0, 0, 1, 1], [], []>} : vector<45x16xf32>, vector<16x16xf32>, vector<45x16xf32> -> vector<45x16xf32>
    %c8_229 = arith.constant 8 : index
    %c0_230 = arith.constant 0 : index
    %c0_231 = arith.constant 0 : index
    %211 = vector.load %arg5[%c8_229, %c0_230, %c0_231] : memref<9x16x16xf32, #tpu.memory_space<vmem>>, vector<1x16x16xf32>
    %212 = vector.shape_cast %211 : vector<1x16x16xf32> to vector<16x16xf32>
    %cst_232 = arith.constant dense<0.000000e+00> : vector<45x16xf32>
    %213 = tpu.matmul %185, %212, %cst_232 {dimension_numbers = #tpu.dot_dimension_numbers<[1], [0], [0], [1], [0, 0, 1, 1], [], []>} : vector<45x16xf32>, vector<16x16xf32>, vector<45x16xf32> -> vector<45x16xf32>
    %214 = tpu.concatenate %189, %192, %195, %198, %201, %204, %207, %210, %213 in 0 : vector<45x16xf32>, vector<45x16xf32>, vector<45x16xf32>, vector<45x16xf32>, vector<45x16xf32>, vector<45x16xf32>, vector<45x16xf32>, vector<45x16xf32>, vector<45x16xf32> -> vector<405x16xf32>
    %cst_233 = arith.constant dense<0.000000e+00> : vector<32x16xf32>
    %215 = tpu.matmul %186, %214, %cst_233 {dimension_numbers = #tpu.dot_dimension_numbers<[1], [0], [0], [1], [0, 0, 1, 1], [], []>} : vector<32x405xf32>, vector<405x16xf32>, vector<32x16xf32> -> vector<32x16xf32>
    %c0_234 = arith.constant 0 : index
    %c0_235 = arith.constant 0 : index
    %216 = vector.load %arg15[%c0_234, %c0_235] : memref<32x1xf32, #tpu.memory_space<vmem>>, vector<32x1xf32>
    %217 = vector.broadcast %216 : vector<32x1xf32> to vector<32x16xf32>
    %218 = arith.addf %215, %217 : vector<32x16xf32>
    %cst_236 = arith.constant 0.000000e+00 : f32
    %219 = vector.broadcast %cst_236 : f32 to vector<32x16xf32>
    %220 = arith.maximumf %218, %219 : vector<32x16xf32>
    %c0_237 = arith.constant 0 : index
    %c0_238 = arith.constant 0 : index
    %221 = vector.load %arg16[%c0_237, %c0_238] : memref<3x288xf32, #tpu.memory_space<vmem>>, vector<3x288xf32>
    %c0_239 = arith.constant 0 : index
    %c0_240 = arith.constant 0 : index
    %c0_241 = arith.constant 0 : index
    %222 = vector.load %arg5[%c0_239, %c0_240, %c0_241] : memref<9x16x16xf32, #tpu.memory_space<vmem>>, vector<1x16x16xf32>
    %223 = vector.shape_cast %222 : vector<1x16x16xf32> to vector<16x16xf32>
    %cst_242 = arith.constant dense<0.000000e+00> : vector<32x16xf32>
    %224 = tpu.matmul %220, %223, %cst_242 {dimension_numbers = #tpu.dot_dimension_numbers<[1], [0], [0], [1], [0, 0, 1, 1], [], []>} : vector<32x16xf32>, vector<16x16xf32>, vector<32x16xf32> -> vector<32x16xf32>
    %c1_243 = arith.constant 1 : index
    %c0_244 = arith.constant 0 : index
    %c0_245 = arith.constant 0 : index
    %225 = vector.load %arg5[%c1_243, %c0_244, %c0_245] : memref<9x16x16xf32, #tpu.memory_space<vmem>>, vector<1x16x16xf32>
    %226 = vector.shape_cast %225 : vector<1x16x16xf32> to vector<16x16xf32>
    %cst_246 = arith.constant dense<0.000000e+00> : vector<32x16xf32>
    %227 = tpu.matmul %220, %226, %cst_246 {dimension_numbers = #tpu.dot_dimension_numbers<[1], [0], [0], [1], [0, 0, 1, 1], [], []>} : vector<32x16xf32>, vector<16x16xf32>, vector<32x16xf32> -> vector<32x16xf32>
    %c2_247 = arith.constant 2 : index
    %c0_248 = arith.constant 0 : index
    %c0_249 = arith.constant 0 : index
    %228 = vector.load %arg5[%c2_247, %c0_248, %c0_249] : memref<9x16x16xf32, #tpu.memory_space<vmem>>, vector<1x16x16xf32>
    %229 = vector.shape_cast %228 : vector<1x16x16xf32> to vector<16x16xf32>
    %cst_250 = arith.constant dense<0.000000e+00> : vector<32x16xf32>
    %230 = tpu.matmul %220, %229, %cst_250 {dimension_numbers = #tpu.dot_dimension_numbers<[1], [0], [0], [1], [0, 0, 1, 1], [], []>} : vector<32x16xf32>, vector<16x16xf32>, vector<32x16xf32> -> vector<32x16xf32>
    %c3_251 = arith.constant 3 : index
    %c0_252 = arith.constant 0 : index
    %c0_253 = arith.constant 0 : index
    %231 = vector.load %arg5[%c3_251, %c0_252, %c0_253] : memref<9x16x16xf32, #tpu.memory_space<vmem>>, vector<1x16x16xf32>
    %232 = vector.shape_cast %231 : vector<1x16x16xf32> to vector<16x16xf32>
    %cst_254 = arith.constant dense<0.000000e+00> : vector<32x16xf32>
    %233 = tpu.matmul %220, %232, %cst_254 {dimension_numbers = #tpu.dot_dimension_numbers<[1], [0], [0], [1], [0, 0, 1, 1], [], []>} : vector<32x16xf32>, vector<16x16xf32>, vector<32x16xf32> -> vector<32x16xf32>
    %c4_255 = arith.constant 4 : index
    %c0_256 = arith.constant 0 : index
    %c0_257 = arith.constant 0 : index
    %234 = vector.load %arg5[%c4_255, %c0_256, %c0_257] : memref<9x16x16xf32, #tpu.memory_space<vmem>>, vector<1x16x16xf32>
    %235 = vector.shape_cast %234 : vector<1x16x16xf32> to vector<16x16xf32>
    %cst_258 = arith.constant dense<0.000000e+00> : vector<32x16xf32>
    %236 = tpu.matmul %220, %235, %cst_258 {dimension_numbers = #tpu.dot_dimension_numbers<[1], [0], [0], [1], [0, 0, 1, 1], [], []>} : vector<32x16xf32>, vector<16x16xf32>, vector<32x16xf32> -> vector<32x16xf32>
    %c5_259 = arith.constant 5 : index
    %c0_260 = arith.constant 0 : index
    %c0_261 = arith.constant 0 : index
    %237 = vector.load %arg5[%c5_259, %c0_260, %c0_261] : memref<9x16x16xf32, #tpu.memory_space<vmem>>, vector<1x16x16xf32>
    %238 = vector.shape_cast %237 : vector<1x16x16xf32> to vector<16x16xf32>
    %cst_262 = arith.constant dense<0.000000e+00> : vector<32x16xf32>
    %239 = tpu.matmul %220, %238, %cst_262 {dimension_numbers = #tpu.dot_dimension_numbers<[1], [0], [0], [1], [0, 0, 1, 1], [], []>} : vector<32x16xf32>, vector<16x16xf32>, vector<32x16xf32> -> vector<32x16xf32>
    %c6_263 = arith.constant 6 : index
    %c0_264 = arith.constant 0 : index
    %c0_265 = arith.constant 0 : index
    %240 = vector.load %arg5[%c6_263, %c0_264, %c0_265] : memref<9x16x16xf32, #tpu.memory_space<vmem>>, vector<1x16x16xf32>
    %241 = vector.shape_cast %240 : vector<1x16x16xf32> to vector<16x16xf32>
    %cst_266 = arith.constant dense<0.000000e+00> : vector<32x16xf32>
    %242 = tpu.matmul %220, %241, %cst_266 {dimension_numbers = #tpu.dot_dimension_numbers<[1], [0], [0], [1], [0, 0, 1, 1], [], []>} : vector<32x16xf32>, vector<16x16xf32>, vector<32x16xf32> -> vector<32x16xf32>
    %c7_267 = arith.constant 7 : index
    %c0_268 = arith.constant 0 : index
    %c0_269 = arith.constant 0 : index
    %243 = vector.load %arg5[%c7_267, %c0_268, %c0_269] : memref<9x16x16xf32, #tpu.memory_space<vmem>>, vector<1x16x16xf32>
    %244 = vector.shape_cast %243 : vector<1x16x16xf32> to vector<16x16xf32>
    %cst_270 = arith.constant dense<0.000000e+00> : vector<32x16xf32>
    %245 = tpu.matmul %220, %244, %cst_270 {dimension_numbers = #tpu.dot_dimension_numbers<[1], [0], [0], [1], [0, 0, 1, 1], [], []>} : vector<32x16xf32>, vector<16x16xf32>, vector<32x16xf32> -> vector<32x16xf32>
    %c8_271 = arith.constant 8 : index
    %c0_272 = arith.constant 0 : index
    %c0_273 = arith.constant 0 : index
    %246 = vector.load %arg5[%c8_271, %c0_272, %c0_273] : memref<9x16x16xf32, #tpu.memory_space<vmem>>, vector<1x16x16xf32>
    %247 = vector.shape_cast %246 : vector<1x16x16xf32> to vector<16x16xf32>
    %cst_274 = arith.constant dense<0.000000e+00> : vector<32x16xf32>
    %248 = tpu.matmul %220, %247, %cst_274 {dimension_numbers = #tpu.dot_dimension_numbers<[1], [0], [0], [1], [0, 0, 1, 1], [], []>} : vector<32x16xf32>, vector<16x16xf32>, vector<32x16xf32> -> vector<32x16xf32>
    %249 = tpu.concatenate %224, %227, %230, %233, %236, %239, %242, %245, %248 in 0 : vector<32x16xf32>, vector<32x16xf32>, vector<32x16xf32>, vector<32x16xf32>, vector<32x16xf32>, vector<32x16xf32>, vector<32x16xf32>, vector<32x16xf32>, vector<32x16xf32> -> vector<288x16xf32>
    %cst_275 = arith.constant dense<0.000000e+00> : vector<3x16xf32>
    %250 = tpu.matmul %221, %249, %cst_275 {dimension_numbers = #tpu.dot_dimension_numbers<[1], [0], [0], [1], [0, 0, 1, 1], [], []>} : vector<3x288xf32>, vector<288x16xf32>, vector<3x16xf32> -> vector<3x16xf32>
    %c0_276 = arith.constant 0 : index
    %c0_277 = arith.constant 0 : index
    %251 = vector.load %arg17[%c0_276, %c0_277] : memref<3x1xf32, #tpu.memory_space<vmem>>, vector<3x1xf32>
    %252 = vector.broadcast %251 : vector<3x1xf32> to vector<3x16xf32>
    %253 = arith.addf %250, %252 : vector<3x16xf32>
    %254 = arith.addf %184, %253 : vector<3x16xf32>
    %c0_278 = arith.constant 0 : index
    %c0_279 = arith.constant 0 : index
    %255 = vector.load %arg18[%c0_278, %c0_279] : memref<64x27xf32, #tpu.memory_space<vmem>>, vector<64x27xf32>
    %c0_280 = arith.constant 0 : index
    %c0_281 = arith.constant 0 : index
    %c0_282 = arith.constant 0 : index
    %256 = vector.load %arg5[%c0_280, %c0_281, %c0_282] : memref<9x16x16xf32, #tpu.memory_space<vmem>>, vector<1x16x16xf32>
    %257 = vector.shape_cast %256 : vector<1x16x16xf32> to vector<16x16xf32>
    %cst_283 = arith.constant dense<0.000000e+00> : vector<3x16xf32>
    %258 = tpu.matmul %254, %257, %cst_283 {dimension_numbers = #tpu.dot_dimension_numbers<[1], [0], [0], [1], [0, 0, 1, 1], [], []>} : vector<3x16xf32>, vector<16x16xf32>, vector<3x16xf32> -> vector<3x16xf32>
    %c1_284 = arith.constant 1 : index
    %c0_285 = arith.constant 0 : index
    %c0_286 = arith.constant 0 : index
    %259 = vector.load %arg5[%c1_284, %c0_285, %c0_286] : memref<9x16x16xf32, #tpu.memory_space<vmem>>, vector<1x16x16xf32>
    %260 = vector.shape_cast %259 : vector<1x16x16xf32> to vector<16x16xf32>
    %cst_287 = arith.constant dense<0.000000e+00> : vector<3x16xf32>
    %261 = tpu.matmul %254, %260, %cst_287 {dimension_numbers = #tpu.dot_dimension_numbers<[1], [0], [0], [1], [0, 0, 1, 1], [], []>} : vector<3x16xf32>, vector<16x16xf32>, vector<3x16xf32> -> vector<3x16xf32>
    %c2_288 = arith.constant 2 : index
    %c0_289 = arith.constant 0 : index
    %c0_290 = arith.constant 0 : index
    %262 = vector.load %arg5[%c2_288, %c0_289, %c0_290] : memref<9x16x16xf32, #tpu.memory_space<vmem>>, vector<1x16x16xf32>
    %263 = vector.shape_cast %262 : vector<1x16x16xf32> to vector<16x16xf32>
    %cst_291 = arith.constant dense<0.000000e+00> : vector<3x16xf32>
    %264 = tpu.matmul %254, %263, %cst_291 {dimension_numbers = #tpu.dot_dimension_numbers<[1], [0], [0], [1], [0, 0, 1, 1], [], []>} : vector<3x16xf32>, vector<16x16xf32>, vector<3x16xf32> -> vector<3x16xf32>
    %c3_292 = arith.constant 3 : index
    %c0_293 = arith.constant 0 : index
    %c0_294 = arith.constant 0 : index
    %265 = vector.load %arg5[%c3_292, %c0_293, %c0_294] : memref<9x16x16xf32, #tpu.memory_space<vmem>>, vector<1x16x16xf32>
    %266 = vector.shape_cast %265 : vector<1x16x16xf32> to vector<16x16xf32>
    %cst_295 = arith.constant dense<0.000000e+00> : vector<3x16xf32>
    %267 = tpu.matmul %254, %266, %cst_295 {dimension_numbers = #tpu.dot_dimension_numbers<[1], [0], [0], [1], [0, 0, 1, 1], [], []>} : vector<3x16xf32>, vector<16x16xf32>, vector<3x16xf32> -> vector<3x16xf32>
    %c4_296 = arith.constant 4 : index
    %c0_297 = arith.constant 0 : index
    %c0_298 = arith.constant 0 : index
    %268 = vector.load %arg5[%c4_296, %c0_297, %c0_298] : memref<9x16x16xf32, #tpu.memory_space<vmem>>, vector<1x16x16xf32>
    %269 = vector.shape_cast %268 : vector<1x16x16xf32> to vector<16x16xf32>
    %cst_299 = arith.constant dense<0.000000e+00> : vector<3x16xf32>
    %270 = tpu.matmul %254, %269, %cst_299 {dimension_numbers = #tpu.dot_dimension_numbers<[1], [0], [0], [1], [0, 0, 1, 1], [], []>} : vector<3x16xf32>, vector<16x16xf32>, vector<3x16xf32> -> vector<3x16xf32>
    %c5_300 = arith.constant 5 : index
    %c0_301 = arith.constant 0 : index
    %c0_302 = arith.constant 0 : index
    %271 = vector.load %arg5[%c5_300, %c0_301, %c0_302] : memref<9x16x16xf32, #tpu.memory_space<vmem>>, vector<1x16x16xf32>
    %272 = vector.shape_cast %271 : vector<1x16x16xf32> to vector<16x16xf32>
    %cst_303 = arith.constant dense<0.000000e+00> : vector<3x16xf32>
    %273 = tpu.matmul %254, %272, %cst_303 {dimension_numbers = #tpu.dot_dimension_numbers<[1], [0], [0], [1], [0, 0, 1, 1], [], []>} : vector<3x16xf32>, vector<16x16xf32>, vector<3x16xf32> -> vector<3x16xf32>
    %c6_304 = arith.constant 6 : index
    %c0_305 = arith.constant 0 : index
    %c0_306 = arith.constant 0 : index
    %274 = vector.load %arg5[%c6_304, %c0_305, %c0_306] : memref<9x16x16xf32, #tpu.memory_space<vmem>>, vector<1x16x16xf32>
    %275 = vector.shape_cast %274 : vector<1x16x16xf32> to vector<16x16xf32>
    %cst_307 = arith.constant dense<0.000000e+00> : vector<3x16xf32>
    %276 = tpu.matmul %254, %275, %cst_307 {dimension_numbers = #tpu.dot_dimension_numbers<[1], [0], [0], [1], [0, 0, 1, 1], [], []>} : vector<3x16xf32>, vector<16x16xf32>, vector<3x16xf32> -> vector<3x16xf32>
    %c7_308 = arith.constant 7 : index
    %c0_309 = arith.constant 0 : index
    %c0_310 = arith.constant 0 : index
    %277 = vector.load %arg5[%c7_308, %c0_309, %c0_310] : memref<9x16x16xf32, #tpu.memory_space<vmem>>, vector<1x16x16xf32>
    %278 = vector.shape_cast %277 : vector<1x16x16xf32> to vector<16x16xf32>
    %cst_311 = arith.constant dense<0.000000e+00> : vector<3x16xf32>
    %279 = tpu.matmul %254, %278, %cst_311 {dimension_numbers = #tpu.dot_dimension_numbers<[1], [0], [0], [1], [0, 0, 1, 1], [], []>} : vector<3x16xf32>, vector<16x16xf32>, vector<3x16xf32> -> vector<3x16xf32>
    %c8_312 = arith.constant 8 : index
    %c0_313 = arith.constant 0 : index
    %c0_314 = arith.constant 0 : index
    %280 = vector.load %arg5[%c8_312, %c0_313, %c0_314] : memref<9x16x16xf32, #tpu.memory_space<vmem>>, vector<1x16x16xf32>
    %281 = vector.shape_cast %280 : vector<1x16x16xf32> to vector<16x16xf32>
    %cst_315 = arith.constant dense<0.000000e+00> : vector<3x16xf32>
    %282 = tpu.matmul %254, %281, %cst_315 {dimension_numbers = #tpu.dot_dimension_numbers<[1], [0], [0], [1], [0, 0, 1, 1], [], []>} : vector<3x16xf32>, vector<16x16xf32>, vector<3x16xf32> -> vector<3x16xf32>
    %283 = tpu.concatenate %258, %261, %264, %267, %270, %273, %276, %279, %282 in 0 : vector<3x16xf32>, vector<3x16xf32>, vector<3x16xf32>, vector<3x16xf32>, vector<3x16xf32>, vector<3x16xf32>, vector<3x16xf32>, vector<3x16xf32>, vector<3x16xf32> -> vector<27x16xf32>
    %cst_316 = arith.constant dense<0.000000e+00> : vector<64x16xf32>
    %284 = tpu.matmul %255, %283, %cst_316 {dimension_numbers = #tpu.dot_dimension_numbers<[1], [0], [0], [1], [0, 0, 1, 1], [], []>} : vector<64x27xf32>, vector<27x16xf32>, vector<64x16xf32> -> vector<64x16xf32>
    %c0_317 = arith.constant 0 : index
    %c0_318 = arith.constant 0 : index
    %285 = vector.load %arg19[%c0_317, %c0_318] : memref<64x1xf32, #tpu.memory_space<vmem>>, vector<64x1xf32>
    %286 = vector.broadcast %285 : vector<64x1xf32> to vector<64x16xf32>
    %287 = arith.addf %284, %286 : vector<64x16xf32>
    %cst_319 = arith.constant 0.000000e+00 : f32
    %288 = vector.broadcast %cst_319 : f32 to vector<64x16xf32>
    %289 = arith.maximumf %287, %288 : vector<64x16xf32>
    %c0_320 = arith.constant 0 : index
    %c0_321 = arith.constant 0 : index
    %290 = vector.load %arg20[%c0_320, %c0_321] : memref<90x576xf32, #tpu.memory_space<vmem>>, vector<90x576xf32>
    %c0_322 = arith.constant 0 : index
    %c0_323 = arith.constant 0 : index
    %c0_324 = arith.constant 0 : index
    %291 = vector.load %arg5[%c0_322, %c0_323, %c0_324] : memref<9x16x16xf32, #tpu.memory_space<vmem>>, vector<1x16x16xf32>
    %292 = vector.shape_cast %291 : vector<1x16x16xf32> to vector<16x16xf32>
    %cst_325 = arith.constant dense<0.000000e+00> : vector<64x16xf32>
    %293 = tpu.matmul %289, %292, %cst_325 {dimension_numbers = #tpu.dot_dimension_numbers<[1], [0], [0], [1], [0, 0, 1, 1], [], []>} : vector<64x16xf32>, vector<16x16xf32>, vector<64x16xf32> -> vector<64x16xf32>
    %c1_326 = arith.constant 1 : index
    %c0_327 = arith.constant 0 : index
    %c0_328 = arith.constant 0 : index
    %294 = vector.load %arg5[%c1_326, %c0_327, %c0_328] : memref<9x16x16xf32, #tpu.memory_space<vmem>>, vector<1x16x16xf32>
    %295 = vector.shape_cast %294 : vector<1x16x16xf32> to vector<16x16xf32>
    %cst_329 = arith.constant dense<0.000000e+00> : vector<64x16xf32>
    %296 = tpu.matmul %289, %295, %cst_329 {dimension_numbers = #tpu.dot_dimension_numbers<[1], [0], [0], [1], [0, 0, 1, 1], [], []>} : vector<64x16xf32>, vector<16x16xf32>, vector<64x16xf32> -> vector<64x16xf32>
    %c2_330 = arith.constant 2 : index
    %c0_331 = arith.constant 0 : index
    %c0_332 = arith.constant 0 : index
    %297 = vector.load %arg5[%c2_330, %c0_331, %c0_332] : memref<9x16x16xf32, #tpu.memory_space<vmem>>, vector<1x16x16xf32>
    %298 = vector.shape_cast %297 : vector<1x16x16xf32> to vector<16x16xf32>
    %cst_333 = arith.constant dense<0.000000e+00> : vector<64x16xf32>
    %299 = tpu.matmul %289, %298, %cst_333 {dimension_numbers = #tpu.dot_dimension_numbers<[1], [0], [0], [1], [0, 0, 1, 1], [], []>} : vector<64x16xf32>, vector<16x16xf32>, vector<64x16xf32> -> vector<64x16xf32>
    %c3_334 = arith.constant 3 : index
    %c0_335 = arith.constant 0 : index
    %c0_336 = arith.constant 0 : index
    %300 = vector.load %arg5[%c3_334, %c0_335, %c0_336] : memref<9x16x16xf32, #tpu.memory_space<vmem>>, vector<1x16x16xf32>
    %301 = vector.shape_cast %300 : vector<1x16x16xf32> to vector<16x16xf32>
    %cst_337 = arith.constant dense<0.000000e+00> : vector<64x16xf32>
    %302 = tpu.matmul %289, %301, %cst_337 {dimension_numbers = #tpu.dot_dimension_numbers<[1], [0], [0], [1], [0, 0, 1, 1], [], []>} : vector<64x16xf32>, vector<16x16xf32>, vector<64x16xf32> -> vector<64x16xf32>
    %c4_338 = arith.constant 4 : index
    %c0_339 = arith.constant 0 : index
    %c0_340 = arith.constant 0 : index
    %303 = vector.load %arg5[%c4_338, %c0_339, %c0_340] : memref<9x16x16xf32, #tpu.memory_space<vmem>>, vector<1x16x16xf32>
    %304 = vector.shape_cast %303 : vector<1x16x16xf32> to vector<16x16xf32>
    %cst_341 = arith.constant dense<0.000000e+00> : vector<64x16xf32>
    %305 = tpu.matmul %289, %304, %cst_341 {dimension_numbers = #tpu.dot_dimension_numbers<[1], [0], [0], [1], [0, 0, 1, 1], [], []>} : vector<64x16xf32>, vector<16x16xf32>, vector<64x16xf32> -> vector<64x16xf32>
    %c5_342 = arith.constant 5 : index
    %c0_343 = arith.constant 0 : index
    %c0_344 = arith.constant 0 : index
    %306 = vector.load %arg5[%c5_342, %c0_343, %c0_344] : memref<9x16x16xf32, #tpu.memory_space<vmem>>, vector<1x16x16xf32>
    %307 = vector.shape_cast %306 : vector<1x16x16xf32> to vector<16x16xf32>
    %cst_345 = arith.constant dense<0.000000e+00> : vector<64x16xf32>
    %308 = tpu.matmul %289, %307, %cst_345 {dimension_numbers = #tpu.dot_dimension_numbers<[1], [0], [0], [1], [0, 0, 1, 1], [], []>} : vector<64x16xf32>, vector<16x16xf32>, vector<64x16xf32> -> vector<64x16xf32>
    %c6_346 = arith.constant 6 : index
    %c0_347 = arith.constant 0 : index
    %c0_348 = arith.constant 0 : index
    %309 = vector.load %arg5[%c6_346, %c0_347, %c0_348] : memref<9x16x16xf32, #tpu.memory_space<vmem>>, vector<1x16x16xf32>
    %310 = vector.shape_cast %309 : vector<1x16x16xf32> to vector<16x16xf32>
    %cst_349 = arith.constant dense<0.000000e+00> : vector<64x16xf32>
    %311 = tpu.matmul %289, %310, %cst_349 {dimension_numbers = #tpu.dot_dimension_numbers<[1], [0], [0], [1], [0, 0, 1, 1], [], []>} : vector<64x16xf32>, vector<16x16xf32>, vector<64x16xf32> -> vector<64x16xf32>
    %c7_350 = arith.constant 7 : index
    %c0_351 = arith.constant 0 : index
    %c0_352 = arith.constant 0 : index
    %312 = vector.load %arg5[%c7_350, %c0_351, %c0_352] : memref<9x16x16xf32, #tpu.memory_space<vmem>>, vector<1x16x16xf32>
    %313 = vector.shape_cast %312 : vector<1x16x16xf32> to vector<16x16xf32>
    %cst_353 = arith.constant dense<0.000000e+00> : vector<64x16xf32>
    %314 = tpu.matmul %289, %313, %cst_353 {dimension_numbers = #tpu.dot_dimension_numbers<[1], [0], [0], [1], [0, 0, 1, 1], [], []>} : vector<64x16xf32>, vector<16x16xf32>, vector<64x16xf32> -> vector<64x16xf32>
    %c8_354 = arith.constant 8 : index
    %c0_355 = arith.constant 0 : index
    %c0_356 = arith.constant 0 : index
    %315 = vector.load %arg5[%c8_354, %c0_355, %c0_356] : memref<9x16x16xf32, #tpu.memory_space<vmem>>, vector<1x16x16xf32>
    %316 = vector.shape_cast %315 : vector<1x16x16xf32> to vector<16x16xf32>
    %cst_357 = arith.constant dense<0.000000e+00> : vector<64x16xf32>
    %317 = tpu.matmul %289, %316, %cst_357 {dimension_numbers = #tpu.dot_dimension_numbers<[1], [0], [0], [1], [0, 0, 1, 1], [], []>} : vector<64x16xf32>, vector<16x16xf32>, vector<64x16xf32> -> vector<64x16xf32>
    %318 = tpu.concatenate %293, %296, %299, %302, %305, %308, %311, %314, %317 in 0 : vector<64x16xf32>, vector<64x16xf32>, vector<64x16xf32>, vector<64x16xf32>, vector<64x16xf32>, vector<64x16xf32>, vector<64x16xf32>, vector<64x16xf32>, vector<64x16xf32> -> vector<576x16xf32>
    %cst_358 = arith.constant dense<0.000000e+00> : vector<90x16xf32>
    %319 = tpu.matmul %290, %318, %cst_358 {dimension_numbers = #tpu.dot_dimension_numbers<[1], [0], [0], [1], [0, 0, 1, 1], [], []>} : vector<90x576xf32>, vector<576x16xf32>, vector<90x16xf32> -> vector<90x16xf32>
    %c0_359 = arith.constant 0 : index
    %c0_360 = arith.constant 0 : index
    %320 = vector.load %arg21[%c0_359, %c0_360] : memref<90x1xf32, #tpu.memory_space<vmem>>, vector<90x1xf32>
    %321 = vector.broadcast %320 : vector<90x1xf32> to vector<90x16xf32>
    %322 = arith.addf %319, %321 : vector<90x16xf32>
    %323 = vector.extract_strided_slice %322 {offsets = [0, 0], sizes = [45, 16], strides = [1, 1]} : vector<90x16xf32> to vector<45x16xf32>
    %324 = arith.negf %323 : vector<45x16xf32>
    %325 = math.exp %324 : vector<45x16xf32>
    %cst_361 = arith.constant 1.000000e+00 : f32
    %326 = vector.broadcast %cst_361 : f32 to vector<45x16xf32>
    %327 = arith.addf %326, %325 : vector<45x16xf32>
    %328 = arith.divf %326, %327 : vector<45x16xf32>
    %cst_362 = arith.constant 2.000000e+00 : f32
    %329 = vector.broadcast %cst_362 : f32 to vector<45x16xf32>
    %330 = arith.mulf %328, %329 : vector<45x16xf32>
    %cst_363 = arith.constant 1.000000e+00 : f32
    %331 = vector.broadcast %cst_363 : f32 to vector<45x16xf32>
    %332 = arith.subf %330, %331 : vector<45x16xf32>
    %cst_364 = arith.constant 1.000000e+00 : f32
    %333 = vector.broadcast %cst_364 : f32 to vector<45x16xf32>
    %334 = arith.mulf %333, %332 : vector<45x16xf32>
    %335 = math.exp %334 : vector<45x16xf32>
    %336 = arith.mulf %185, %335 : vector<45x16xf32>
    %337 = vector.extract_strided_slice %322 {offsets = [45, 0], sizes = [45, 16], strides = [1, 1]} : vector<90x16xf32> to vector<45x16xf32>
    %338 = arith.addf %336, %337 : vector<45x16xf32>
    %339 = tpu.concatenate %254, %338 in 0 : vector<3x16xf32>, vector<45x16xf32> -> vector<48x16xf32>
    %c0_365 = arith.constant 0 : index
    %c0_366 = arith.constant 0 : index
    %c0_367 = arith.constant 0 : index
    %340 = vector.load %arg22[%c0_365, %c0_366, %c0_367] : memref<1x48x16xf32, #tpu.memory_space<vmem>>, vector<1x48x16xf32>
    %341 = vector.shape_cast %340 : vector<1x48x16xf32> to vector<48x16xf32>
    %342 = vector.shape_cast %339 : vector<48x16xf32> to vector<1x48x16xf32>
    tpu.vector_store %arg22[%c0_365, %c0_366, %c0_367], %342 {strides = array<i32>} : memref<1x48x16xf32, #tpu.memory_space<vmem>>, vector<1x48x16xf32>,
    return
  }
  func.func @transform_0(%arg0: i32) -> (i32, i32, i32) {
    %c0_i32 = arith.constant 0 : i32
    %c0_i32_0 = arith.constant 0 : i32
    %c0_i32_1 = arith.constant 0 : i32
    return %arg0, %c0_i32, %c0_i32_0 : i32, i32, i32
  }
  func.func @transform_1(%arg0: i32) -> (i32, i32, i32) {
    %c0_i32 = arith.constant 0 : i32
    %c0_i32_0 = arith.constant 0 : i32
    %c0_i32_1 = arith.constant 0 : i32
    %c0_i32_2 = arith.constant 0 : i32
    return %c0_i32, %c0_i32_0, %c0_i32_1 : i32, i32, i32
  }
  func.func @transform_2(%arg0: i32) -> (i32, i32, i32) {
    %c0_i32 = arith.constant 0 : i32
    %c0_i32_0 = arith.constant 0 : i32
    %c0_i32_1 = arith.constant 0 : i32
    %c0_i32_2 = arith.constant 0 : i32
    return %c0_i32, %c0_i32_0, %c0_i32_1 : i32, i32, i32
  }
  func.func @transform_3(%arg0: i32) -> (i32, i32, i32) {
    %c0_i32 = arith.constant 0 : i32
    %c0_i32_0 = arith.constant 0 : i32
    %c0_i32_1 = arith.constant 0 : i32
    %c0_i32_2 = arith.constant 0 : i32
    return %c0_i32, %c0_i32_0, %c0_i32_1 : i32, i32, i32
  }
  func.func @transform_4(%arg0: i32) -> (i32, i32, i32) {
    %c0_i32 = arith.constant 0 : i32
    %c0_i32_0 = arith.constant 0 : i32
    %c0_i32_1 = arith.constant 0 : i32
    %c0_i32_2 = arith.constant 0 : i32
    return %c0_i32, %c0_i32_0, %c0_i32_1 : i32, i32, i32
  }
  func.func @transform_5(%arg0: i32) -> (i32, i32) {
    %c0_i32 = arith.constant 0 : i32
    %c0_i32_0 = arith.constant 0 : i32
    %c0_i32_1 = arith.constant 0 : i32
    return %c0_i32, %c0_i32_0 : i32, i32
  }
  func.func @transform_6(%arg0: i32) -> (i32, i32) {
    %c0_i32 = arith.constant 0 : i32
    %c0_i32_0 = arith.constant 0 : i32
    %c0_i32_1 = arith.constant 0 : i32
    return %c0_i32, %c0_i32_0 : i32, i32
  }
  func.func @transform_7(%arg0: i32) -> (i32, i32) {
    %c0_i32 = arith.constant 0 : i32
    %c0_i32_0 = arith.constant 0 : i32
    %c0_i32_1 = arith.constant 0 : i32
    return %c0_i32, %c0_i32_0 : i32, i32
  }
  func.func @transform_8(%arg0: i32) -> (i32, i32) {
    %c0_i32 = arith.constant 0 : i32
    %c0_i32_0 = arith.constant 0 : i32
    %c0_i32_1 = arith.constant 0 : i32
    return %c0_i32, %c0_i32_0 : i32, i32
  }
  func.func @transform_9(%arg0: i32) -> (i32, i32) {
    %c0_i32 = arith.constant 0 : i32
    %c0_i32_0 = arith.constant 0 : i32
    %c0_i32_1 = arith.constant 0 : i32
    return %c0_i32, %c0_i32_0 : i32, i32
  }
  func.func @transform_10(%arg0: i32) -> (i32, i32) {
    %c0_i32 = arith.constant 0 : i32
    %c0_i32_0 = arith.constant 0 : i32
    %c0_i32_1 = arith.constant 0 : i32
    return %c0_i32, %c0_i32_0 : i32, i32
  }
  func.func @transform_11(%arg0: i32) -> (i32, i32) {
    %c0_i32 = arith.constant 0 : i32
    %c0_i32_0 = arith.constant 0 : i32
    %c0_i32_1 = arith.constant 0 : i32
    return %c0_i32, %c0_i32_0 : i32, i32
  }
  func.func @transform_12(%arg0: i32) -> (i32, i32) {
    %c0_i32 = arith.constant 0 : i32
    %c0_i32_0 = arith.constant 0 : i32
    %c0_i32_1 = arith.constant 0 : i32
    return %c0_i32, %c0_i32_0 : i32, i32
  }
  func.func @transform_13(%arg0: i32) -> (i32, i32) {
    %c0_i32 = arith.constant 0 : i32
    %c0_i32_0 = arith.constant 0 : i32
    %c0_i32_1 = arith.constant 0 : i32
    return %c0_i32, %c0_i32_0 : i32, i32
  }
  func.func @transform_14(%arg0: i32) -> (i32, i32) {
    %c0_i32 = arith.constant 0 : i32
    %c0_i32_0 = arith.constant 0 : i32
    %c0_i32_1 = arith.constant 0 : i32
    return %c0_i32, %c0_i32_0 : i32, i32
  }
  func.func @transform_15(%arg0: i32) -> (i32, i32) {
    %c0_i32 = arith.constant 0 : i32
    %c0_i32_0 = arith.constant 0 : i32
    %c0_i32_1 = arith.constant 0 : i32
    return %c0_i32, %c0_i32_0 : i32, i32
  }
  func.func @transform_16(%arg0: i32) -> (i32, i32) {
    %c0_i32 = arith.constant 0 : i32
    %c0_i32_0 = arith.constant 0 : i32
    %c0_i32_1 = arith.constant 0 : i32
    return %c0_i32, %c0_i32_0 : i32, i32
  }
  func.func @transform_17(%arg0: i32) -> (i32, i32) {
    %c0_i32 = arith.constant 0 : i32
    %c0_i32_0 = arith.constant 0 : i32
    %c0_i32_1 = arith.constant 0 : i32
    return %c0_i32, %c0_i32_0 : i32, i32
  }
  func.func @transform_18(%arg0: i32) -> (i32, i32) {
    %c0_i32 = arith.constant 0 : i32
    %c0_i32_0 = arith.constant 0 : i32
    %c0_i32_1 = arith.constant 0 : i32
    return %c0_i32, %c0_i32_0 : i32, i32
  }
  func.func @transform_19(%arg0: i32) -> (i32, i32) {
    %c0_i32 = arith.constant 0 : i32
    %c0_i32_0 = arith.constant 0 : i32
    %c0_i32_1 = arith.constant 0 : i32
    return %c0_i32, %c0_i32_0 : i32, i32
  }
  func.func @transform_20(%arg0: i32) -> (i32, i32) {
    %c0_i32 = arith.constant 0 : i32
    %c0_i32_0 = arith.constant 0 : i32
    %c0_i32_1 = arith.constant 0 : i32
    return %c0_i32, %c0_i32_0 : i32, i32
  }
  func.func @transform_21(%arg0: i32) -> (i32, i32, i32) {
    %c0_i32 = arith.constant 0 : i32
    %c0_i32_0 = arith.constant 0 : i32
    %c0_i32_1 = arith.constant 0 : i32
    return %arg0, %c0_i32, %c0_i32_0 : i32, i32, i32
  }
}

</mosaic_0001>

<bundles_post_ra>
// kernel: _lambda_.1
= control target key start
LH: loop header
LB: loop body
LE: loop exit
PB: predicated region body
PF: predicated region fallthrough
CT: control target
= control target key end

     0   :  { %s9458_s0 = inlined_call_operand.vmem [shape: f32[2,3,256], index: 0, kind: input, shape index: {}]   ;;  %s9459_s1 = inlined_call_operand.vmem [shape: f32[4,256,64], index: 1, kind: input, shape index: {}]   ;;  %s9460_s2 = inlined_call_operand.vmem [shape: f32[4,64,16], index: 2, kind: input, shape index: {}]   ;;  %s9461_s3 = inlined_call_operand.vmem [shape: f32[9,64,64], index: 3, kind: input, shape index: {}]   ;;  %s9462_s4 = inlined_call_operand.vmem [shape: f32[9,16,16], index: 4, kind: input, shape index: {}]   ;;  %s9463_s5 = inlined_call_operand.vmem [shape: f32[32,81], index: 5, kind: input, shape index: {}]   ;;  %s9464_s6 = inlined_call_operand.vmem [shape: f32[32,1], index: 6, kind: input, shape index: {}]   ;;  %s9465_s7 = inlined_call_operand.vmem [shape: f32[3,288], index: 7, kind: input, shape index: {}]   ;;  %s9466_s8 = inlined_call_operand.vmem [shape: f32[3,1], index: 8, kind: input, shape index: {}]   ;;  %s9467_s9 = inlined_call_operand.vmem [shape: f32[64,27], index: 9, kind: input, shape index: {}]   ;;  %s9468_s10 = inlined_call_operand.vmem [shape: f32[64,1], index: 10, kind: input, shape index: {}]   ;;  %s9469_s11 = inlined_call_operand.vmem [shape: f32[18,576], index: 11, kind: input, shape index: {}]   ;;  %s9470_s12 = inlined_call_operand.vmem [shape: f32[18,1], index: 12, kind: input, shape index: {}]   ;;  %s9471_s13 = inlined_call_operand.vmem [shape: f32[32,405], index: 13, kind: input, shape index: {}]   ;;  %s9472_s14 = inlined_call_operand.vmem [shape: f32[32,1], index: 14, kind: input, shape index: {}]   ;;  %s9473_s15 = inlined_call_operand.vmem [shape: f32[3,288], index: 15, kind: input, shape index: {}]   ;;  %s9474_s16 = inlined_call_operand.vmem [shape: f32[3,1], index: 16, kind: input, shape index: {}]   ;;  %s9475_s17 = inlined_call_operand.vmem [shape: f32[64,27], index: 17, kind: input, shape index: {}]   ;;  %s9476_s18 = inlined_call_operand.vmem [shape: f32[64,1], index: 18, kind: input, shape index: {}]   ;;  %s9477_s19 = inlined_call_operand.vmem [shape: f32[90,576], index: 19, kind: input, shape index: {}]   ;;  %s9478_s20 = inlined_call_operand.vmem [shape: f32[90,1], index: 20, kind: input, shape index: {}]   ;;  %s9479_s21 = inlined_call_operand.vmem [shape: f32[2,48,16], index: 21, kind: output, shape index: {}]  }
   0x1   :  { %9525 = sst [smem:[#allocation27_spill]] %s9458_s0 }
   0x2   :  { %9526 = sst [smem:[#allocation28_spill]] %s9459_s1 }
   0x3   :  { %9527 = sst [smem:[#allocation29_spill]] %s9460_s2  ;;  %s6262_s2 = smov 0  }
   0x4   :  { %9528 = sst [smem:[#allocation30_spill]] %s9461_s3 }
   0x5   :  { %9529 = sst [smem:[#allocation31_spill]] %s9462_s4 }
   0x6   :  { %9530 = sst [smem:[#allocation32_spill]] %s9463_s5 }
   0x7 LB: > { %9531 = sst [smem:[#allocation2_spill]] %s6149_s2  ;;  %s5398_s25 = sadd.s32 4294967295, %s6149_s2   ;;  %s6149_s2 = sphi %s6262_s2, %s31_s2  }
   0x8   : > { %p5402_p0 = scmp.ge.s32.totalorder %s6149_s2, 1  ;;  %p587_p1 = scmp.lt.s32.totalorder %s6149_s2, 3 }
   0xa   : > { %p588_p2 = pnand %p5402_p0, %p587_p1 }
   0xc   : > { %591 = sbr.rel (%p588_p2) target bundleno = 3492 (0xda4), region = 104 }
  0x11   : > { %s9532_s3 = sld [smem:[#allocation28_spill]]  ;;  %p6422_p3 = scmp.lt.s32.totalorder %s5398_s25, 1  ;;  %vm979_vm0 = vcmask 1042432   ;;  %vm981_vm1 = vcmask 1045504   ;;  %vm983_vm2 = vcmask 1040384   ;;  %vm999_vm3 = vcmask 1044480  }
  0x12   : > { %s9534_s30 = sld [smem:[#allocation27_spill]]  ;;  %vm1003_vm4 = vcmask 523264   ;;  %vm1333_vm5 = vcmask 1046528   ;;  %vm1311_vm6 = vcmask 1043456   ;;  %vm1296_vm7 = vcmask 1041408  }
  0x13   : > { %s9593_s25 = smov (!%p6422_p3, %s5398_s25), 1  ;;  %s9535_s5 = sld [smem:[#allocation30_spill]]  ;;  %vm1370_vm8 = vcmask 662528   ;;  %vm1710_vm9 = vcmask 261120   ;;  %vm2041_vm10 = vcmask 220160  }
  0x14   : > { %s5983_s28 = sshll.u32 %s9593_s25, 3  ;;  %s9587_s22 = sld [smem:[#allocation31_spill]] }
  0x17   : > { %v673_v0 = vld [vmem:[%s9532_s3 + $0x78] sm:$0xff]  ;;  %v672_v4 = vld [vmem:[%s9532_s3 + $0x70] sm:$0xff]  ;;  %v671_v8 = vld [vmem:[%s9532_s3 + $0x68] sm:$0xff] }
  0x18   : > { %v689_v1 = vld [vmem:[%s9532_s3 + $0xf8] sm:$0xff]  ;;  %696 = vmatpush.msra.mxu0 %v673_v0  ;;  %v688_v5 = vld [vmem:[%s9532_s3 + $0xf0] sm:$0xff]  ;;  %v687_v9 = vld [vmem:[%s9532_s3 + $0xe8] sm:$0xff]  ;;  %s651_s2 = scalar_lea.vmem %s9534_s30, %s5983_s28  ;;  %s9562_s28 = sld [smem:[#allocation32_spill]] }
  0x19   : > { %v5421_v2 = vld [vmem:[%s9532_s3 + $0x178] sm:$0xff]  ;;  %716 = vmatpush.msra.mxu1 %v689_v1  ;;  %v5420_v6 = vld [vmem:[%s9532_s3 + $0x170] sm:$0xff]  ;;  %v5419_v10 = vld [vmem:[%s9532_s3 + $0x168] sm:$0xff] }
  0x1a   : > { %v5437_v3 = vld [vmem:[%s9532_s3 + $0x1f8] sm:$0xff]  ;;  %774 = vmatpush.msra.mxu2 %v5421_v2  ;;  %v5436_v7 = vld [vmem:[%s9532_s3 + $0x1f0] sm:$0xff]  ;;  %697 = vmatpush.msra.mxu0 %v672_v4  ;;  %v5435_v11 = vld [vmem:[%s9532_s3 + $0x1e8] sm:$0xff] }
  0x1b   : > { %794 = vmatpush.msra.mxu3 %v5437_v3  ;;  %717 = vmatpush.msra.mxu1 %v688_v5  ;;  %v670_v12 = vld [vmem:[%s9532_s3 + $0x60] sm:$0xff]  ;;  %v669_v16 = vld [vmem:[%s9532_s3 + $0x58] sm:$0xff]  ;;  %v668_v20 = vld [vmem:[%s9532_s3 + $0x50] sm:$0xff] }
  0x1c   : > { %775 = vmatpush.msra.mxu2 %v5420_v6  ;;  %v686_v13 = vld [vmem:[%s9532_s3 + $0xe0] sm:$0xff]  ;;  %698 = vmatpush.msra.mxu0 %v671_v8  ;;  %v685_v17 = vld [vmem:[%s9532_s3 + $0xd8] sm:$0xff]  ;;  %v684_v21 = vld [vmem:[%s9532_s3 + $0xd0] sm:$0xff] }
  0x1d   : > { %795 = vmatpush.msra.mxu3 %v5436_v7  ;;  %718 = vmatpush.msra.mxu1 %v687_v9  ;;  %v5418_v14 = vld [vmem:[%s9532_s3 + $0x160] sm:$0xff]  ;;  %v5417_v18 = vld [vmem:[%s9532_s3 + $0x158] sm:$0xff]  ;;  %v5416_v22 = vld [vmem:[%s9532_s3 + $0x150] sm:$0xff] }
  0x1e   : > { %v5434_v15 = vld [vmem:[%s9532_s3 + $0x1e0] sm:$0xff]  ;;  %776 = vmatpush.msra.mxu2 %v5419_v10  ;;  %699 = vmatpush.msra.mxu0 %v670_v12  ;;  %v5433_v19 = vld [vmem:[%s9532_s3 + $0x1d8] sm:$0xff]  ;;  %v5432_v23 = vld [vmem:[%s9532_s3 + $0x1d0] sm:$0xff] }
  0x1f   : > { %796 = vmatpush.msra.mxu3 %v5435_v11  ;;  %719 = vmatpush.msra.mxu1 %v686_v13  ;;  %v667_v24 = vld [vmem:[%s9532_s3 + $0x48] sm:$0xff]  ;;  %v666_v28 = vld [vmem:[%s9532_s3 + $0x40] sm:$0xff]  ;;  %v665_v32 = vld [vmem:[%s9532_s3 + $0x38] sm:$0xff] }
  0x20   : > { %777 = vmatpush.msra.mxu2 %v5418_v14  ;;  %700 = vmatpush.msra.mxu0 %v669_v16  ;;  %v683_v25 = vld [vmem:[%s9532_s3 + $0xc8] sm:$0xff]  ;;  %v682_v29 = vld [vmem:[%s9532_s3 + $0xc0] sm:$0xff]  ;;  %v681_v33 = vld [vmem:[%s9532_s3 + $0xb8] sm:$0xff] }
  0x21   : > { %797 = vmatpush.msra.mxu3 %v5434_v15  ;;  %720 = vmatpush.msra.mxu1 %v685_v17  ;;  %v5415_v26 = vld [vmem:[%s9532_s3 + $0x148] sm:$0xff]  ;;  %v5414_v30 = vld [vmem:[%s9532_s3 + $0x140] sm:$0xff]  ;;  %v5413_v34 = vld [vmem:[%s9532_s3 + $0x138] sm:$0xff] }
  0x22   : > { %778 = vmatpush.msra.mxu2 %v5417_v18  ;;  %701 = vmatpush.msra.mxu0 %v668_v20  ;;  %v5431_v27 = vld [vmem:[%s9532_s3 + $0x1c8] sm:$0xff]  ;;  %v5430_v31 = vld [vmem:[%s9532_s3 + $0x1c0] sm:$0xff]  ;;  %v5429_v35 = vld [vmem:[%s9532_s3 + $0x1b8] sm:$0xff] }
  0x23   : > { %798 = vmatpush.msra.mxu3 %v5433_v19  ;;  %721 = vmatpush.msra.mxu1 %v684_v21  ;;  %v664_v36 = vld [vmem:[%s9532_s3 + $0x30] sm:$0xff]  ;;  %v663_v40 = vld [vmem:[%s9532_s3 + $0x28] sm:$0xff]  ;;  %v662_v44 = vld [vmem:[%s9532_s3 + $0x20] sm:$0xff] }
  0x24   : > { %779 = vmatpush.msra.mxu2 %v5416_v22  ;;  %702 = vmatpush.msra.mxu0 %v667_v24  ;;  %v680_v37 = vld [vmem:[%s9532_s3 + $0xb0] sm:$0xff]  ;;  %v679_v41 = vld [vmem:[%s9532_s3 + $0xa8] sm:$0xff]  ;;  %v678_v45 = vld [vmem:[%s9532_s3 + $0xa0] sm:$0xff] }
  0x25   : > { %799 = vmatpush.msra.mxu3 %v5432_v23  ;;  %722 = vmatpush.msra.mxu1 %v683_v25  ;;  %v5412_v38 = vld [vmem:[%s9532_s3 + $0x130] sm:$0xff]  ;;  %v5411_v42 = vld [vmem:[%s9532_s3 + $0x128] sm:$0xff]  ;;  %v5410_v46 = vld [vmem:[%s9532_s3 + $0x120] sm:$0xff] }
  0x26   : > { %780 = vmatpush.msra.mxu2 %v5415_v26  ;;  %703 = vmatpush.msra.mxu0 %v666_v28  ;;  %v5428_v39 = vld [vmem:[%s9532_s3 + $0x1b0] sm:$0xff]  ;;  %v5427_v43 = vld [vmem:[%s9532_s3 + $0x1a8] sm:$0xff]  ;;  %v5426_v47 = vld [vmem:[%s9532_s3 + $0x1a0] sm:$0xff] }
  0x27   : > { %800 = vmatpush.msra.mxu3 %v5431_v27  ;;  %723 = vmatpush.msra.mxu1 %v682_v29  ;;  %v661_v48 = vld [vmem:[%s9532_s3 + $0x18] sm:$0xff]  ;;  %v660_v52 = vld [vmem:[%s9532_s3 + $0x10] sm:$0xff]  ;;  %v659_v56 = vld [vmem:[%s9532_s3 + $0x8] sm:$0xff] }
  0x28   : > { %781 = vmatpush.msra.mxu2 %v5414_v30  ;;  %704 = vmatpush.msra.mxu0 %v665_v32  ;;  %v677_v49 = vld [vmem:[%s9532_s3 + $0x98] sm:$0xff]  ;;  %v676_v53 = vld [vmem:[%s9532_s3 + $0x90] sm:$0xff]  ;;  %v675_v57 = vld [vmem:[%s9532_s3 + $0x88] sm:$0xff] }
  0x29   : > { %801 = vmatpush.msra.mxu3 %v5430_v31  ;;  %724 = vmatpush.msra.mxu1 %v681_v33  ;;  %v5409_v50 = vld [vmem:[%s9532_s3 + $0x118] sm:$0xff]  ;;  %v5408_v54 = vld [vmem:[%s9532_s3 + $0x110] sm:$0xff]  ;;  %v5407_v58 = vld [vmem:[%s9532_s3 + $0x108] sm:$0xff] }
  0x2a   : > { %782 = vmatpush.msra.mxu2 %v5413_v34  ;;  %705 = vmatpush.msra.mxu0 %v664_v36  ;;  %v5425_v51 = vld [vmem:[%s9532_s3 + $0x198] sm:$0xff]  ;;  %v5424_v55 = vld [vmem:[%s9532_s3 + $0x190] sm:$0xff]  ;;  %v5423_v59 = vld [vmem:[%s9532_s3 + $0x188] sm:$0xff] }
  0x2b   : > { %802 = vmatpush.msra.mxu3 %v5429_v35  ;;  %725 = vmatpush.msra.mxu1 %v680_v37  ;;  %v658_v60 = vld [vmem:[%s9532_s3] sm:$0xff]  ;;  %v5453_v0 = vld [vmem:[%s9532_s3 + $0x278] sm:$0xff]  ;;  %v5452_v4 = vld [vmem:[%s9532_s3 + $0x270] sm:$0xff] }
  0x2c   : > { %783 = vmatpush.msra.mxu2 %v5412_v38  ;;  %706 = vmatpush.msra.mxu0 %v663_v40  ;;  %v674_v61 = vld [vmem:[%s9532_s3 + $0x80] sm:$0xff]  ;;  %v5469_v1 = vld [vmem:[%s9532_s3 + $0x2f8] sm:$0xff]  ;;  %v5468_v5 = vld [vmem:[%s9532_s3 + $0x2f0] sm:$0xff] }
  0x2d   : > { %803 = vmatpush.msra.mxu3 %v5428_v39  ;;  %726 = vmatpush.msra.mxu1 %v679_v41  ;;  %v5406_v62 = vld [vmem:[%s9532_s3 + $0x100] sm:$0xff]  ;;  %v5485_v2 = vld [vmem:[%s9532_s3 + $0x378] sm:$0xff]  ;;  %v5484_v6 = vld [vmem:[%s9532_s3 + $0x370] sm:$0xff] }
  0x2e   : > { %784 = vmatpush.msra.mxu2 %v5411_v42  ;;  %707 = vmatpush.msra.mxu0 %v662_v44  ;;  %v5422_v63 = vld [vmem:[%s9532_s3 + $0x180] sm:$0xff]  ;;  %v5501_v3 = vld [vmem:[%s9532_s3 + $0x3f8] sm:$0xff]  ;;  %v5500_v7 = vld [vmem:[%s9532_s3 + $0x3f0] sm:$0xff] }
  0x2f   : > { %804 = vmatpush.msra.mxu3 %v5427_v43  ;;  %727 = vmatpush.msra.mxu1 %v678_v45  ;;  %v5451_v8 = vld [vmem:[%s9532_s3 + $0x268] sm:$0xff]  ;;  %v5450_v12 = vld [vmem:[%s9532_s3 + $0x260] sm:$0xff]  ;;  %v5449_v17 = vld [vmem:[%s9532_s3 + $0x258] sm:$0xff] }
  0x30   : > { %785 = vmatpush.msra.mxu2 %v5410_v46  ;;  %708 = vmatpush.msra.mxu0 %v661_v48  ;;  %v5467_v9 = vld [vmem:[%s9532_s3 + $0x2e8] sm:$0xff]  ;;  %v5466_v13 = vld [vmem:[%s9532_s3 + $0x2e0] sm:$0xff]  ;;  %v5465_v18 = vld [vmem:[%s9532_s3 + $0x2d8] sm:$0xff] }
  0x31   : > { %805 = vmatpush.msra.mxu3 %v5426_v47  ;;  %728 = vmatpush.msra.mxu1 %v677_v49  ;;  %v5483_v10 = vld [vmem:[%s9532_s3 + $0x368] sm:$0xff]  ;;  %v6520_v14 = vld [vmem:[%s651_s2] sm:$0x77]  ;;  %v5481_v19 = vld [vmem:[%s9532_s3 + $0x358] sm:$0xff]  ;;  %s9584_s2 = sld [smem:[#allocation29_spill]] }
  0x32   : > { %786 = vmatpush.msra.mxu2 %v5409_v50  ;;  %709 = vmatpush.msra.mxu0 %v660_v52  ;;  %v5499_v11 = vld [vmem:[%s9532_s3 + $0x3e8] sm:$0xff]  ;;  %v5482_v15 = vld [vmem:[%s9532_s3 + $0x360] sm:$0xff]  ;;  %691 = vst [vmem:[#allocation1] ss:$2 sm:$0xff] %v6520_v14  ;;  %v5497_v20 = vld [vmem:[%s9532_s3 + $0x3d8] sm:$0xff] }
  0x33   : > { %806 = vmatpush.msra.mxu3 %v5425_v51  ;;  %729 = vmatpush.msra.mxu1 %v676_v53  ;;  %v5498_v16 = vld [vmem:[%s9532_s3 + $0x3e0] sm:$0xff]  ;;  %v5448_v21 = vld [vmem:[%s9532_s3 + $0x250] sm:$0xff]  ;;  %v5447_v25 = vld [vmem:[%s9532_s3 + $0x248] sm:$0xff] }
  0x34   : > { %787 = vmatpush.msra.mxu2 %v5408_v54  ;;  %710 = vmatpush.msra.mxu0 %v659_v56  ;;  %v5464_v22 = vld [vmem:[%s9532_s3 + $0x2d0] sm:$0xff]  ;;  %v5463_v26 = vld [vmem:[%s9532_s3 + $0x2c8] sm:$0xff]  ;;  %v5446_v29 = vld [vmem:[%s9532_s3 + $0x240] sm:$0xff] }
  0x35   : > { %807 = vmatpush.msra.mxu3 %v5424_v55  ;;  %730 = vmatpush.msra.mxu1 %v675_v57  ;;  %v5480_v23 = vld [vmem:[%s9532_s3 + $0x350] sm:$0xff]  ;;  %v5479_v27 = vld [vmem:[%s9532_s3 + $0x348] sm:$0xff]  ;;  %v5462_v30 = vld [vmem:[%s9532_s3 + $0x2c0] sm:$0xff] }
  0x36   : > { %788 = vmatpush.msra.mxu2 %v5407_v58  ;;  %711 = vmatpush.msra.mxu0 %v658_v60  ;;  %v5496_v24 = vld [vmem:[%s9532_s3 + $0x3d0] sm:$0xff]  ;;  %v5495_v28 = vld [vmem:[%s9532_s3 + $0x3c8] sm:$0xff]  ;;  %v5478_v33 = vld [vmem:[%s9532_s3 + $0x340] sm:$0xff] }
  0x37   : > { %808 = vmatpush.msra.mxu3 %v5423_v59  ;;  %731 = vmatpush.msra.mxu1 %v674_v61  ;;  %v5494_v34 = vld [vmem:[%s9532_s3 + $0x3c0] sm:$0xff]  ;;  %v5445_v35 = vld [vmem:[%s9532_s3 + $0x238] sm:$0xff]  ;;  %v5444_v39 = vld [vmem:[%s9532_s3 + $0x230] sm:$0xff]  ;;  %s9585_s27 = smov %s9584_s2 }
  0x38   : > { %789 = vmatpush.msra.mxu2 %v5406_v62  ;;  %852 = vmatpush.msrb.mxu0 %v5453_v0  ;;  %v5461_v36 = vld [vmem:[%s9532_s3 + $0x2b8] sm:$0xff]  ;;  %v5460_v40 = vld [vmem:[%s9532_s3 + $0x2b0] sm:$0xff]  ;;  %v5443_v43 = vld [vmem:[%s9532_s3 + $0x228] sm:$0xff] }
  0x39   : > { %809 = vmatpush.msra.mxu3 %v5422_v63  ;;  %872 = vmatpush.msrb.mxu1 %v5469_v1  ;;  %v692_v31 = vld.sshfl [vmem:[#allocation1] sm:$0xff pattern:$0x75316420]  ;;  %v693_v32 = vld.sshfl [vmem:[#allocation1 + $0x8] sm:$0xff pattern:$0x75316420] }
  0x3a   : > { %930 = vmatpush.msrb.mxu2 %v5485_v2  ;;  %853 = vmatpush.msrb.mxu0 %v5452_v4  ;;  %769 = vst [vmem:[#allocation1] ss:$2 sm:$0xff] %v6520_v14  ;;  %v5477_v37 = vld [vmem:[%s9532_s3 + $0x338] sm:$0xff]  ;;  %v5476_v41 = vld [vmem:[%s9532_s3 + $0x330] sm:$0xff]  ;;  %v5459_v44 = vld [vmem:[%s9532_s3 + $0x2a8] sm:$0xff] }
  0x3b   : > { %950 = vmatpush.msrb.mxu3 %v5501_v3  ;;  %873 = vmatpush.msrb.mxu1 %v5468_v5  ;;  %v5493_v38 = vld [vmem:[%s9532_s3 + $0x3b8] sm:$0xff]  ;;  %v5492_v42 = vld [vmem:[%s9532_s3 + $0x3b0] sm:$0xff]  ;;  %v5475_v45 = vld [vmem:[%s9532_s3 + $0x328] sm:$0xff] }
  0x3c   : > { %931 = vmatpush.msrb.mxu2 %v5484_v6  ;;  %854 = vmatpush.msrb.mxu0 %v5451_v8  ;;  %v5491_v46 = vld [vmem:[%s9532_s3 + $0x3a8] sm:$0xff]  ;;  %v5442_v49 = vld [vmem:[%s9532_s3 + $0x220] sm:$0xff]  ;;  %v5441_v53 = vld [vmem:[%s9532_s3 + $0x218] sm:$0xff] }
  0x3d   : > { %951 = vmatpush.msrb.mxu3 %v5500_v7  ;;  %874 = vmatpush.msrb.mxu1 %v5467_v9  ;;  %v5458_v50 = vld [vmem:[%s9532_s3 + $0x2a0] sm:$0xff]  ;;  %v5457_v54 = vld [vmem:[%s9532_s3 + $0x298] sm:$0xff]  ;;  %v5440_v57 = vld [vmem:[%s9532_s3 + $0x210] sm:$0xff] }
  0x3e   : > { %932 = vmatpush.msrb.mxu2 %v5483_v10  ;;  %855 = vmatpush.msrb.mxu0 %v5450_v12  ;;  %v5474_v51 = vld [vmem:[%s9532_s3 + $0x320] sm:$0xff]  ;;  %v5473_v55 = vld [vmem:[%s9532_s3 + $0x318] sm:$0xff]  ;;  %v5456_v58 = vld [vmem:[%s9532_s3 + $0x290] sm:$0xff] }
  0x3f   : > { %952 = vmatpush.msrb.mxu3 %v5499_v11  ;;  %875 = vmatpush.msrb.mxu1 %v5466_v13  ;;  %v5490_v52 = vld [vmem:[%s9532_s3 + $0x3a0] sm:$0xff]  ;;  %v5489_v56 = vld [vmem:[%s9532_s3 + $0x398] sm:$0xff]  ;;  %v5472_v59 = vld [vmem:[%s9532_s3 + $0x310] sm:$0xff] }
  0x40   : > { %933 = vmatpush.msrb.mxu2 %v5482_v15  ;;  %856 = vmatpush.msrb.mxu0 %v5449_v17  ;;  %v5488_v60 = vld [vmem:[%s9532_s3 + $0x390] sm:$0xff]  ;;  %v5439_v61 = vld [vmem:[%s9532_s3 + $0x208] sm:$0xff]  ;;  %v5438_v3 = vld [vmem:[%s9532_s3 + $0x200] sm:$0xff] }
  0x41   : > { %953 = vmatpush.msrb.mxu3 %v5498_v16  ;;  %876 = vmatpush.msrb.mxu1 %v5465_v18  ;;  %v770_v47 = vld.sshfl [vmem:[#allocation1] sm:$0xff pattern:$0x75316420]  ;;  %v771_v48 = vld.sshfl [vmem:[#allocation1 + $0x8] sm:$0xff pattern:$0x75316420] }
  0x42   : > { %934 = vmatpush.msrb.mxu2 %v5481_v19  ;;  %857 = vmatpush.msrb.mxu0 %v5448_v21  ;;  %847 = vst [vmem:[#allocation1] ss:$2 sm:$0xff] %v6520_v14  ;;  %v5455_v62 = vld [vmem:[%s9532_s3 + $0x288] sm:$0xff]  ;;  %v5454_v4 = vld [vmem:[%s9532_s3 + $0x280] sm:$0xff]  ;;  %v6682_v10 = vld [vmem:[%s9535_s5 + $0x38] sm:$0xff] }
  0x43   : > { %954 = vmatpush.msrb.mxu3 %v5497_v20  ;;  %877 = vmatpush.msrb.mxu1 %v5464_v22  ;;  %v5471_v1 = vld [vmem:[%s9532_s3 + $0x308] sm:$0xff]  ;;  %v5470_v5 = vld [vmem:[%s9532_s3 + $0x300] sm:$0xff]  ;;  %v6687_v11 = vld [vmem:[%s9535_s5 + $0x78] sm:$0xff] }
  0x44   : > { %935 = vmatpush.msrb.mxu2 %v5480_v23  ;;  %858 = vmatpush.msrb.mxu0 %v5447_v25  ;;  %v5487_v2 = vld [vmem:[%s9532_s3 + $0x388] sm:$0xff]  ;;  %v5486_v6 = vld [vmem:[%s9532_s3 + $0x380] sm:$0xff]  ;;  %v6692_v12 = vld [vmem:[%s9535_s5 + $0xb8] sm:$0xff]  ;;  %s5994_s3 = smul.u32 48, %s9593_s25 }
  0x45   : > { %955 = vmatpush.msrb.mxu3 %v5496_v24  ;;  %878 = vmatpush.msrb.mxu1 %v5463_v26  ;;  %v1419_v7 = vld [vmem:[%s9465_s7] sm:$0x77]  ;;  %v6699_v13 = vld [vmem:[%s9535_s5 + $0xf8] sm:$0xff]  ;;  %v6711_v15 = vld [vmem:[%s9535_s5 + $0x70] sm:$0xff] }
  0x46   : > { %936 = vmatpush.msrb.mxu2 %v5479_v27  ;;  %859 = vmatpush.msrb.mxu0 %v5446_v29  ;;  %v6716_v16 = vld [vmem:[%s9535_s5 + $0xb0] sm:$0xff]  ;;  %v6730_v18 = vld [vmem:[%s9535_s5 + $0x28] sm:$0xff]  ;;  %v6754_v22 = vld [vmem:[%s9535_s5 + $0x20] sm:$0xff]  ;;  %s9413_s26 = scalar_lea.vmem %s9479_s21, %s5994_s3 }
  0x47   : > { %956 = vmatpush.msrb.mxu3 %v5495_v28  ;;  %879 = vmatpush.msrb.mxu1 %v5462_v30  ;;  %v6723_v17 = vld [vmem:[%s9535_s5 + $0xf0] sm:$0xff]  ;;  %v6735_v19 = vld [vmem:[%s9535_s5 + $0x68] sm:$0xff]  ;;  %v6759_v23 = vld [vmem:[%s9535_s5 + $0x60] sm:$0xff] }
  0x48   : > { %937 = vmatpush.msrb.mxu2 %v5478_v33  ;;  %860 = vmatpush.msrb.mxu0 %v5445_v35  ;;  %v6740_v20 = vld [vmem:[%s9535_s5 + $0xa8] sm:$0xff]  ;;  %v6764_v24 = vld [vmem:[%s9535_s5 + $0xa0] sm:$0xff]  ;;  %v6778_v26 = vld [vmem:[%s9535_s5 + $0x18] sm:$0xff] }
  0x49   : > { %957 = vmatpush.msrb.mxu3 %v5494_v34  ;;  %880 = vmatpush.msrb.mxu1 %v5461_v36  ;;  %v848_v63 = vld.sshfl [vmem:[#allocation1] sm:$0xff pattern:$0x75316420]  ;;  %v849_v0 = vld.sshfl [vmem:[#allocation1 + $0x8] sm:$0xff pattern:$0x75316420] }
  0x4a   : > { %938 = vmatpush.msrb.mxu2 %v5477_v37  ;;  %861 = vmatpush.msrb.mxu0 %v5444_v39  ;;  %925 = vst [vmem:[#allocation1] ss:$2 sm:$0xff] %v6520_v14  ;;  %v6706_v14 = vld [vmem:[%s9535_s5 + $0x30] sm:$0xff]  ;;  %v6747_v21 = vld [vmem:[%s9535_s5 + $0xe8] sm:$0xff]  ;;  %v6771_v25 = vld [vmem:[%s9535_s5 + $0xe0] sm:$0xff] }
  0x4b   : > { %958 = vmatpush.msrb.mxu3 %v5493_v38  ;;  %881 = vmatpush.msrb.mxu1 %v5460_v40  ;;  %v6783_v27 = vld [vmem:[%s9535_s5 + $0x58] sm:$0xff]  ;;  %v6802_v30 = vld [vmem:[%s9535_s5 + $0x10] sm:$0xff]  ;;  %v6826_v34 = vld [vmem:[%s9535_s5 + $0x8] sm:$0xff] }
  0x4c   : > { %939 = vmatpush.msrb.mxu2 %v5476_v41  ;;  %862 = vmatpush.msrb.mxu0 %v5443_v43  ;;  %v6788_v28 = vld [vmem:[%s9535_s5 + $0x98] sm:$0xff]  ;;  %v6819_v33 = vld [vmem:[%s9535_s5 + $0xd0] sm:$0xff]  ;;  %v6831_v35 = vld [vmem:[%s9535_s5 + $0x48] sm:$0xff] }
  0x4d   : > { %959 = vmatpush.msrb.mxu3 %v5492_v42  ;;  %882 = vmatpush.msrb.mxu1 %v5459_v44  ;;  %v6795_v29 = vld [vmem:[%s9535_s5 + $0xd8] sm:$0xff]  ;;  %v6836_v36 = vld [vmem:[%s9535_s5 + $0x88] sm:$0xff]  ;;  %v6848_v38 = vld [vmem:[%s9535_s5] sm:$0xff] }
  0x4e   : > { %940 = vmatpush.msrb.mxu2 %v5475_v45  ;;  %810 = vmatmul.f32.vlgmr.msra.gmra.mxu3 %v771_v48  ;;  %v6843_v37 = vld [vmem:[%s9535_s5 + $0xc8] sm:$0xff]  ;;  %v6853_v39 = vld [vmem:[%s9535_s5 + $0x40] sm:$0xff]  ;;  %v6874_v42 = vld [vmem:[%s9535_s5 + $0x138] sm:$0xff] }
  0x4f   : > { %960 = vmatpush.msrb.mxu3 %v5491_v46  ;;  %790 = vmatmul.f32.vlgmr.msra.gmra.mxu2 %v770_v47  ;;  %v6860_v40 = vld [vmem:[%s9535_s5 + $0x80] sm:$0xff]  ;;  %v6879_v43 = vld [vmem:[%s9535_s5 + $0x178] sm:$0xff]  ;;  %v6896_v46 = vld [vmem:[%s9535_s5 + $0x130] sm:$0xff] }
  0x50   : > { %863 = vmatpush.msrb.mxu0 %v5442_v49  ;;  %883 = vmatpush.msrb.mxu1 %v5458_v50  ;;  %v6865_v41 = vld [vmem:[%s9535_s5 + $0xc0] sm:$0xff]  ;;  %9536 = vst [vmem:[#allocation3_spill] sm:$0xff] %v6879_v43  ;;  %v6884_v44 = vld [vmem:[%s9535_s5 + $0x1b8] sm:$0xff]  ;;  %v6901_v47 = vld [vmem:[%s9535_s5 + $0x170] sm:$0xff] }
  0x51   : > { %941 = vmatpush.msrb.mxu2 %v5474_v51  ;;  %961 = vmatpush.msrb.mxu3 %v5490_v52  ;;  %v926_v8 = vld.sshfl [vmem:[#allocation1] sm:$0xff pattern:$0x75316420]  ;;  %v927_v9 = vld.sshfl [vmem:[#allocation1 + $0x8] sm:$0xff pattern:$0x75316420] }
  0x52   : > { %712 = vmatmul.f32.vlgmr.msra.gmra.mxu0 %v692_v31  ;;  %732 = vmatmul.f32.vlgmr.msra.gmra.mxu1 %v693_v32  ;;  %1702 = vst [vmem:[#allocation1] ss:$2 sm:$0xff] %v1419_v7  ;;  %v6807_v31 = vld [vmem:[%s9535_s5 + $0x50] sm:$0xff]  ;;  %v6891_v45 = vld [vmem:[%s9535_s5 + $0x1f8] sm:$0xff]  ;;  %v6918_v50 = vld [vmem:[%s9535_s5 + $0x128] sm:$0xff] }
  0x53   : > { %864 = vmatpush.msrb.mxu0 %v5441_v53  ;;  %884 = vmatpush.msrb.mxu1 %v5457_v54  ;;  %v6812_v32 = vld [vmem:[%s9535_s5 + $0x90] sm:$0xff]  ;;  %9537 = vst [vmem:[#allocation4_spill] sm:$0xff] %v6891_v45  ;;  %v6925_v51 = vld [vmem:[%s9535_s5 + $0x168] sm:$0xff]  ;;  %v6942_v54 = vld [vmem:[%s9535_s5 + $0x120] sm:$0xff] }
  0x54   : > { %942 = vmatpush.msrb.mxu2 %v5473_v55  ;;  %962 = vmatpush.msrb.mxu3 %v5489_v56  ;;  %9538 = vst [vmem:[#allocation5_spill] sm:$0xff] %v6901_v47  ;;  %v6908_v48 = vld [vmem:[%s9535_s5 + $0x1b0] sm:$0xff]  ;;  %v6930_v52 = vld [vmem:[%s9535_s5 + $0x1a8] sm:$0xff]  ;;  %v6947_v55 = vld [vmem:[%s9535_s5 + $0x160] sm:$0xff] }
  0x55   : > { %865 = vmatpush.msrb.mxu0 %v5440_v57  ;;  %885 = vmatpush.msrb.mxu1 %v5456_v58  ;;  %v6913_v49 = vld [vmem:[%s9535_s5 + $0x1f0] sm:$0xff]  ;;  %9540 = vst [vmem:[#allocation7_spill] sm:$0xff] %v6918_v50  ;;  %v6935_v53 = vld [vmem:[%s9535_s5 + $0x1e8] sm:$0xff]  ;;  %v6954_v58 = vld [vmem:[%s9535_s5 + $0x1a0] sm:$0xff] }
  0x56   : > { %943 = vmatpush.msrb.mxu2 %v5472_v59  ;;  %963 = vmatpush.msrb.mxu3 %v5488_v60  ;;  %9539 = vst [vmem:[#allocation6_spill] sm:$0xff] %v6913_v49  ;;  %v6959_v59 = vld [vmem:[%s9535_s5 + $0x1e0] sm:$0xff]  ;;  %v6970_v60 = vld [vmem:[%s9535_s5 + $0x118] sm:$0xff]  ;;  %v7031_v7 = vld [vmem:[%s9535_s5 + $0x1c8] sm:$0xff] }
  0x57   : > { %866 = vmatpush.msrb.mxu0 %v5439_v61  ;;  %886 = vmatpush.msrb.mxu1 %v5455_v62  ;;  %9541 = vst [vmem:[#allocation8_spill] sm:$0xff] %v6925_v51  ;;  %v6975_v61 = vld [vmem:[%s9535_s5 + $0x158] sm:$0xff] }
  0x58   : > { %944 = vmatpush.msrb.mxu2 %v5471_v1  ;;  %964 = vmatpush.msrb.mxu3 %v5487_v2  ;;  %9542 = vst [vmem:[#allocation9_spill] sm:$0xff] %v6935_v53  ;;  %v6980_v62 = vld [vmem:[%s9535_s5 + $0x198] sm:$0xff]  ;;  %v6997_v1 = vld [vmem:[%s9535_s5 + $0x150] sm:$0xff] }
  0x59   : > { %867 = vmatpush.msrb.mxu0 %v5438_v3  ;;  %887 = vmatpush.msrb.mxu1 %v5454_v4  ;;  %9543 = vst [vmem:[#allocation10_spill] sm:$0xff] %v6942_v54  ;;  %v7004_v2 = vld [vmem:[%s9535_s5 + $0x190] sm:$0xff]  ;;  %v7014_v4 = vld [vmem:[%s9535_s5 + $0x108] sm:$0xff] }
  0x5a   : > { %945 = vmatpush.msrb.mxu2 %v5470_v5  ;;  %965 = vmatpush.msrb.mxu3 %v5486_v6  ;;  %9544 = vst [vmem:[#allocation11_spill] sm:$0xff] %v6947_v55  ;;  %v7009_v3 = vld [vmem:[%s9535_s5 + $0x1d0] sm:$0xff]  ;;  %v7021_v5 = vld [vmem:[%s9535_s5 + $0x148] sm:$0xff] }
  0x5b   : > { %868 = vmatmul.f32.vlgmr.msrb.gmra.mxu0 %v848_v63  ;;  %888 = vmatmul.f32.vlgmr.msrb.gmra.mxu1 %v849_v0  ;;  %9545 = vst [vmem:[#allocation12_spill] sm:$0xff] %v6959_v59  ;;  %v6987_v63 = vld [vmem:[%s9535_s5 + $0x1d8] sm:$0xff]  ;;  %v6992_v0 = vld [vmem:[%s9535_s5 + $0x110] sm:$0xff]  ;;  %v7026_v6 = vld [vmem:[%s9535_s5 + $0x188] sm:$0xff] }
  0x5c   : > { %946 = vmatmul.f32.vlgmr.msrb.gmra.mxu2 %v926_v8  ;;  %966 = vmatmul.f32.vlgmr.msrb.gmra.mxu3 %v927_v9  ;;  %9546 = vst [vmem:[#allocation13_spill] sm:$0xff] %v6970_v60  ;;  %v7038_v8 = vld [vmem:[%s9535_s5 + $0x100] sm:$0xff] }
  0x5d   : > { %1016 = vmatpush.msra.mxu0 %v6682_v10  ;;  %1048 = vmatpush.msra.mxu1 %v6687_v11  ;;  %9547 = vst [vmem:[#allocation14_spill] sm:$0xff] %v6975_v61  ;;  %v7043_v9 = vld [vmem:[%s9535_s5 + $0x140] sm:$0xff] }
  0x5e   : > { %1080 = vmatpush.msra.mxu2 %v6692_v12  ;;  %1112 = vmatpush.msra.mxu3 %v6699_v13  ;;  %9548 = vst [vmem:[#allocation15_spill] sm:$0xff] %v6987_v63 }
  0x5f   : > { %1017 = vmatpush.msra.mxu0 %v6706_v14  ;;  %1049 = vmatpush.msra.mxu1 %v6711_v15  ;;  %9549 = vst [vmem:[#allocation16_spill] sm:$0xff] %v6992_v0 }
  0x60   : > { %1081 = vmatpush.msra.mxu2 %v6716_v16  ;;  %1113 = vmatpush.msra.mxu3 %v6723_v17  ;;  %9550 = vst [vmem:[#allocation17_spill] sm:$0xff] %v6997_v1 }
  0x61   : > { %1018 = vmatpush.msra.mxu0 %v6730_v18  ;;  %1050 = vmatpush.msra.mxu1 %v6735_v19  ;;  %9551 = vst [vmem:[#allocation18_spill] sm:$0xff] %v7004_v2 }
  0x62   : > { %1082 = vmatpush.msra.mxu2 %v6740_v20  ;;  %1114 = vmatpush.msra.mxu3 %v6747_v21  ;;  %9552 = vst [vmem:[#allocation19_spill] sm:$0xff] %v7009_v3 }
  0x63   : > { %1019 = vmatpush.msra.mxu0 %v6754_v22  ;;  %1051 = vmatpush.msra.mxu1 %v6759_v23  ;;  %9553 = vst [vmem:[#allocation20_spill] sm:$0xff] %v7014_v4 }
  0x64   : > { %1083 = vmatpush.msra.mxu2 %v6764_v24  ;;  %1115 = vmatpush.msra.mxu3 %v6771_v25  ;;  %9554 = vst [vmem:[#allocation21_spill] sm:$0xff] %v7021_v5 }
  0x65   : > { %1020 = vmatpush.msra.mxu0 %v6778_v26  ;;  %1052 = vmatpush.msra.mxu1 %v6783_v27  ;;  %9555 = vst [vmem:[#allocation22_spill] sm:$0xff] %v7026_v6 }
  0x66   : > { %1084 = vmatpush.msra.mxu2 %v6788_v28  ;;  %1116 = vmatpush.msra.mxu3 %v6795_v29  ;;  %9556 = vst [vmem:[#allocation23_spill] sm:$0xff] %v7031_v7 }
  0x67   : > { %1021 = vmatpush.msra.mxu0 %v6802_v30  ;;  %1053 = vmatpush.msra.mxu1 %v6807_v31  ;;  %9557 = vst [vmem:[#allocation24_spill] sm:$0xff] %v7038_v8 }
  0x68   : > { %1085 = vmatpush.msra.mxu2 %v6812_v32  ;;  %1117 = vmatpush.msra.mxu3 %v6819_v33 }
  0x69   : > { %1022 = vmatpush.msra.mxu0 %v6826_v34  ;;  %1054 = vmatpush.msra.mxu1 %v6831_v35 }
  0x6a   : > { %1086 = vmatpush.msra.mxu2 %v6836_v36  ;;  %1118 = vmatpush.msra.mxu3 %v6843_v37 }
  0x6b   : > { %1023 = vmatpush.msra.mxu0 %v6848_v38  ;;  %1055 = vmatpush.msra.mxu1 %v6853_v39 }
  0x6c   : > { %1087 = vmatpush.msra.mxu2 %v6860_v40  ;;  %1119 = vmatpush.msra.mxu3 %v6865_v41 }
  0x6d   : > { %1144 = vmatpush.msrb.mxu0 %v6874_v42  ;;  %1176 = vmatpush.msrb.mxu1 %v6879_v43 }
  0x6e   : > { %1208 = vmatpush.msrb.mxu2 %v6884_v44  ;;  %1240 = vmatpush.msrb.mxu3 %v6891_v45 }
  0x6f   : > { %1145 = vmatpush.msrb.mxu0 %v6896_v46  ;;  %1177 = vmatpush.msrb.mxu1 %v6901_v47 }
  0x70   : > { %1209 = vmatpush.msrb.mxu2 %v6908_v48  ;;  %1241 = vmatpush.msrb.mxu3 %v6913_v49 }
  0x71   : > { %1146 = vmatpush.msrb.mxu0 %v6918_v50  ;;  %1178 = vmatpush.msrb.mxu1 %v6925_v51 }
  0x72   : > { %1210 = vmatpush.msrb.mxu2 %v6930_v52  ;;  %1242 = vmatpush.msrb.mxu3 %v6935_v53  ;;  %v7055_v53 = vld [vmem:[%s9535_s5 + $0x1c0] sm:$0xff] }
  0x73   : > { %1147 = vmatpush.msrb.mxu0 %v6942_v54  ;;  %1179 = vmatpush.msrb.mxu1 %v6947_v55 }
  0x74   : > { %1211 = vmatpush.msrb.mxu2 %v6954_v58  ;;  %1243 = vmatpush.msrb.mxu3 %v6959_v59 }
  0x75   : > { %1148 = vmatpush.msrb.mxu0 %v6970_v60  ;;  %1180 = vmatpush.msrb.mxu1 %v6975_v61 }
  0x76   : > { %1212 = vmatpush.msrb.mxu2 %v6980_v62  ;;  %1244 = vmatpush.msrb.mxu3 %v6987_v63 }
  0x77   : > { %1149 = vmatpush.msrb.mxu0 %v6992_v0  ;;  %1181 = vmatpush.msrb.mxu1 %v6997_v1 }
  0x78   : > { %1213 = vmatpush.msrb.mxu2 %v7004_v2  ;;  %1245 = vmatpush.msrb.mxu3 %v7009_v3  ;;  %v7050_v3 = vld [vmem:[%s9535_s5 + $0x180] sm:$0xff] }
  0x79   : > { %1150 = vmatpush.msrb.mxu0 %v7014_v4  ;;  %1182 = vmatpush.msrb.mxu1 %v7021_v5 }
  0x7a   : > { %1214 = vmatpush.msrb.mxu2 %v7026_v6  ;;  %1246 = vmatpush.msrb.mxu3 %v7031_v7 }
  0x7b   : > { %1151 = vmatpush.msrb.mxu0 %v7038_v8  ;;  %1183 = vmatpush.msrb.mxu1 %v7043_v9 }
  0x7c   : > { %1215 = vmatpush.msrb.mxu2 %v7050_v3  ;;  %1247 = vmatpush.msrb.mxu3 %v7055_v53 }
  0xcf   : > { %v713_v56 = vpop.f32.mrf.mxu0  ;;  %v733_v57 = vpop.f32.mrf.mxu1 }
  0xd0   : > { %v734_v61 = vadd.f32 %v733_v57, %v713_v56  ;;  %v7147_v56 = vld [vmem:[%s9535_s5 + $0x208] sm:$0xff]  ;;  %v3456_v57 = vld [vmem:[%s9472_s14 + $0x10] sm:$0xff] }
  0xd1   : > { %v811_v59 = vpop.f32.mrf.mxu3 }
  0xd2   : > { %v791_v63 = vpop.f32.mrf.mxu2 }
  0xd3   : > { %v812_v5 = vadd.f32 %v811_v59, %v791_v63 }
  0xd5   : > { %v971_v55 = vrot.slane %v812_v5, 5 }
  0xd7   : > { %v980_v7 = vsel %vm979_vm0, %v734_v61, %v971_v55  ;;  %v7101_v55 = vld [vmem:[%s9535_s5 + $0x228] sm:$0xff]  ;;  %v3454_v61 = vld [vmem:[%s9472_s14] sm:$0xff] }
  0xd8   : > { %v869_v49 = vpop.f32.mrf.mxu0  ;;  %v889_v45 = vpop.f32.mrf.mxu1 }
  0xd9   : > { %v890_v1 = vadd.f32 %v889_v45, %v869_v49 }
  0xdb   : > { %v974_v51 = vrot.slane %v890_v1, 2  ;;  %v4187_v1 = vld [vmem:[%s9476_s18] sm:$0xff] }
  0xdd   : > { %v7065_v2 = vsel %vm981_vm1, %v980_v7, %v974_v51  ;;  %v4190_v7 = vld [vmem:[%s9476_s18 + $0x18] sm:$0xff] }
  0xde   : > { %9558 = vst [vmem:[#allocation25_spill] sm:$0xff] %v7065_v2  ;;  %v1000_v45 = vrot.slane %v7065_v2, 3 }
  0xdf   : > { %v947_v47 = vpop.f32.mrf.mxu2  ;;  %v967_v43 = vpop.f32.mrf.mxu3 }
  0xe0   : > { %v968_v6 = vadd.f32 %v967_v43, %v947_v47  ;;  %v7081_v47 = vld [vmem:[%s9535_s5 + $0x238] sm:$0xff] }
  0xe2   : > { %v977_v59 = vrot.slane %v968_v6, 7  ;;  %v3457_v6 = vld [vmem:[%s9472_s14 + $0x18] sm:$0xff] }
  0xe4   : > { %v7068_v63 = vsel %vm983_vm2, %v974_v51, %v977_v59  ;;  %v7094_v51 = vld [vmem:[%s9535_s5 + $0x230] sm:$0xff] }
  0xe5   : > { %9559 = vst [vmem:[#allocation26_spill] sm:$0xff] %v7068_v63  ;;  %v7072_v49 = vrot.slane %v7068_v63, 3 }
  0xe7   : > { %v7076_v43 = vsel %vm999_vm3, %v1000_v45, %v7072_v49 }
  0xe8   : > { %5502 = vmatmul.msk.f32.vlgmr.msra.gmra.mxu0 %vm1003_vm4, %v7076_v43  ;;  %5512 = vmatmul.msk.f32.vlgmr.msra.gmra.mxu1 %vm1003_vm4, %v7076_v43 }
  0xe9   : > { %5522 = vmatmul.msk.f32.vlgmr.msra.gmra.mxu2 %vm1003_vm4, %v7076_v43  ;;  %5532 = vmatmul.msk.f32.vlgmr.msra.gmra.mxu3 %vm1003_vm4, %v7076_v43 }
  0xea   : > { %1272 = vmatpush.msra.mxu0 %v7081_v47  ;;  %1441 = vmatpush.msra.mxu2 %v6682_v10  ;;  %v7112_v10 = vld [vmem:[%s9535_s5 + $0x220] sm:$0xff] }
  0xeb   : > { %1470 = vmatpush.msra.mxu3 %v6687_v11  ;;  %v1346_v11 = vld [vmem:[%s9464_s6] sm:$0xff] }
  0xec   : > { %1273 = vmatpush.msra.mxu0 %v7094_v51  ;;  %1442 = vmatpush.msra.mxu2 %v6706_v14  ;;  %v7129_v14 = vld [vmem:[%s9535_s5 + $0x218] sm:$0xff] }
  0xed   : > { %1471 = vmatpush.msra.mxu3 %v6711_v15  ;;  %v1348_v15 = vld [vmem:[%s9464_s6 + $0x10] sm:$0xff] }
  0xee   : > { %1274 = vmatpush.msra.mxu0 %v7101_v55  ;;  %1443 = vmatpush.msra.mxu2 %v6730_v18  ;;  %v6151_v18 = vmov 0  }
  0xef   : > { %1472 = vmatpush.msra.mxu3 %v6735_v19  ;;  %6004 = vset.pattern.permute.xlu0 %v6151_v18  ;;  %v7138_v19 = vld [vmem:[%s9535_s5 + $0x210] sm:$0xff] }
  0xf0   : > { %5503 = vmatmul.msk.f32.gmra.mxu0 %vm1003_vm4, %v7072_v49  ;;  %5513 = vmatmul.msk.f32.gmra.mxu1 %vm1003_vm4, %v7072_v49 }
  0xf1   : > { %5523 = vmatmul.msk.f32.gmra.mxu2 %vm1003_vm4, %v7072_v49  ;;  %5533 = vmatmul.msk.f32.gmra.mxu3 %vm1003_vm4, %v7072_v49 }
  0xf2   : > { %1275 = vmatpush.msra.mxu0 %v7112_v10  ;;  %1352 = vperm.xlu0 %6004, %v1346_v11   ;;  %v4188_v11 = vld [vmem:[%s9476_s18 + $0x8] sm:$0xff] }
  0xf3   : > { %6005 = vset.pattern.permute.xlu1 %v6151_v18  ;;  %1444 = vmatpush.msra.mxu2 %v6754_v22  ;;  %v1347_v22 = vld [vmem:[%s9464_s6 + $0x8] sm:$0xff] }
  0xf4   : > { %1276 = vmatpush.msra.mxu0 %v7129_v14  ;;  %1362 = vperm.xlu1 %6005, %v1348_v15   ;;  %v4193_v15 = vld [vmem:[%s9476_s18 + $0x30] sm:$0xff] }
  0xf5   : > { %1473 = vmatpush.msra.mxu3 %v6759_v23  ;;  %6006 = vset.pattern.permute.xlu2 %v6151_v18  ;;  %v7165_v23 = vld [vmem:[%s9535_s5 + $0x200] sm:$0xff] }
  0xf6   : > { %1277 = vmatpush.msra.mxu0 %v7138_v19  ;;  %1445 = vmatpush.msra.mxu2 %v6778_v26  ;;  %v1349_v26 = vld [vmem:[%s9464_s6 + $0x18] sm:$0xff]  ;;  %v4191_v18 = vld [vmem:[%s9476_s18 + $0x20] sm:$0xff] }
  0xf7   : > { %1474 = vmatpush.msra.mxu3 %v6783_v27  ;;  %v1996_v27 = vld [vmem:[%s9468_s10 + $0x18] sm:$0xff] }
  0xf8   : > { %5542 = vmatmul.msk.f32.vlgmr.msrb.gmra.mxu0 %vm1003_vm4, %v7076_v43  ;;  %5552 = vmatmul.msk.f32.vlgmr.msrb.gmra.mxu1 %vm1003_vm4, %v7076_v43 }
  0xf9   : > { %5562 = vmatmul.msk.f32.vlgmr.msrb.gmra.mxu2 %vm1003_vm4, %v7076_v43  ;;  %5572 = vmatmul.msk.f32.vlgmr.msrb.gmra.mxu3 %vm1003_vm4, %v7076_v43 }
  0xfa   : > { %1278 = vmatpush.msra.mxu0 %v7147_v56  ;;  %1446 = vmatpush.msra.mxu2 %v6802_v30  ;;  %v1999_v30 = vld [vmem:[%s9468_s10 + $0x30] sm:$0xff] }
  0xfb   : > { %1357 = vperm.xlu0 %6004, %v1347_v22   ;;  %1475 = vmatpush.msra.mxu3 %v6807_v31  ;;  %v9560_v31 = vld [vmem:[#allocation18_spill] sm:$0xff]  ;;  %v4765_v22 = vld [vmem:[%s9478_s20 + $0x8] sm:$0xff] }
  0xfc   : > { %1279 = vmatpush.msra.mxu0 %v7165_v23  ;;  %1367 = vperm.xlu1 %6005, %v1349_v26  }
  0xfd   : > { %1447 = vmatpush.msra.mxu2 %v6826_v34  ;;  %1476 = vmatpush.msra.mxu3 %v6831_v35  ;;  %v9561_v34 = vld [vmem:[#allocation22_spill] sm:$0xff] }
  0xfe   : > { %1499 = vmatpush.msrb.mxu0 %v6692_v12  ;;  %v1997_v35 = vld [vmem:[%s9468_s10 + $0x20] sm:$0xff] }
  0xff   : > { %1448 = vmatpush.msra.mxu2 %v6848_v38  ;;  %1477 = vmatpush.msra.mxu3 %v6853_v39  ;;  %v1994_v38 = vld [vmem:[%s9468_s10 + $0x8] sm:$0xff]  ;;  %v2000_v39 = vld [vmem:[%s9468_s10 + $0x38] sm:$0xff] }
 0x100   : > { %1500 = vmatpush.msrb.mxu0 %v6716_v16  ;;  %5553 = vmatmul.msk.f32.gmra.mxu1 %vm1003_vm4, %v7072_v49 }
 0x101   : > { %5543 = vmatmul.msk.f32.gmra.mxu0 %vm1003_vm4, %v7072_v49  ;;  %5563 = vmatmul.msk.f32.gmra.mxu2 %vm1003_vm4, %v7072_v49 }
 0x102   : > { %5573 = vmatmul.msk.f32.gmra.mxu3 %vm1003_vm4, %v7072_v49  ;;  %1501 = vmatpush.msrb.mxu0 %v6740_v20 }
 0x103   : > { %2018 = vperm.xlu0 %6004, %v1996_v27   ;;  %1528 = vmatpush.msrb.mxu2 %v6699_v13 }
 0x104   : > { %1502 = vmatpush.msrb.mxu0 %v6764_v24  ;;  %1557 = vmatpush.msrb.mxu3 %v6874_v42  ;;  %v2528_v42 = vld [vmem:[%s9470_s12 + $0x10] sm:$0x3] }
 0x105   : > { %1529 = vmatpush.msrb.mxu2 %v6723_v17  ;;  %2023 = vperm.xlu1 %6005, %v1997_v35  }
 0x106   : > { %1503 = vmatpush.msrb.mxu0 %v6788_v28  ;;  %1558 = vmatpush.msrb.mxu3 %v6896_v46  ;;  %v2526_v46 = vld [vmem:[%s9470_s12] sm:$0xff] }
 0x107   : > { %1530 = vmatpush.msrb.mxu2 %v6747_v21 }
 0x108   : > { %1559 = vmatpush.msrb.mxu3 %v6918_v50  ;;  %1504 = vmatpush.msrb.mxu0 %v6812_v32 }
 0x109   : > { %5582 = vmatmul.msk.f32.vlgmr.msra.gmra.mxu0 %vm1003_vm4, %v7076_v43  ;;  %1531 = vmatpush.msrb.mxu2 %v6771_v25 }
 0x10a   : > { %1560 = vmatpush.msrb.mxu3 %v6942_v54  ;;  %1505 = vmatpush.msrb.mxu0 %v6836_v36 }
 0x10b   : > { %2033 = vperm.xlu0 %6004, %v1999_v30   ;;  %1532 = vmatpush.msrb.mxu2 %v6795_v29 }
 0x10c   : > { %1561 = vmatpush.msrb.mxu3 %v6970_v60  ;;  %1506 = vmatpush.msrb.mxu0 %v6860_v40 }
 0x10d   : > { %1533 = vmatpush.msrb.mxu2 %v6819_v33  ;;  %2038 = vperm.xlu1 %6005, %v2000_v39   ;;  %v4768_v39 = vld [vmem:[%s9478_s20 + $0x20] sm:$0xff] }
 0x10e   : > { %1615 = vmatpush.msra.mxu0 %v6884_v44  ;;  %1562 = vmatpush.msrb.mxu3 %v6992_v0 }
 0x10f   : > { %1534 = vmatpush.msrb.mxu2 %v6843_v37 }
 0x110   : > { %1616 = vmatpush.msra.mxu0 %v6908_v48  ;;  %1563 = vmatpush.msrb.mxu3 %v7014_v4 }
 0x111   : > { %5583 = vmatmul.msk.f32.gmra.mxu0 %vm1003_vm4, %v7072_v49  ;;  %1535 = vmatpush.msrb.mxu2 %v6865_v41 }
 0x112   : > { %1617 = vmatpush.msra.mxu0 %v6930_v52  ;;  %1564 = vmatpush.msrb.mxu3 %v7038_v8 }
 0x113   : > { %2008 = vperm.xlu0 %6004, %v1994_v38   ;;  %v4194_v38 = vld [vmem:[%s9476_s18 + $0x38] sm:$0xff] }
 0x114   : > { %1618 = vmatpush.msra.mxu0 %v6954_v58 }
 0x115   : > { %2531 = vperm.xlu1 %6005, %v2526_v46  }
 0x116   : > { %1619 = vmatpush.msra.mxu0 %v6980_v62 }
 0x118   : > { %1620 = vmatpush.msra.mxu0 %v9560_v31 }
 0x11a   : > { %1621 = vmatpush.msra.mxu0 %v9561_v34 }
 0x11b   : > { %2541 = vperm.xlu0 %6004, %v2528_v42  }
 0x11c   : > { %1622 = vmatpush.msra.mxu0 %v7050_v3 }
 0x11d   : > { %3460 = vperm.xlu1 %6005, %v3454_v61  }
 0x123   : > { %3470 = vperm.xlu0 %6004, %v3456_v57  }
 0x125   : > { %3475 = vperm.xlu1 %6005, %v3457_v6   ;;  %v4771_v6 = vld [vmem:[%s9478_s20 + $0x38] sm:$0xff] }
 0x12b   : > { %4197 = vperm.xlu0 %6004, %v4187_v1   ;;  %v4766_v1 = vld [vmem:[%s9478_s20 + $0x10] sm:$0xff] }
 0x12d   : > { %4202 = vperm.xlu1 %6005, %v4188_v11  }
 0x133   : > { %4212 = vperm.xlu0 %6004, %v4190_v7  }
 0x135   : > { %4217 = vperm.xlu1 %6005, %v4191_v18  }
 0x13b   : > { %4227 = vperm.xlu0 %6004, %v4193_v15  }
 0x13d   : > { %4232 = vperm.xlu1 %6005, %v4194_v38   ;;  %v4769_v38 = vld [vmem:[%s9478_s20 + $0x28] sm:$0xff] }
 0x143   : > { %4783 = vperm.xlu0 %6004, %v4765_v22  }
 0x145   : > { %4788 = vperm.xlu1 %6005, %v4766_v1  }
 0x14b   : > { %4798 = vperm.xlu0 %6004, %v4768_v39   ;;  %v4774_v39 = vld [vmem:[%s9478_s20 + $0x50] sm:$0xff] }
 0x14d   : > { %4803 = vperm.xlu1 %6005, %v4769_v38   ;;  %v9566_v38 = vld [vmem:[#allocation11_spill] sm:$0xff] }
 0x153   : > { %4813 = vperm.xlu0 %6004, %v4771_v6  }
 0x15b   : > { %4828 = vperm.xlu0 %6004, %v4774_v39   ;;  %v9567_v39 = vld [vmem:[#allocation14_spill] sm:$0xff] }
 0x165   : > { %v7252_v5 = vpop.f32.mrf.mxu0  ;;  %v7264_v49 = vpop.f32.mrf.mxu1 }
 0x16c   : > { %v7260_v59 = vpop.f32.mrf.mxu2  ;;  %v7262_v45 = vpop.f32.mrf.mxu3 }
 0x16d   : > { %v7266_v43 = vpop.f32.mrf.mxu0  ;;  %v1060_v35 = vpop.f32.mrf.mxu1 }
 0x174   : > { %v1092_v26 = vpop.f32.mrf.mxu2  ;;  %v1124_v30 = vpop.f32.mrf.mxu3 }
 0x175   : > { %v1153_v27 = vpop.f32.mrf.mxu0  ;;  %v1185_v61 = vpop.f32.mrf.mxu1  ;;  %v1305_v54 = vrot.slane %v1124_v30, 5 }
 0x176   : > { %v1319_v6 = vrot.slane %v1185_v61, 3  ;;  %v1312_v50 = vrot.slane %v1153_v27, 4  ;;  %v1297_v27 = vrot.slane %v7260_v59, 6 }
 0x17c   : > { %v1217_v46 = vpop.f32.mrf.mxu2  ;;  %v1249_v57 = vpop.f32.mrf.mxu3 }
 0x17d   : > { %v1188_v18 = vpop.f32.mrf.mxu1  ;;  %v1326_v8 = vrot.slane %v1217_v46, 2  ;;  %v1334_v1 = vrot.slane %v1249_v57, 1  ;;  %v1298_v57 = vrot.slane %v1092_v26, 6 }
 0x17e   : > { %v1156_v42 = vpop.f32.mrf.mxu0  ;;  %v1320_v4 = vrot.slane %v1188_v18, 3  ;;  %v9564_v18 = vld [vmem:[#allocation5_spill] sm:$0xff] }
 0x17f   : > { %v1299_v26 = vsel %vm1296_vm7, %v1297_v27, %v1298_v57 }
 0x184   : > { %v1220_v11 = vpop.f32.mrf.mxu2 }
 0x185   : > { %v1252_v15 = vpop.f32.mrf.mxu3  ;;  %v1327_v22 = vrot.slane %v1220_v11, 2  ;;  %v1313_v11 = vrot.slane %v1156_v42, 4  ;;  %v4772_v42 = vld [vmem:[%s9478_s20 + $0x40] sm:$0xff] }
 0x186   : > { %v1281_v7 = vpop.f32.mrf.mxu0  ;;  %v1335_v63 = vrot.slane %v1252_v15, 1  ;;  %v1321_v15 = vsel %vm999_vm3, %v1319_v6, %v1320_v4  ;;  %4818 = vperm.xlu1 %6005, %v4772_v42  }
 0x187   : > { %v1328_v0 = vsel %vm981_vm1, %v1326_v8, %v1327_v22  ;;  %v1314_v61 = vsel %vm1311_vm6, %v1312_v50, %v1313_v11  ;;  %v986_v22 = vld [vmem:[%s9562_s28 + $0x8] sm:$0xff]  ;;  %v988_v11 = vld [vmem:[%s9562_s28 + $0x18] sm:$0xff] }
 0x188   : > { %v1336_v60 = vsel %vm1333_vm5, %v1334_v1, %v1335_v63  ;;  %v1345_v46 = vsel %vm1333_vm5, %v1328_v0, %v1334_v1  ;;  %v1344_v63 = vsel %vm981_vm1, %v1321_v15, %v1326_v8  ;;  %v1343_v0 = vsel %vm999_vm3, %v1314_v61, %v1319_v6  ;;  %v9568_v1 = vld [vmem:[#allocation17_spill] sm:$0xff]  ;;  %v1353_v15 = vpop.permute.xlu0 %1352  ;;  %v9570_v61 = vld [vmem:[#allocation4_spill] sm:$0xff] }
 0x189   : > { %v9569_v6 = vld [vmem:[#allocation21_spill] sm:$0xff] }
 0x18e   : > { %v1284_v2 = vpop.f32.mrf.mxu0 }
 0x18f   : > { %5584 = vmatpush.msk.msra.mxu1 %vm983_vm2, %v1284_v2  ;;  %v1304_v2 = vrot.slane %v7262_v45, 5  ;;  %v1289_v45 = vrot.slane %v7264_v49, 7 }
 0x190   : > { %v1358_v42 = vpop.permute.xlu0 %1357 }
 0x191   : > { %1392 = vmatpush.msra.mxu1 %v1281_v7  ;;  %v1306_v4 = vsel %vm979_vm0, %v1304_v2, %v1305_v54  ;;  %v1341_v59 = vsel %vm979_vm0, %v1299_v26, %v1304_v2  ;;  %v4775_v54 = vld [vmem:[%s9478_s20 + $0x58] sm:$0x3]  ;;  %v1339_v49 = vsel %vm983_vm2, %v7266_v43, %v1289_v45  ;;  %v9563_v7 = vld [vmem:[#allocation3_spill] sm:$0xff]  ;;  %v9565_v43 = vld [vmem:[#allocation8_spill] sm:$0xff] }
 0x192   : > { %v1342_v30 = vsel %vm1311_vm6, %v1306_v4, %v1312_v50  ;;  %4833 = vperm.xlu1 %6005, %v4775_v54   ;;  %v985_v50 = vld [vmem:[%s9562_s28] sm:$0xff]  ;;  %v9573_v26 = vld [vmem:[#allocation12_spill] sm:$0xff] }
 0x193   : > { %1393 = vmatpush.msra.mxu1 %v1336_v60  ;;  %v1290_v60 = vrot.slane %v1060_v35, 7 }
 0x195   : > { %1394 = vmatpush.msra.mxu1 %v1345_v46  ;;  %v1291_v8 = vsel %vm983_vm2, %v1289_v45, %v1290_v60  ;;  %v9571_v60 = vld [vmem:[#allocation6_spill] sm:$0xff]  ;;  %v1363_v45 = vpop.permute.xlu1 %1362 }
 0x196   : > { %v1340_v35 = vsel %vm1296_vm7, %v1291_v8, %v1297_v27 }
 0x197   : > { %1395 = vmatpush.msra.mxu1 %v1344_v63 }
 0x199   : > { %1396 = vmatpush.msra.mxu1 %v1343_v0  ;;  %v9572_v0 = vld [vmem:[#allocation9_spill] sm:$0xff] }
 0x19b   : > { %1397 = vmatpush.msra.mxu1 %v1342_v30 }
 0x19d   : > { %1398 = vmatpush.msra.mxu1 %v1341_v59  ;;  %v9574_v59 = vld [vmem:[#allocation15_spill] sm:$0xff] }
 0x19f   : > { %1399 = vmatpush.msra.mxu1 %v1340_v35  ;;  %v9575_v35 = vld [vmem:[#allocation19_spill] sm:$0xff] }
 0x1a1   : > { %1400 = vmatpush.msra.mxu1 %v1339_v49  ;;  %v9576_v49 = vld [vmem:[#allocation23_spill] sm:$0xff] }
 0x1a3   : > { %1401 = vmatpush.msra.mxu1 %v7252_v5  ;;  %v987_v5 = vld [vmem:[%s9562_s28 + $0x10] sm:$0xff] }
 0x1a4   : > { %5585 = vmatmul.msk.f32.vlgmr.msra.gmra.mxu1 %vm1370_vm8, %v985_v50  ;;  %v1368_v50 = vpop.permute.xlu1 %1367 }
 0x1a5   : > { %1586 = vmatpush.msrb.mxu1 %v9563_v7 }
 0x1a7   : > { %1587 = vmatpush.msrb.mxu1 %v9564_v18 }
 0x1a9   : > { %1588 = vmatpush.msrb.mxu1 %v9565_v43  ;;  %v3455_v43 = vld [vmem:[%s9472_s14 + $0x8] sm:$0xff] }
 0x1ab   : > { %1589 = vmatpush.msrb.mxu1 %v9566_v38 }
 0x1ac   : > { %5586 = vmatmul.msk.f32.gmra.mxu1 %vm1370_vm8, %v986_v22 }
 0x1ad   : > { %1590 = vmatpush.msrb.mxu1 %v9567_v39 }
 0x1af   : > { %1591 = vmatpush.msrb.mxu1 %v9568_v1 }
 0x1b1   : > { %1592 = vmatpush.msrb.mxu1 %v9569_v6 }
 0x1b3   : > { %1593 = vmatpush.msrb.mxu1 %v7043_v9 }
 0x1b4   : > { %5587 = vmatmul.msk.f32.gmra.mxu1 %vm1370_vm8, %v987_v5 }
 0x1bc   : > { %5588 = vmatmul.msk.f32.gmra.mxu1 %vm1370_vm8, %v988_v11 }
 0x221   : > { %v1403_v46 = vpop.f32.mrf.mxu1 }
 0x222   : > { %v1404_v2 = vadd.f32 %v1403_v46, %v1353_v15  ;;  %v3889_v15 = vld [vmem:[%s9474_s16] sm:$0x7] }
 0x224   : > { %v7348_v57 = vmax.f32 %v1404_v2, 0.0 }
 0x226   : > { %5589 = vmatmul.msk.f32.vlgmr.msra.gmra.mxu2 %vm1003_vm4, %v7348_v57  ;;  %5593 = vmatmul.msk.f32.vlgmr.msra.gmra.mxu3 %vm1003_vm4, %v7348_v57 }
 0x227   : > { %5597 = vmatmul.msk.f32.vlgmr.msrb.gmra.mxu0 %vm1003_vm4, %v7348_v57  ;;  %5609 = vmatmul.msk.f32.vlgmr.msrb.gmra.mxu1 %vm1003_vm4, %v7348_v57 }
 0x228   : > { %1644 = vmatpush.msra.mxu2 %v9570_v61  ;;  %1673 = vmatpush.msra.mxu3 %v7081_v47 }
 0x229   : > { %v1406_v63 = vpop.f32.mrf.mxu1 }
 0x22a   : > { %v1407_v27 = vadd.f32 %v1406_v63, %v1358_v42  ;;  %1645 = vmatpush.msra.mxu2 %v9571_v60  ;;  %1674 = vmatpush.msra.mxu3 %v7094_v51  ;;  %v4189_v42 = vld [vmem:[%s9476_s18 + $0x10] sm:$0xff] }
 0x22c   : > { %v7362_v4 = vmax.f32 %v1407_v27, 0.0  ;;  %1646 = vmatpush.msra.mxu2 %v9572_v0  ;;  %1675 = vmatpush.msra.mxu3 %v7101_v55 }
 0x22e   : > { %5590 = vmatmul.msk.f32.gmra.mxu2 %vm1003_vm4, %v7362_v4  ;;  %5594 = vmatmul.msk.f32.gmra.mxu3 %vm1003_vm4, %v7362_v4 }
 0x22f   : > { %5598 = vmatmul.msk.f32.gmra.mxu0 %vm1003_vm4, %v7362_v4  ;;  %5610 = vmatmul.msk.f32.gmra.mxu1 %vm1003_vm4, %v7362_v4 }
 0x230   : > { %1647 = vmatpush.msra.mxu2 %v9573_v26  ;;  %1676 = vmatpush.msra.mxu3 %v7112_v10 }
 0x231   : > { %v1409_v30 = vpop.f32.mrf.mxu1 }
 0x232   : > { %v1410_v8 = vadd.f32 %v1409_v30, %v1363_v45  ;;  %1648 = vmatpush.msra.mxu2 %v9574_v59  ;;  %1677 = vmatpush.msra.mxu3 %v7129_v14 }
 0x234   : > { %v7378_v54 = vmax.f32 %v1410_v8, 0.0  ;;  %1649 = vmatpush.msra.mxu2 %v9575_v35  ;;  %1678 = vmatpush.msra.mxu3 %v7138_v19  ;;  %v4192_v8 = vld [vmem:[%s9476_s18 + $0x28] sm:$0xff] }
 0x236   : > { %5591 = vmatmul.msk.f32.gmra.mxu2 %vm1003_vm4, %v7378_v54  ;;  %5595 = vmatmul.msk.f32.gmra.mxu3 %vm1003_vm4, %v7378_v54 }
 0x237   : > { %5599 = vmatmul.msk.f32.gmra.mxu0 %vm1003_vm4, %v7378_v54  ;;  %5611 = vmatmul.msk.f32.gmra.mxu1 %vm1003_vm4, %v7378_v54 }
 0x238   : > { %1650 = vmatpush.msra.mxu2 %v9576_v49  ;;  %1679 = vmatpush.msra.mxu3 %v7147_v56 }
 0x239   : > { %v1412_v7 = vpop.f32.mrf.mxu1 }
 0x23a   : > { %v1413_v18 = vadd.f32 %v1412_v7, %v1368_v50  ;;  %1651 = vmatpush.msra.mxu2 %v7055_v53  ;;  %1680 = vmatpush.msra.mxu3 %v7165_v23  ;;  %v7518_v7 = vld [vmem:[%s9535_s5 + $0x38] sm:$0xff] }
 0x23c   : > { %v1418_v22 = vmax.f32 %v1413_v18, 0.0  ;;  %v7524_v18 = vld [vmem:[%s9535_s5 + $0x30] sm:$0xff] }
 0x23e   : > { %5592 = vmatmul.msk.f32.gmra.mxu2 %vm1003_vm4, %v1418_v22  ;;  %5596 = vmatmul.msk.f32.gmra.mxu3 %vm1003_vm4, %v1418_v22 }
 0x23f   : > { %5600 = vmatmul.msk.f32.gmra.mxu0 %vm1003_vm4, %v1418_v22  ;;  %5612 = vmatmul.msk.f32.gmra.mxu1 %vm1003_vm4, %v1418_v22 }
 0x246   : > { %5601 = vmatmul.msk.f32.vlgmr.msrb.gmra.mxu2 %vm1003_vm4, %v7348_v57  ;;  %5605 = vmatmul.msk.f32.vlgmr.msrb.gmra.mxu3 %vm1003_vm4, %v7348_v57 }
 0x247   : > { %5613 = vmatmul.msk.f32.vlgmr.msra.gmra.mxu0 %vm1003_vm4, %v7348_v57  ;;  %1833 = vmatpush.msrb.mxu2 %v6692_v12 }
 0x248   : > { %1853 = vmatpush.msrb.mxu3 %v6699_v13 }
 0x249   : > { %1834 = vmatpush.msrb.mxu2 %v6716_v16 }
 0x24a   : > { %1854 = vmatpush.msrb.mxu3 %v6723_v17 }
 0x24b   : > { %1835 = vmatpush.msrb.mxu2 %v6740_v20 }
 0x24c   : > { %1855 = vmatpush.msrb.mxu3 %v6747_v21 }
 0x24d   : > { %1836 = vmatpush.msrb.mxu2 %v6764_v24 }
 0x24e   : > { %5602 = vmatmul.msk.f32.gmra.mxu2 %vm1003_vm4, %v7362_v4  ;;  %5606 = vmatmul.msk.f32.gmra.mxu3 %vm1003_vm4, %v7362_v4 }
 0x24f   : > { %5614 = vmatmul.msk.f32.gmra.mxu0 %vm1003_vm4, %v7362_v4  ;;  %1856 = vmatpush.msrb.mxu3 %v6771_v25 }
 0x250   : > { %1837 = vmatpush.msrb.mxu2 %v6788_v28  ;;  %v1694_v28 = vld [vmem:[%s9466_s8] sm:$0x7] }
 0x251   : > { %1857 = vmatpush.msrb.mxu3 %v6795_v29  ;;  %1697 = vperm.xlu2 %6006, %v1694_v28   ;;  %v7573_v28 = vld [vmem:[%s9535_s5 + $0x138] sm:$0xff] }
 0x252   : > { %1838 = vmatpush.msrb.mxu2 %v6812_v32 }
 0x253   : > { %1858 = vmatpush.msrb.mxu3 %v6819_v33 }
 0x254   : > { %1839 = vmatpush.msrb.mxu2 %v6836_v36  ;;  %v1995_v36 = vld [vmem:[%s9468_s10 + $0x10] sm:$0xff] }
 0x255   : > { %1859 = vmatpush.msrb.mxu3 %v6843_v37 }
 0x256   : > { %5603 = vmatmul.msk.f32.gmra.mxu2 %vm1003_vm4, %v7378_v54  ;;  %5607 = vmatmul.msk.f32.gmra.mxu3 %vm1003_vm4, %v7378_v54 }
 0x257   : > { %5615 = vmatmul.msk.f32.gmra.mxu0 %vm1003_vm4, %v7378_v54  ;;  %1840 = vmatpush.msrb.mxu2 %v6860_v40 }
 0x258   : > { %1860 = vmatpush.msrb.mxu3 %v6865_v41 }
 0x259   : > { %2013 = vperm.xlu2 %6006, %v1995_v36   ;;  %v1706_v36 = vld.sshfl [vmem:[#allocation1 + $0x8] sm:$0xff pattern:$0x75316420] }
 0x25e   : > { %5604 = vmatmul.msk.f32.gmra.mxu2 %vm1003_vm4, %v1418_v22  ;;  %5608 = vmatmul.msk.f32.gmra.mxu3 %vm1003_vm4, %v1418_v22 }
 0x25f   : > { %5616 = vmatmul.msk.f32.gmra.mxu0 %vm1003_vm4, %v1418_v22 }
 0x266   : > { %5617 = vmatmul.msk.f32.vlgmr.msra.gmra.mxu2 %vm1003_vm4, %v7348_v57  ;;  %5621 = vmatmul.msk.f32.vlgmr.msra.gmra.mxu3 %vm1003_vm4, %v7348_v57 }
 0x267   : > { %1913 = vmatpush.msra.mxu2 %v6884_v44  ;;  %1933 = vmatpush.msra.mxu3 %v9570_v61  ;;  %v1998_v44 = vld [vmem:[%s9468_s10 + $0x28] sm:$0xff] }
 0x268   : > { %2028 = vperm.xlu2 %6006, %v1998_v44   ;;  %v9579_v44 = vld [vmem:[#allocation13_spill] sm:$0xff] }
 0x269   : > { %1914 = vmatpush.msra.mxu2 %v6908_v48  ;;  %1934 = vmatpush.msra.mxu3 %v9571_v60  ;;  %v1420_v60 = vld [vmem:[%s9465_s7 + $0x8] sm:$0x7] }
 0x26a   : > { %1704 = vst [vmem:[#allocation1 + $0x10] ss:$2 sm:$0xff] %v1420_v60  ;;  %v9583_v60 = vld [vmem:[#allocation25_spill] sm:$0xff] }
 0x26b   : > { %1915 = vmatpush.msra.mxu2 %v6930_v52  ;;  %1935 = vmatpush.msra.mxu3 %v9572_v0  ;;  %v1705_v0 = vld.sshfl [vmem:[#allocation1] sm:$0xff pattern:$0x75316420] }
 0x26d   : > { %1916 = vmatpush.msra.mxu2 %v6954_v58  ;;  %1936 = vmatpush.msra.mxu3 %v9573_v26  ;;  %v1993_v58 = vld [vmem:[%s9468_s10] sm:$0xff] }
 0x26e   : > { %5618 = vmatmul.msk.f32.gmra.mxu2 %vm1003_vm4, %v7362_v4  ;;  %5622 = vmatmul.msk.f32.gmra.mxu3 %vm1003_vm4, %v7362_v4 }
 0x26f   : > { %1917 = vmatpush.msra.mxu2 %v6980_v62  ;;  %1937 = vmatpush.msra.mxu3 %v9574_v59  ;;  %v3615_v59 = vld [vmem:[%s9473_s15 + $0x8] sm:$0x7] }
 0x270   : > { %2003 = vperm.xlu2 %6006, %v1993_v58   ;;  %v9582_v58 = vld [vmem:[#allocation24_spill] sm:$0xff] }
 0x271   : > { %1918 = vmatpush.msra.mxu2 %v9560_v31  ;;  %1938 = vmatpush.msra.mxu3 %v9575_v35 }
 0x273   : > { %1919 = vmatpush.msra.mxu2 %v9561_v34  ;;  %1939 = vmatpush.msra.mxu3 %v9576_v49  ;;  %v2527_v34 = vld [vmem:[%s9470_s12 + $0x8] sm:$0xff]  ;;  %v4764_v49 = vld [vmem:[%s9478_s20] sm:$0xff] }
 0x275   : > { %1920 = vmatpush.msra.mxu2 %v7050_v3  ;;  %1940 = vmatpush.msra.mxu3 %v7055_v53 }
 0x276   : > { %5619 = vmatmul.msk.f32.gmra.mxu2 %vm1003_vm4, %v7378_v54  ;;  %5623 = vmatmul.msk.f32.gmra.mxu3 %vm1003_vm4, %v7378_v54  ;;  %v1707_v54 = vld.sshfl [vmem:[#allocation1 + $0x10] sm:$0xff pattern:$0x75316420] }
 0x277   : > { %3899 = vst [vmem:[#allocation1 + $0x10] ss:$2 sm:$0xff] %v3615_v59  ;;  %v6094_v59 = vld [vmem:[%s9535_s5 + $0x1a0] sm:$0xff] }
 0x278   : > { %2536 = vperm.xlu2 %6006, %v2527_v34   ;;  %v7634_v34 = vld [vmem:[%s9535_s5 + $0x48] sm:$0xff] }
 0x27e   : > { %5620 = vmatmul.msk.f32.gmra.mxu2 %vm1003_vm4, %v1418_v22  ;;  %5624 = vmatmul.msk.f32.gmra.mxu3 %vm1003_vm4, %v1418_v22  ;;  %v7530_v22 = vld [vmem:[%s9535_s5 + $0x28] sm:$0xff] }
 0x280   : > { %3465 = vperm.xlu2 %6006, %v3455_v43   ;;  %v7640_v43 = vld [vmem:[%s9535_s5 + $0x40] sm:$0xff] }
 0x288   : > { %3892 = vperm.xlu2 %6006, %v3889_v15   ;;  %v7664_v15 = vld [vmem:[%s9535_s5 + $0x160] sm:$0xff] }
 0x290   : > { %4207 = vperm.xlu2 %6006, %v4189_v42  }
 0x298   : > { %4222 = vperm.xlu2 %6006, %v4192_v8   ;;  %v6093_v8 = vld [vmem:[%s9535_s5 + $0x1a8] sm:$0xff] }
 0x2a0   : > { %4778 = vperm.xlu2 %6006, %v4764_v49   ;;  %v6097_v49 = vld [vmem:[%s9535_s5 + $0x188] sm:$0xff] }
 0x2a4   : > { %v1508_v29 = vpop.f32.mrf.mxu0  ;;  %v7496_v57 = vpop.f32.mrf.mxu1 }
 0x2a9   : > { %v7465_v12 = vpop.f32.mrf.mxu2  ;;  %v1479_v13 = vpop.f32.mrf.mxu3 }
 0x2ac   : > { %v1511_v37 = vpop.f32.mrf.mxu0  ;;  %v1598_v4 = vpop.f32.mrf.mxu1 }
 0x2b1   : > { %v1453_v16 = vpop.f32.mrf.mxu2  ;;  %v1482_v17 = vpop.f32.mrf.mxu3 }
 0x2b4   : > { %v1514_v48 = vpop.f32.mrf.mxu0  ;;  %v1601_v35 = vpop.f32.mrf.mxu1 }
 0x2b9   : > { %v1456_v20 = vpop.f32.mrf.mxu2  ;;  %v1485_v21 = vpop.f32.mrf.mxu3 }
 0x2bc   : > { %v1517_v62 = vpop.f32.mrf.mxu0 }
 0x2c1   : > { %v1459_v24 = vpop.f32.mrf.mxu2  ;;  %v1488_v25 = vpop.f32.mrf.mxu3 }
 0x2c4   : > { %v1624_v11 = vpop.f32.mrf.mxu0 }
 0x2c9   : > { %v1537_v32 = vpop.f32.mrf.mxu2  ;;  %v7470_v33 = vpop.f32.mrf.mxu3 }
 0x2cc   : > { %v1627_v61 = vpop.f32.mrf.mxu0 }
 0x2d1   : > { %v1540_v40 = vpop.f32.mrf.mxu2  ;;  %v7475_v41 = vpop.f32.mrf.mxu3 }
 0x2d4   : > { %v1630_v45 = vpop.f32.mrf.mxu0 }
 0x2d9   : > { %v1543_v52 = vpop.f32.mrf.mxu2  ;;  %v7480_v53 = vpop.f32.mrf.mxu3 }
 0x2dc   : > { %v1633_v50 = vpop.f32.mrf.mxu0 }
 0x2e1   : > { %v1546_v3 = vpop.f32.mrf.mxu2  ;;  %v7485_v31 = vpop.f32.mrf.mxu3 }
 0x2e2   : > { %1713 = vmatpush.msra.mxu1 %v1546_v3  ;;  %v7622_v3 = vld [vmem:[%s9535_s5 + $0x58] sm:$0xff] }
 0x2e4   : > { %1714 = vmatpush.msra.mxu1 %v1543_v52  ;;  %v9581_v52 = vld [vmem:[#allocation20_spill] sm:$0xff] }
 0x2e6   : > { %1715 = vmatpush.msra.mxu1 %v1540_v40  ;;  %v4773_v40 = vld [vmem:[%s9478_s20 + $0x48] sm:$0xff] }
 0x2e8   : > { %1716 = vmatpush.msra.mxu1 %v1537_v32  ;;  %v9577_v32 = vld [vmem:[#allocation7_spill] sm:$0xff] }
 0x2e9   : > { %v1653_v38 = vpop.f32.mrf.mxu2  ;;  %v1682_v5 = vpop.f32.mrf.mxu3 }
 0x2ea   : > { %1717 = vmatpush.msra.mxu1 %v1517_v62  ;;  %v7616_v62 = vld [vmem:[%s9535_s5 + $0x60] sm:$0xff] }
 0x2ec   : > { %1718 = vmatpush.msra.mxu1 %v1514_v48  ;;  %v7595_v48 = vld [vmem:[%s9535_s5 + $0x78] sm:$0xff] }
 0x2ee   : > { %1719 = vmatpush.msra.mxu1 %v1511_v37  ;;  %v9578_v37 = vld [vmem:[#allocation10_spill] sm:$0xff] }
 0x2f0   : > { %1720 = vmatpush.msra.mxu1 %v1508_v29  ;;  %v7580_v29 = vld [vmem:[%s9535_s5 + $0x130] sm:$0xff] }
 0x2f1   : > { %v1656_v46 = vpop.f32.mrf.mxu2  ;;  %v1685_v2 = vpop.f32.mrf.mxu3 }
 0x2f2   : > { %1721 = vmatpush.msra.mxu1 %v1488_v25  ;;  %v7567_v25 = vld [vmem:[%s9535_s5] sm:$0xff] }
 0x2f4   : > { %1722 = vmatpush.msra.mxu1 %v1485_v21  ;;  %v7557_v21 = vld [vmem:[%s9535_s5 + $0x8] sm:$0xff] }
 0x2f6   : > { %1723 = vmatpush.msra.mxu1 %v1482_v17  ;;  %v7545_v17 = vld [vmem:[%s9535_s5 + $0x18] sm:$0xff] }
 0x2f8   : > { %1724 = vmatpush.msra.mxu1 %v1479_v13  ;;  %v7539_v13 = vld [vmem:[%s9535_s5 + $0x20] sm:$0xff] }
 0x2f9   : > { %v1659_v63 = vpop.f32.mrf.mxu2  ;;  %v1688_v27 = vpop.f32.mrf.mxu3 }
 0x2fa   : > { %1725 = vmatpush.msra.mxu1 %v1459_v24  ;;  %v4770_v24 = vld [vmem:[%s9478_s20 + $0x30] sm:$0xff] }
 0x2fc   : > { %1726 = vmatpush.msra.mxu1 %v1456_v20  ;;  %v7551_v20 = vld [vmem:[%s9535_s5 + $0x10] sm:$0xff] }
 0x2fe   : > { %1727 = vmatpush.msra.mxu1 %v1453_v16  ;;  %v1604_v16 = vpop.f32.mrf.mxu1 }
 0x300   : > { %1728 = vmatpush.msra.mxu1 %v7465_v12  ;;  %v4767_v12 = vld [vmem:[%s9478_s20 + $0x18] sm:$0xff] }
 0x301   : > { %v1662_v26 = vpop.f32.mrf.mxu2  ;;  %v1691_v30 = vpop.f32.mrf.mxu3  ;;  %1729 = vmatmul.f32.vlgmr.msra.gmra.mxu1 %v1705_v0  ;;  %4793 = vperm.xlu2 %6006, %v4767_v12   ;;  %v6089_v0 = vld [vmem:[%s9535_s5 + $0x108] sm:$0xff] }
 0x302   : > { %1733 = vmatpush.msrb.mxu0 %v1662_v26  ;;  %1765 = vmatpush.msrb.mxu1 %v1691_v30  ;;  %v6091_v26 = vld [vmem:[%s9535_s5 + $0x100] sm:$0xff]  ;;  %v6092_v30 = vld [vmem:[%s9535_s5 + $0x1b0] sm:$0xff] }
 0x304   : > { %1734 = vmatpush.msrb.mxu0 %v1659_v63  ;;  %1766 = vmatpush.msrb.mxu1 %v1688_v27 }
 0x306   : > { %1735 = vmatpush.msrb.mxu0 %v1656_v46  ;;  %1767 = vmatpush.msrb.mxu1 %v1685_v2  ;;  %v1698_v2 = vpop.permute.xlu2 %1697 }
 0x308   : > { %1736 = vmatpush.msrb.mxu0 %v1653_v38  ;;  %1768 = vmatpush.msrb.mxu1 %v1682_v5  ;;  %v7646_v38 = vld [vmem:[%s9535_s5 + $0x178] sm:$0xff]  ;;  %v7652_v5 = vld [vmem:[%s9535_s5 + $0x170] sm:$0xff] }
 0x309   : > { %5625 = vmatmul.msk.f32.vlgmr.msrb.gmra.mxu1 %vm1710_vm9, %v1707_v54  ;;  %4808 = vperm.xlu2 %6006, %v4770_v24   ;;  %v6095_v54 = vld [vmem:[%s9535_s5 + $0x198] sm:$0xff] }
 0x30a   : > { %1737 = vmatpush.msrb.mxu0 %v1633_v50  ;;  %1793 = vmatpush.msra.mxu1 %v7518_v7  ;;  %v6098_v50 = vld [vmem:[%s9535_s5 + $0x180] sm:$0xff] }
 0x30c   : > { %1738 = vmatpush.msrb.mxu0 %v1630_v45  ;;  %1794 = vmatpush.msra.mxu1 %v7524_v18  ;;  %v6090_v45 = vld [vmem:[%s9535_s5 + $0x1b8] sm:$0xff] }
 0x30e   : > { %1739 = vmatpush.msrb.mxu0 %v1627_v61  ;;  %1795 = vmatpush.msra.mxu1 %v7530_v22 }
 0x310   : > { %1740 = vmatpush.msrb.mxu0 %v1624_v11  ;;  %1796 = vmatpush.msra.mxu1 %v7539_v13  ;;  %v7658_v11 = vld [vmem:[%s9535_s5 + $0x168] sm:$0xff] }
 0x311   : > { %4823 = vperm.xlu2 %6006, %v4773_v40  }
 0x312   : > { %1741 = vmatpush.msrb.mxu0 %v1604_v16  ;;  %1797 = vmatpush.msra.mxu1 %v7545_v17 }
 0x314   : > { %1742 = vmatpush.msrb.mxu0 %v1601_v35  ;;  %1798 = vmatpush.msra.mxu1 %v7551_v20  ;;  %v6096_v35 = vld [vmem:[%s9535_s5 + $0x190] sm:$0xff] }
 0x316   : > { %1743 = vmatpush.msrb.mxu0 %v1598_v4  ;;  %1799 = vmatpush.msra.mxu1 %v7557_v21 }
 0x318   : > { %1744 = vmatpush.msrb.mxu0 %v7496_v57  ;;  %1800 = vmatpush.msra.mxu1 %v7567_v25 }
 0x31a   : > { %1873 = vmatpush.msrb.mxu1 %v7573_v28  ;;  %1745 = vmatpush.msrb.mxu0 %v7485_v31  ;;  %v7628_v31 = vld [vmem:[%s9535_s5 + $0x50] sm:$0xff] }
 0x31c   : > { %1874 = vmatpush.msrb.mxu1 %v7580_v29  ;;  %1746 = vmatpush.msrb.mxu0 %v7480_v53  ;;  %v7609_v53 = vld [vmem:[%s9535_s5 + $0x68] sm:$0xff] }
 0x31e   : > { %1875 = vmatpush.msrb.mxu1 %v9577_v32  ;;  %1747 = vmatpush.msrb.mxu0 %v7475_v41  ;;  %v9580_v41 = vld [vmem:[#allocation16_spill] sm:$0xff] }
 0x320   : > { %1876 = vmatpush.msrb.mxu1 %v9578_v37  ;;  %1748 = vmatpush.msrb.mxu0 %v7470_v33  ;;  %v7602_v33 = vld [vmem:[%s9535_s5 + $0x70] sm:$0xff] }
 0x321   : > { %1749 = vmatmul.f32.vlgmr.msrb.gmra.mxu0 %v1706_v36 }
 0x322   : > { %1877 = vmatpush.msrb.mxu1 %v9579_v44  ;;  %1813 = vmatpush.msra.mxu0 %v7595_v48 }
 0x324   : > { %1878 = vmatpush.msrb.mxu1 %v9580_v41  ;;  %1814 = vmatpush.msra.mxu0 %v7602_v33 }
 0x326   : > { %1879 = vmatpush.msrb.mxu1 %v9581_v52  ;;  %1815 = vmatpush.msra.mxu0 %v7609_v53 }
 0x328   : > { %1880 = vmatpush.msrb.mxu1 %v9582_v58  ;;  %1816 = vmatpush.msra.mxu0 %v7616_v62 }
 0x32a   : > { %1817 = vmatpush.msra.mxu0 %v7622_v3 }
 0x32c   : > { %1818 = vmatpush.msra.mxu0 %v7628_v31 }
 0x32e   : > { %1819 = vmatpush.msra.mxu0 %v7634_v34 }
 0x330   : > { %1820 = vmatpush.msra.mxu0 %v7640_v43 }
 0x332   : > { %1893 = vmatpush.msrb.mxu0 %v7646_v38 }
 0x334   : > { %1894 = vmatpush.msrb.mxu0 %v7652_v5 }
 0x336   : > { %1895 = vmatpush.msrb.mxu0 %v7658_v11 }
 0x338   : > { %1896 = vmatpush.msrb.mxu0 %v7664_v15 }
 0x33a   : > { %1897 = vmatpush.msrb.mxu0 %v9567_v39  ;;  %v6086_v39 = vld [vmem:[%s9535_s5 + $0x88] sm:$0xff] }
 0x33c   : > { %1898 = vmatpush.msrb.mxu0 %v9568_v1  ;;  %v6087_v1 = vld [vmem:[%s9535_s5 + $0x110] sm:$0xff] }
 0x33e   : > { %1899 = vmatpush.msrb.mxu0 %v9569_v6  ;;  %v6088_v6 = vld [vmem:[%s9535_s5 + $0x80] sm:$0xff] }
 0x340   : > { %1900 = vmatpush.msrb.mxu0 %v7043_v9  ;;  %v6077_v9 = vld [vmem:[%s9535_s5 + $0xb8] sm:$0xff] }
 0x37e   : > { %v1730_v46 = vpop.f32.mrf.mxu1 }
 0x37f   : > { %v1731_v57 = vadd.f32 %v1730_v46, %v1698_v2  ;;  %v6103_v46 = vld [vmem:[%s9535_s5 + $0xd8] sm:$0xff]  ;;  %v6104_v2 = vld [vmem:[%s9535_s5 + $0xd0] sm:$0xff] }
 0x386   : > { %v1770_v42 = vpop.f32.mrf.mxu1 }
 0x39e   : > { %v1750_v61 = vpop.f32.mrf.mxu0 }
 0x39f   : > { %v1751_v63 = vadd.f32 %v1750_v61, %v1731_v57  ;;  %v1776_v57 = vld [vmem:[%s9467_s9 + $0x10] sm:$0xff]  ;;  %v6105_v61 = vld [vmem:[%s9535_s5 + $0xc8] sm:$0xff] }
 0x3a1   : > { %v1771_v27 = vadd.f32 %v1770_v42, %v1751_v63  ;;  %v6106_v42 = vld [vmem:[%s9535_s5 + $0xc0] sm:$0xff]  ;;  %v6107_v63 = vld [vmem:[%s9535_s5 + $0x1f8] sm:$0xff] }
 0x3a3   : > { %v7672_v4 = vadd.f32 %v1771_v27, %v9583_v60  ;;  %v6108_v27 = vld [vmem:[%s9535_s5 + $0x1f0] sm:$0xff] }
 0x3a5   : > { %5626 = vmatmul.msk.f32.vlgmr.msra.gmra.mxu1 %vm1003_vm4, %v7672_v4  ;;  %5627 = vmatmul.msk.f32.vlgmr.msra.gmra.mxu0 %vm1003_vm4, %v7672_v4 }
 0x3a6   : > { %5628 = vmatmul.msk.f32.vlgmr.msrb.gmra.mxu2 %vm1003_vm4, %v7672_v4  ;;  %5629 = vmatmul.msk.f32.vlgmr.msrb.gmra.mxu3 %vm1003_vm4, %v7672_v4 }
 0x3a7   : > { %1953 = vmatpush.msra.mxu1 %v7081_v47  ;;  %2165 = vmatpush.msrb.mxu2 %v7518_v7  ;;  %v6078_v47 = vld [vmem:[%s9535_s5 + $0xb0] sm:$0xff] }
 0x3a8   : > { %5984 = vmatpush.msrb.mxu3 %v7518_v7 }
 0x3a9   : > { %1954 = vmatpush.msra.mxu1 %v7094_v51  ;;  %2166 = vmatpush.msrb.mxu2 %v7524_v18  ;;  %v6079_v51 = vld [vmem:[%s9535_s5 + $0xa8] sm:$0xff] }
 0x3aa   : > { %5985 = vmatpush.msrb.mxu3 %v7524_v18 }
 0x3ab   : > { %1955 = vmatpush.msra.mxu1 %v7101_v55  ;;  %2167 = vmatpush.msrb.mxu2 %v7530_v22  ;;  %v6080_v55 = vld [vmem:[%s9535_s5 + $0xa0] sm:$0xff] }
 0x3ac   : > { %5986 = vmatpush.msrb.mxu3 %v7530_v22 }
 0x3ad   : > { %1956 = vmatpush.msra.mxu1 %v7112_v10  ;;  %5631 = vmatmul.msk.f32.vlgmr.msrb.gmra.mxu0 %vm1003_vm4, %v7672_v4  ;;  %v6081_v10 = vld [vmem:[%s9535_s5 + $0x128] sm:$0xff] }
 0x3ae   : > { %5630 = vmatmul.msk.f32.vlgmr.msrb.gmra.mxu1 %vm1003_vm4, %v7672_v4  ;;  %5632 = vmatmul.msk.f32.vlgmr.msra.gmra.mxu2 %vm1003_vm4, %v7672_v4 }
 0x3af   : > { %5633 = vmatmul.msk.f32.vlgmr.msra.gmra.mxu3 %vm1003_vm4, %v7672_v4  ;;  %1957 = vmatpush.msra.mxu1 %v7129_v14  ;;  %v6082_v14 = vld [vmem:[%s9535_s5 + $0x98] sm:$0xff] }
 0x3b0   : > { %2168 = vmatpush.msrb.mxu2 %v7539_v13  ;;  %5987 = vmatpush.msrb.mxu3 %v7539_v13 }
 0x3b1   : > { %1958 = vmatpush.msra.mxu1 %v7138_v19  ;;  %v6083_v19 = vld [vmem:[%s9535_s5 + $0x120] sm:$0xff] }
 0x3b2   : > { %2169 = vmatpush.msrb.mxu2 %v7545_v17  ;;  %5988 = vmatpush.msrb.mxu3 %v7545_v17 }
 0x3b3   : > { %1959 = vmatpush.msra.mxu1 %v7147_v56  ;;  %v6084_v56 = vld [vmem:[%s9535_s5 + $0x90] sm:$0xff] }
 0x3b4   : > { %2170 = vmatpush.msrb.mxu2 %v7551_v20  ;;  %5989 = vmatpush.msrb.mxu3 %v7551_v20 }
 0x3b5   : > { %1960 = vmatpush.msra.mxu1 %v7165_v23  ;;  %v6085_v23 = vld [vmem:[%s9535_s5 + $0x118] sm:$0xff] }
 0x3b6   : > { %5634 = vmatmul.msk.f32.vlgmr.msra.gmra.mxu1 %vm1003_vm4, %v7672_v4  ;;  %2171 = vmatpush.msrb.mxu2 %v7557_v21 }
 0x3b7   : > { %2247 = vmatpush.msrb.mxu1 %v6077_v9  ;;  %5990 = vmatpush.msrb.mxu3 %v7557_v21  ;;  %v1777_v9 = vld [vmem:[%s9467_s9 + $0x18] sm:$0xff] }
 0x3b8   : > { %2172 = vmatpush.msrb.mxu2 %v7567_v25 }
 0x3b9   : > { %2248 = vmatpush.msrb.mxu1 %v6078_v47  ;;  %5991 = vmatpush.msrb.mxu3 %v7567_v25  ;;  %v6109_v47 = vld [vmem:[%s9535_s5 + $0x1e8] sm:$0xff] }
 0x3ba   : > { %2329 = vmatpush.msra.mxu2 %v7573_v28 }
 0x3bb   : > { %2249 = vmatpush.msrb.mxu1 %v6079_v51  ;;  %2206 = vmatpush.msra.mxu3 %v7595_v48  ;;  %v6110_v51 = vld [vmem:[%s9535_s5 + $0x1e0] sm:$0xff] }
 0x3bc   : > { %2330 = vmatpush.msra.mxu2 %v7580_v29 }
 0x3bd   : > { %2250 = vmatpush.msrb.mxu1 %v6080_v55  ;;  %2207 = vmatpush.msra.mxu3 %v7602_v33  ;;  %v6111_v55 = vld [vmem:[%s9535_s5 + $0x1d8] sm:$0xff] }
 0x3be   : > { %2331 = vmatpush.msra.mxu2 %v6081_v10  ;;  %v6112_v10 = vld [vmem:[%s9535_s5 + $0x1d0] sm:$0xff] }
 0x3bf   : > { %2251 = vmatpush.msrb.mxu1 %v6082_v14  ;;  %2208 = vmatpush.msra.mxu3 %v7609_v53  ;;  %v1774_v53 = vld [vmem:[%s9467_s9] sm:$0xff] }
 0x3c0   : > { %2332 = vmatpush.msra.mxu2 %v6083_v19  ;;  %v1778_v14 = vld [vmem:[%s9467_s9 + $0x20] sm:$0xff]  ;;  %v6113_v19 = vld [vmem:[%s9535_s5 + $0x1c8] sm:$0xff] }
 0x3c1   : > { %2252 = vmatpush.msrb.mxu1 %v6084_v56  ;;  %2209 = vmatpush.msra.mxu3 %v7616_v62  ;;  %v6099_v62 = vld [vmem:[%s9535_s5 + $0xf8] sm:$0xff]  ;;  %v6114_v56 = vld [vmem:[%s9535_s5 + $0x1c0] sm:$0xff] }
 0x3c2   : > { %2333 = vmatpush.msra.mxu2 %v6085_v23  ;;  %v1779_v23 = vld [vmem:[%s9467_s9 + $0x28] sm:$0xff] }
 0x3c3   : > { %2253 = vmatpush.msrb.mxu1 %v6086_v39  ;;  %2210 = vmatpush.msra.mxu3 %v7622_v3  ;;  %v6100_v3 = vld [vmem:[%s9535_s5 + $0xf0] sm:$0xff] }
 0x3c4   : > { %2334 = vmatpush.msra.mxu2 %v6087_v1  ;;  %v1780_v39 = vld [vmem:[%s9467_s9 + $0x30] sm:$0xff]  ;;  %v1781_v1 = vld [vmem:[%s9467_s9 + $0x38] sm:$0xff] }
 0x3c5   : > { %2254 = vmatpush.msrb.mxu1 %v6088_v6  ;;  %2211 = vmatpush.msra.mxu3 %v7628_v31  ;;  %v1775_v31 = vld [vmem:[%s9467_s9 + $0x8] sm:$0xff]  ;;  %v2014_v6 = vpop.permute.xlu2 %2013 }
 0x3c6   : > { %2335 = vmatpush.msra.mxu2 %v6089_v0  ;;  %v2019_v0 = vpop.permute.xlu0 %2018 }
 0x3c7   : > { %2411 = vmatpush.msra.mxu1 %v6090_v45  ;;  %2212 = vmatpush.msra.mxu3 %v7634_v34  ;;  %v6101_v34 = vld [vmem:[%s9535_s5 + $0xe8] sm:$0xff] }
 0x3c8   : > { %2336 = vmatpush.msra.mxu2 %v6091_v26 }
 0x3c9   : > { %2412 = vmatpush.msra.mxu1 %v6092_v30  ;;  %2213 = vmatpush.msra.mxu3 %v7640_v43  ;;  %v6102_v43 = vld [vmem:[%s9535_s5 + $0xe0] sm:$0xff] }
 0x3cb   : > { %2413 = vmatpush.msra.mxu1 %v6093_v8 }
 0x3cd   : > { %2414 = vmatpush.msra.mxu1 %v6094_v59  ;;  %v7880_v45 = vpop.permute.xlu2 %2028 }
 0x3ce   : > { %v7882_v26 = vpop.permute.xlu0 %2033 }
 0x3cf   : > { %2415 = vmatpush.msra.mxu1 %v6095_v54 }
 0x3d1   : > { %2416 = vmatpush.msra.mxu1 %v6096_v35  ;;  %v6115_v35 = vld [vmem:[%s9535_s5 + $0x238] sm:$0xff] }
 0x3d3   : > { %2417 = vmatpush.msra.mxu1 %v6097_v49 }
 0x3d5   : > { %2418 = vmatpush.msra.mxu1 %v6098_v50  ;;  %v2004_v30 = vpop.permute.xlu2 %2003 }
 0x3d6   : > { %v2009_v49 = vpop.permute.xlu0 %2008 }
 0x422   : > { %v1802_v7 = vpop.f32.mrf.mxu1  ;;  %v1822_v18 = vpop.f32.mrf.mxu0 }
 0x423   : > { %v1966_v40 = vrot.slane %v1822_v18, 5 }
 0x425   : > { %v1986_v52 = vsel %vm979_vm0, %v1802_v7, %v1966_v40  ;;  %v6116_v7 = vld [vmem:[%s9535_s5 + $0x230] sm:$0xff] }
 0x429   : > { %v1842_v22 = vpop.f32.mrf.mxu2  ;;  %v1862_v12 = vpop.f32.mrf.mxu3 }
 0x42a   : > { %v1969_v16 = vrot.slane %v1842_v22, 2  ;;  %v1972_v17 = vrot.slane %v1862_v12, 7  ;;  %v1902_v20 = vpop.f32.mrf.mxu0  ;;  %v6117_v22 = vld [vmem:[%s9535_s5 + $0x228] sm:$0xff] }
 0x42b   : > { %v1882_v13 = vpop.f32.mrf.mxu1  ;;  %v1978_v28 = vrot.slane %v1902_v20, 1  ;;  %v6120_v20 = vld [vmem:[%s9535_s5 + $0x210] sm:$0xff] }
 0x42c   : > { %v1975_v21 = vrot.slane %v1882_v13, 4  ;;  %v1988_v25 = vsel %vm983_vm2, %v1969_v16, %v1972_v17  ;;  %v1987_v58 = vsel %vm981_vm1, %v1986_v52, %v1969_v16  ;;  %v6118_v13 = vld [vmem:[%s9535_s5 + $0x220] sm:$0xff]  ;;  %v6119_v16 = vld [vmem:[%s9535_s5 + $0x218] sm:$0xff] }
 0x42e   : > { %v1989_v48 = vsel %vm1311_vm6, %v1988_v25, %v1975_v21 }
 0x42f   : > { %v1990_v33 = vsel %vm1333_vm5, %v1989_v48, %v1978_v28 }
 0x431   : > { %v1922_v24 = vpop.f32.mrf.mxu2 }
 0x432   : > { %v1981_v29 = vrot.slane %v1922_v24, 6  ;;  %v1942_v32 = vpop.f32.mrf.mxu3  ;;  %v6121_v24 = vld [vmem:[%s9535_s5 + $0x208] sm:$0xff] }
 0x433   : > { %v1984_v36 = vrot.slane %v1942_v32, 3  ;;  %v1962_v37 = vpop.f32.mrf.mxu1 }
 0x434   : > { %5635 = vmatpush.msk.msra.mxu0 %vm979_vm0, %v1962_v37  ;;  %v1991_v44 = vsel %vm1296_vm7, %v1978_v28, %v1981_v29  ;;  %v6122_v28 = vld [vmem:[%s9535_s5 + $0x200] sm:$0xff] }
 0x435   : > { %v1992_v41 = vsel %vm999_vm3, %v1991_v44, %v1984_v36  ;;  %v6124_v44 = vld [vmem:[%s9535_s5 + $0x150] sm:$0xff] }
 0x436   : > { %2082 = vmatpush.msra.mxu0 %v1992_v41 }
 0x438   : > { %2083 = vmatpush.msra.mxu0 %v1990_v33  ;;  %v6126_v33 = vld [vmem:[%s9535_s5 + $0x140] sm:$0xff] }
 0x43a   : > { %2084 = vmatpush.msra.mxu0 %v1987_v58 }
 0x43b   : > { %5636 = vmatmul.msk.f32.vlgmr.msra.gmra.mxu0 %vm2041_vm10, %v1774_v53 }
 0x43c   : > { %2288 = vmatpush.msrb.mxu0 %v6099_v62 }
 0x43e   : > { %2289 = vmatpush.msrb.mxu0 %v6100_v3 }
 0x440   : > { %2290 = vmatpush.msrb.mxu0 %v6101_v34 }
 0x442   : > { %2291 = vmatpush.msrb.mxu0 %v6102_v43 }
 0x443   : > { %5637 = vmatmul.msk.f32.gmra.mxu0 %vm2041_vm10, %v1775_v31 }
 0x444   : > { %2292 = vmatpush.msrb.mxu0 %v6103_v46 }
 0x446   : > { %2293 = vmatpush.msrb.mxu0 %v6104_v2 }
 0x448   : > { %2294 = vmatpush.msrb.mxu0 %v6105_v61 }
 0x44a   : > { %2295 = vmatpush.msrb.mxu0 %v6106_v42 }
 0x44b   : > { %5638 = vmatmul.msk.f32.gmra.mxu0 %vm2041_vm10, %v1776_v57 }
 0x44c   : > { %2452 = vmatpush.msra.mxu0 %v6107_v63 }
 0x44e   : > { %2453 = vmatpush.msra.mxu0 %v6108_v27 }
 0x450   : > { %2454 = vmatpush.msra.mxu0 %v6109_v47 }
 0x452   : > { %2455 = vmatpush.msra.mxu0 %v6110_v51 }
 0x453   : > { %5639 = vmatmul.msk.f32.gmra.mxu0 %vm2041_vm10, %v1777_v9 }
 0x454   : > { %2456 = vmatpush.msra.mxu0 %v6111_v55 }
 0x456   : > { %2457 = vmatpush.msra.mxu0 %v6112_v10 }
 0x458   : > { %2458 = vmatpush.msra.mxu0 %v6113_v19 }
 0x45a   : > { %2459 = vmatpush.msra.mxu0 %v6114_v56 }
 0x45b   : > { %5640 = vmatmul.msk.f32.gmra.mxu0 %vm2041_vm10, %v1778_v14 }
 0x463   : > { %5641 = vmatmul.msk.f32.gmra.mxu0 %vm2041_vm10, %v1779_v23 }
 0x46b   : > { %5642 = vmatmul.msk.f32.gmra.mxu0 %vm2041_vm10, %v1780_v39 }
 0x473   : > { %5643 = vmatmul.msk.f32.gmra.mxu0 %vm2041_vm10, %v1781_v1 }
 0x4b8   : > { %v2086_v8 = vpop.f32.mrf.mxu0 }
 0x4b9   : > { %v2087_v59 = vadd.f32 %v2086_v8, %v2004_v30 }
 0x4bb   : > { %v7884_v54 = vmax.f32 %v2087_v59, 0.0 }
 0x4bd   : > { %5644 = vmatmul.msk.f32.vlgmr.msrb.gmra.mxu2 %vm1003_vm4, %v7884_v54  ;;  %5660 = vmatmul.msk.f32.vlgmr.msrb.gmra.mxu1 %vm1003_vm4, %v7884_v54 }
 0x4be   : > { %5668 = vmatmul.msk.f32.vlgmr.msrb.gmra.mxu0 %vm1003_vm4, %v7884_v54  ;;  %2493 = vmatpush.msrb.mxu2 %v6115_v35 }
 0x4c0   : > { %v2089_v50 = vpop.f32.mrf.mxu0  ;;  %2494 = vmatpush.msrb.mxu2 %v6116_v7 }
 0x4c1   : > { %v2090_v18 = vadd.f32 %v2089_v50, %v2009_v49 }
 0x4c2   : > { %2495 = vmatpush.msrb.mxu2 %v6117_v22 }
 0x4c3   : > { %v7901_v12 = vmax.f32 %v2090_v18, 0.0 }
 0x4c4   : > { %2496 = vmatpush.msrb.mxu2 %v6118_v13 }
 0x4c5   : > { %5645 = vmatmul.msk.f32.gmra.mxu2 %vm1003_vm4, %v7901_v12  ;;  %5661 = vmatmul.msk.f32.gmra.mxu1 %vm1003_vm4, %v7901_v12 }
 0x4c6   : > { %5669 = vmatmul.msk.f32.gmra.mxu0 %vm1003_vm4, %v7901_v12  ;;  %2497 = vmatpush.msrb.mxu2 %v6119_v16 }
 0x4c8   : > { %v2092_v17 = vpop.f32.mrf.mxu0  ;;  %2498 = vmatpush.msrb.mxu2 %v6120_v20 }
 0x4c9   : > { %v2093_v21 = vadd.f32 %v2092_v17, %v2014_v6 }
 0x4ca   : > { %2499 = vmatpush.msrb.mxu2 %v6121_v24 }
 0x4cb   : > { %v7921_v25 = vmax.f32 %v2093_v21, 0.0 }
 0x4cc   : > { %2500 = vmatpush.msrb.mxu2 %v6122_v28 }
 0x4cd   : > { %5646 = vmatmul.msk.f32.vlgmr.msrb.gmra.mxu3 %vm1003_vm4, %v7921_v25  ;;  %5662 = vmatmul.msk.f32.gmra.mxu1 %vm1003_vm4, %v7921_v25 }
 0x4ce   : > { %5670 = vmatmul.msk.f32.gmra.mxu0 %vm1003_vm4, %v7921_v25  ;;  %5676 = vmatmul.msk.f32.vlgmr.msra.gmra.mxu2 %vm1003_vm4, %v7884_v54 }
 0x4cf   : > { %2370 = vmatpush.msrb.mxu3 %v7646_v38  ;;  %v2024_v38 = vpop.permute.xlu1 %2023 }
 0x4d0   : > { %v2095_v29 = vpop.f32.mrf.mxu0 }
 0x4d1   : > { %v2096_v32 = vadd.f32 %v2095_v29, %v2019_v0  ;;  %2371 = vmatpush.msrb.mxu3 %v7652_v5 }
 0x4d3   : > { %v7936_v36 = vmax.f32 %v2096_v32, 0.0  ;;  %2372 = vmatpush.msrb.mxu3 %v7658_v11  ;;  %v6123_v11 = vld [vmem:[%s9535_s5 + $0x158] sm:$0xff] }
 0x4d5   : > { %5647 = vmatmul.msk.f32.gmra.mxu3 %vm1003_vm4, %v7936_v36  ;;  %5663 = vmatmul.msk.f32.gmra.mxu1 %vm1003_vm4, %v7936_v36 }
 0x4d6   : > { %5671 = vmatmul.msk.f32.gmra.mxu0 %vm1003_vm4, %v7936_v36  ;;  %5677 = vmatmul.msk.f32.gmra.mxu2 %vm1003_vm4, %v7901_v12 }
 0x4d7   : > { %2373 = vmatpush.msrb.mxu3 %v7664_v15  ;;  %v6125_v15 = vld [vmem:[%s9535_s5 + $0x148] sm:$0xff]  ;;  %v2039_v3 = vpop.permute.xlu1 %2038 }
 0x4d8   : > { %v2098_v5 = vpop.f32.mrf.mxu0 }
 0x4d9   : > { %v2099_v37 = vadd.f32 %v2098_v5, %v2024_v38  ;;  %2374 = vmatpush.msrb.mxu3 %v6123_v11 }
 0x4db   : > { %v7951_v40 = vmax.f32 %v2099_v37, 0.0  ;;  %2375 = vmatpush.msrb.mxu3 %v6124_v44 }
 0x4dd   : > { %5648 = vmatmul.msk.f32.gmra.mxu3 %vm1003_vm4, %v7951_v40  ;;  %5664 = vmatmul.msk.f32.gmra.mxu1 %vm1003_vm4, %v7951_v40 }
 0x4de   : > { %5672 = vmatmul.msk.f32.gmra.mxu0 %vm1003_vm4, %v7951_v40  ;;  %5678 = vmatmul.msk.f32.gmra.mxu2 %vm1003_vm4, %v7921_v25 }
 0x4df   : > { %2376 = vmatpush.msrb.mxu3 %v6125_v15 }
 0x4e0   : > { %v2101_v48 = vpop.f32.mrf.mxu0 }
 0x4e1   : > { %v2102_v41 = vadd.f32 %v2101_v48, %v7880_v45  ;;  %2377 = vmatpush.msrb.mxu3 %v6126_v33 }
 0x4e3   : > { %v7971_v52 = vmax.f32 %v2102_v41, 0.0 }
 0x4e5   : > { %5649 = vmatmul.msk.f32.gmra.mxu3 %vm1003_vm4, %v7971_v52  ;;  %5665 = vmatmul.msk.f32.gmra.mxu1 %vm1003_vm4, %v7971_v52 }
 0x4e6   : > { %5673 = vmatmul.msk.f32.gmra.mxu0 %vm1003_vm4, %v7971_v52  ;;  %5679 = vmatmul.msk.f32.gmra.mxu2 %vm1003_vm4, %v7936_v36 }
 0x4e8   : > { %v2104_v53 = vpop.f32.mrf.mxu0 }
 0x4e9   : > { %v2105_v58 = vadd.f32 %v2104_v53, %v7882_v26 }
 0x4eb   : > { %v7982_v62 = vmax.f32 %v2105_v58, 0.0 }
 0x4ed   : > { %5650 = vmatmul.msk.f32.gmra.mxu3 %vm1003_vm4, %v7982_v62  ;;  %5666 = vmatmul.msk.f32.gmra.mxu1 %vm1003_vm4, %v7982_v62 }
 0x4ee   : > { %5674 = vmatmul.msk.f32.gmra.mxu0 %vm1003_vm4, %v7982_v62  ;;  %5680 = vmatmul.msk.f32.gmra.mxu2 %vm1003_vm4, %v7951_v40 }
 0x4f0   : > { %v2107_v31 = vpop.f32.mrf.mxu0 }
 0x4f1   : > { %v2108_v34 = vadd.f32 %v2107_v31, %v2039_v3 }
 0x4f3   : > { %v7992_v43 = vmax.f32 %v2108_v34, 0.0 }
 0x4f5   : > { %5651 = vmatmul.msk.f32.gmra.mxu3 %vm1003_vm4, %v7992_v43  ;;  %5667 = vmatmul.msk.f32.gmra.mxu1 %vm1003_vm4, %v7992_v43 }
 0x4f6   : > { %5675 = vmatmul.msk.f32.gmra.mxu0 %vm1003_vm4, %v7992_v43  ;;  %5681 = vmatmul.msk.f32.gmra.mxu2 %vm1003_vm4, %v7971_v52 }
 0x4fd   : > { %5652 = vmatmul.msk.f32.vlgmr.msra.gmra.mxu3 %vm1003_vm4, %v7884_v54  ;;  %5692 = vmatmul.msk.f32.vlgmr.msra.gmra.mxu1 %vm1003_vm4, %v7884_v54 }
 0x4fe   : > { %5682 = vmatmul.msk.f32.gmra.mxu2 %vm1003_vm4, %v7982_v62  ;;  %5700 = vmatmul.msk.f32.vlgmr.msra.gmra.mxu0 %vm1003_vm4, %v7884_v54 }
 0x505   : > { %5653 = vmatmul.msk.f32.gmra.mxu3 %vm1003_vm4, %v7901_v12  ;;  %5693 = vmatmul.msk.f32.gmra.mxu1 %vm1003_vm4, %v7901_v12 }
 0x506   : > { %5683 = vmatmul.msk.f32.gmra.mxu2 %vm1003_vm4, %v7992_v43  ;;  %5701 = vmatmul.msk.f32.gmra.mxu0 %vm1003_vm4, %v7901_v12 }
 0x50d   : > { %5654 = vmatmul.msk.f32.gmra.mxu3 %vm1003_vm4, %v7921_v25  ;;  %5694 = vmatmul.msk.f32.gmra.mxu1 %vm1003_vm4, %v7921_v25 }
 0x50e   : > { %5702 = vmatmul.msk.f32.gmra.mxu0 %vm1003_vm4, %v7921_v25  ;;  %5708 = vmatmul.msk.f32.vlgmr.msrb.gmra.mxu2 %vm1003_vm4, %v7884_v54 }
 0x515   : > { %5655 = vmatmul.msk.f32.gmra.mxu3 %vm1003_vm4, %v7936_v36  ;;  %5695 = vmatmul.msk.f32.gmra.mxu1 %vm1003_vm4, %v7936_v36 }
 0x516   : > { %5703 = vmatmul.msk.f32.gmra.mxu0 %vm1003_vm4, %v7936_v36  ;;  %5709 = vmatmul.msk.f32.gmra.mxu2 %vm1003_vm4, %v7901_v12 }
 0x51d   : > { %5656 = vmatmul.msk.f32.gmra.mxu3 %vm1003_vm4, %v7951_v40  ;;  %5696 = vmatmul.msk.f32.gmra.mxu1 %vm1003_vm4, %v7951_v40 }
 0x51e   : > { %5704 = vmatmul.msk.f32.gmra.mxu0 %vm1003_vm4, %v7951_v40  ;;  %5710 = vmatmul.msk.f32.gmra.mxu2 %vm1003_vm4, %v7921_v25 }
 0x525   : > { %5657 = vmatmul.msk.f32.gmra.mxu3 %vm1003_vm4, %v7971_v52  ;;  %5697 = vmatmul.msk.f32.gmra.mxu1 %vm1003_vm4, %v7971_v52 }
 0x526   : > { %5705 = vmatmul.msk.f32.gmra.mxu0 %vm1003_vm4, %v7971_v52  ;;  %5711 = vmatmul.msk.f32.gmra.mxu2 %vm1003_vm4, %v7936_v36 }
 0x52d   : > { %5658 = vmatmul.msk.f32.gmra.mxu3 %vm1003_vm4, %v7982_v62  ;;  %5698 = vmatmul.msk.f32.gmra.mxu1 %vm1003_vm4, %v7982_v62 }
 0x52e   : > { %5706 = vmatmul.msk.f32.gmra.mxu0 %vm1003_vm4, %v7982_v62  ;;  %5712 = vmatmul.msk.f32.gmra.mxu2 %vm1003_vm4, %v7951_v40 }
 0x535   : > { %5659 = vmatmul.msk.f32.gmra.mxu3 %vm1003_vm4, %v7992_v43  ;;  %5699 = vmatmul.msk.f32.gmra.mxu1 %vm1003_vm4, %v7992_v43 }
 0x536   : > { %5707 = vmatmul.msk.f32.gmra.mxu0 %vm1003_vm4, %v7992_v43  ;;  %5713 = vmatmul.msk.f32.gmra.mxu2 %vm1003_vm4, %v7971_v52 }
 0x53a   : > { %v8066_v46 = vpop.f32.mrf.mxu1 }
 0x53b   : > { %v2297_v2 = vpop.f32.mrf.mxu0 }
 0x53d   : > { %5684 = vmatmul.msk.f32.vlgmr.msrb.gmra.mxu3 %vm1003_vm4, %v7884_v54 }
 0x53e   : > { %5714 = vmatmul.msk.f32.gmra.mxu2 %vm1003_vm4, %v7982_v62 }
 0x540   : > { %v8072_v57 = vpop.f32.mrf.mxu2 }
 0x542   : > { %v2259_v61 = vpop.f32.mrf.mxu1 }
 0x543   : > { %v2300_v42 = vpop.f32.mrf.mxu0 }
 0x545   : > { %5685 = vmatmul.msk.f32.gmra.mxu3 %vm1003_vm4, %v7901_v12 }
 0x546   : > { %5715 = vmatmul.msk.f32.gmra.mxu2 %vm1003_vm4, %v7992_v43 }
 0x548   : > { %v8078_v63 = vpop.f32.mrf.mxu2 }
 0x54a   : > { %v2262_v27 = vpop.f32.mrf.mxu1 }
 0x54b   : > { %v2303_v9 = vpop.f32.mrf.mxu0 }
 0x54d   : > { %5686 = vmatmul.msk.f32.gmra.mxu3 %vm1003_vm4, %v7921_v25 }
 0x550   : > { %v8082_v47 = vpop.f32.mrf.mxu3 }
 0x551   : > { %v8084_v51 = vpop.f32.mrf.mxu2 }
 0x552   : > { %v2265_v55 = vpop.f32.mrf.mxu1 }
 0x553   : > { %v2306_v10 = vpop.f32.mrf.mxu0 }
 0x555   : > { %5687 = vmatmul.msk.f32.gmra.mxu3 %vm1003_vm4, %v7936_v36 }
 0x558   : > { %v8088_v14 = vpop.f32.mrf.mxu3 }
 0x559   : > { %v8090_v19 = vpop.f32.mrf.mxu2 }
 0x55a   : > { %v2268_v56 = vpop.f32.mrf.mxu1 }
 0x55b   : > { %v2309_v23 = vpop.f32.mrf.mxu0 }
 0x55d   : > { %5688 = vmatmul.msk.f32.gmra.mxu3 %vm1003_vm4, %v7951_v40 }
 0x560   : > { %v8094_v39 = vpop.f32.mrf.mxu3 }
 0x561   : > { %v8096_v1 = vpop.f32.mrf.mxu2 }
 0x562   : > { %v2271_v6 = vpop.f32.mrf.mxu1 }
 0x563   : > { %v2312_v0 = vpop.f32.mrf.mxu0 }
 0x565   : > { %5689 = vmatmul.msk.f32.gmra.mxu3 %vm1003_vm4, %v7971_v52 }
 0x568   : > { %v8100_v45 = vpop.f32.mrf.mxu3 }
 0x569   : > { %v8102_v26 = vpop.f32.mrf.mxu2 }
 0x56a   : > { %v2274_v30 = vpop.f32.mrf.mxu1 }
 0x56b   : > { %v2315_v8 = vpop.f32.mrf.mxu0 }
 0x56d   : > { %5690 = vmatmul.msk.f32.gmra.mxu3 %vm1003_vm4, %v7982_v62 }
 0x570   : > { %v8106_v59 = vpop.f32.mrf.mxu3 }
 0x571   : > { %v8108_v54 = vpop.f32.mrf.mxu2 }
 0x572   : > { %v2277_v35 = vpop.f32.mrf.mxu1 }
 0x573   : > { %v2318_v49 = vpop.f32.mrf.mxu0 }
 0x574   : > { %2579 = vmatpush.msrb.mxu1 %v2318_v49  ;;  %v2120_v49 = vld [vmem:[%s9469_s11 + $0x10] sm:$0xff] }
 0x575   : > { %5691 = vmatmul.msk.f32.gmra.mxu3 %vm1003_vm4, %v7992_v43 }
 0x576   : > { %2580 = vmatpush.msrb.mxu1 %v2315_v8  ;;  %v2127_v8 = vld [vmem:[%s9469_s11 + $0x48] sm:$0xff] }
 0x578   : > { %2581 = vmatpush.msrb.mxu1 %v2312_v0  ;;  %v8112_v50 = vpop.f32.mrf.mxu3 }
 0x579   : > { %v8114_v7 = vpop.f32.mrf.mxu2 }
 0x57a   : > { %2582 = vmatpush.msrb.mxu1 %v2309_v23  ;;  %v8116_v22 = vpop.f32.mrf.mxu1  ;;  %v2123_v23 = vld [vmem:[%s9469_s11 + $0x28] sm:$0xff] }
 0x57b   : > { %v2461_v18 = vpop.f32.mrf.mxu0 }
 0x57c   : > { %2583 = vmatpush.msrb.mxu1 %v2306_v10  ;;  %v2129_v10 = vld [vmem:[%s9469_s11 + $0x58] sm:$0x3] }
 0x57e   : > { %2584 = vmatpush.msrb.mxu1 %v2303_v9 }
 0x580   : > { %2585 = vmatpush.msrb.mxu1 %v2300_v42  ;;  %v2215_v12 = vpop.f32.mrf.mxu3 }
 0x581   : > { %v8118_v13 = vpop.f32.mrf.mxu2 }
 0x582   : > { %2586 = vmatpush.msrb.mxu1 %v2297_v2  ;;  %v8120_v17 = vpop.f32.mrf.mxu1 }
 0x583   : > { %v2464_v16 = vpop.f32.mrf.mxu0 }
 0x584   : > { %2587 = vmatpush.msrb.mxu1 %v2277_v35  ;;  %v2132_v35 = vld [vmem:[%s9469_s11 + $0x70] sm:$0x3] }
 0x586   : > { %2588 = vmatpush.msrb.mxu1 %v2274_v30  ;;  %v2126_v30 = vld [vmem:[%s9469_s11 + $0x40] sm:$0xff] }
 0x588   : > { %2589 = vmatpush.msrb.mxu1 %v2271_v6  ;;  %v2218_v20 = vpop.f32.mrf.mxu3 }
 0x589   : > { %v8122_v21 = vpop.f32.mrf.mxu2 }
 0x58a   : > { %2590 = vmatpush.msrb.mxu1 %v2268_v56  ;;  %v2426_v28 = vpop.f32.mrf.mxu1  ;;  %v2118_v56 = vld [vmem:[%s9469_s11] sm:$0xff] }
 0x58b   : > { %v2467_v24 = vpop.f32.mrf.mxu0 }
 0x58c   : > { %2591 = vmatpush.msrb.mxu1 %v2265_v55 }
 0x58e   : > { %2592 = vmatpush.msrb.mxu1 %v2262_v27  ;;  %v2124_v27 = vld [vmem:[%s9469_s11 + $0x30] sm:$0xff] }
 0x590   : > { %2593 = vmatpush.msrb.mxu1 %v2259_v61  ;;  %v2221_v25 = vpop.f32.mrf.mxu3 }
 0x591   : > { %v8124_v29 = vpop.f32.mrf.mxu2 }
 0x592   : > { %2594 = vmatpush.msrb.mxu1 %v8066_v46  ;;  %v2429_v5 = vpop.f32.mrf.mxu1  ;;  %v2119_v46 = vld [vmem:[%s9469_s11 + $0x8] sm:$0xff] }
 0x593   : > { %v2470_v32 = vpop.f32.mrf.mxu0  ;;  %2595 = vmatmul.f32.vlgmr.msrb.gmra.mxu1 %v2119_v46 }
 0x598   : > { %v2224_v36 = vpop.f32.mrf.mxu3 }
 0x599   : > { %v8127_v38 = vpop.f32.mrf.mxu2 }
 0x59a   : > { %v2432_v15 = vpop.f32.mrf.mxu1 }
 0x59b   : > { %v2473_v37 = vpop.f32.mrf.mxu0  ;;  %2598 = vmatmul.f32.gmra.mxu1 %v2124_v27  ;;  %v5728_v27 = vld [vmem:[%s9585_s27 + $0x58] sm:$0xff] }
 0x5a0   : > { %v2227_v11 = vpop.f32.mrf.mxu3 }
 0x5a1   : > { %v2508_v40 = vpop.f32.mrf.mxu2 }
 0x5a2   : > { %v2435_v52 = vpop.f32.mrf.mxu1 }
 0x5a3   : > { %v2476_v44 = vpop.f32.mrf.mxu0  ;;  %2601 = vmatmul.f32.gmra.mxu1 %v2129_v10  ;;  %v5727_v10 = vld [vmem:[%s9585_s27 + $0x50] sm:$0xff] }
 0x5a8   : > { %v2230_v48 = vpop.f32.mrf.mxu3 }
 0x5a9   : > { %v2511_v41 = vpop.f32.mrf.mxu2 }
 0x5aa   : > { %v2438_v31 = vpop.f32.mrf.mxu1 }
 0x5ab   : > { %v2479_v33 = vpop.f32.mrf.mxu0 }
 0x5b0   : > { %v2233_v53 = vpop.f32.mrf.mxu3 }
 0x5b1   : > { %v2514_v58 = vpop.f32.mrf.mxu2 }
 0x5b2   : > { %v2441_v61 = vpop.f32.mrf.mxu1 }
 0x5b3   : > { %v2482_v62 = vpop.f32.mrf.mxu0 }
 0x5b4   : > { %2631 = vmatpush.msra.mxu1 %v2482_v62  ;;  %v5740_v62 = vld [vmem:[%s9585_s27 + $0xa8] sm:$0xff] }
 0x5b6   : > { %2632 = vmatpush.msra.mxu1 %v2479_v33  ;;  %v5741_v33 = vld [vmem:[%s9585_s27 + $0xb0] sm:$0xff] }
 0x5b8   : > { %2633 = vmatpush.msra.mxu1 %v2476_v44  ;;  %v2236_v3 = vpop.f32.mrf.mxu3 }
 0x5b9   : > { %v2517_v34 = vpop.f32.mrf.mxu2  ;;  %2553 = vmatpush.msra.mxu3 %v2236_v3 }
 0x5ba   : > { %2634 = vmatpush.msra.mxu1 %v2473_v37  ;;  %v2755_v37 = vld [vmem:[%s9584_s2 + $0x38] sm:$0xff] }
 0x5bb   : > { %2554 = vmatpush.msra.mxu3 %v2233_v53  ;;  %v2753_v53 = vld [vmem:[%s9585_s27 + $0x28] sm:$0xff] }
 0x5bc   : > { %2635 = vmatpush.msra.mxu1 %v2470_v32 }
 0x5bd   : > { %2555 = vmatpush.msra.mxu3 %v2230_v48  ;;  %v2754_v48 = vld [vmem:[%s9585_s27 + $0x30] sm:$0xff] }
 0x5be   : > { %2636 = vmatpush.msra.mxu1 %v2467_v24  ;;  %v2537_v24 = vpop.permute.xlu2 %2536 }
 0x5bf   : > { %2556 = vmatpush.msra.mxu3 %v2227_v11  ;;  %v5732_v11 = vld [vmem:[%s9585_s27 + $0x78] sm:$0xff] }
 0x5c0   : > { %2637 = vmatpush.msra.mxu1 %v2464_v16  ;;  %v2379_v43 = vpop.f32.mrf.mxu3  ;;  %2802 = vmatpush.msra.mxu2 %v5732_v11 }
 0x5c1   : > { %v2520_v2 = vpop.f32.mrf.mxu2  ;;  %2557 = vmatpush.msra.mxu3 %v2224_v36 }
 0x5c2   : > { %2638 = vmatpush.msra.mxu1 %v2461_v18 }
 0x5c3   : > { %2558 = vmatpush.msra.mxu3 %v2221_v25 }
 0x5c4   : > { %2639 = vmatpush.msra.mxu1 %v2441_v61 }
 0x5c5   : > { %2559 = vmatpush.msra.mxu3 %v2218_v20 }
 0x5c6   : > { %2640 = vmatpush.msra.mxu1 %v2438_v31  ;;  %v2752_v31 = vld [vmem:[%s9585_s27 + $0x20] sm:$0xff] }
 0x5c7   : > { %2560 = vmatpush.msra.mxu3 %v2215_v12 }
 0x5c8   : > { %2641 = vmatpush.msra.mxu1 %v2435_v52  ;;  %v2382_v42 = vpop.f32.mrf.mxu3 }
 0x5c9   : > { %v2523_v9 = vpop.f32.mrf.mxu2  ;;  %2561 = vmatpush.msra.mxu3 %v8112_v50 }
 0x5ca   : > { %2642 = vmatpush.msra.mxu1 %v2432_v15  ;;  %2665 = vmatpush.msrb.mxu0 %v2523_v9  ;;  %v5738_v9 = vld [vmem:[%s9585_s27 + $0x98] sm:$0xff] }
 0x5cb   : > { %2562 = vmatpush.msra.mxu3 %v8106_v59  ;;  %v2131_v59 = vld [vmem:[%s9469_s11 + $0x68] sm:$0x3] }
 0x5cc   : > { %2643 = vmatpush.msra.mxu1 %v2429_v5  ;;  %2666 = vmatpush.msrb.mxu0 %v2520_v2 }
 0x5cd   : > { %2563 = vmatpush.msra.mxu3 %v8100_v45  ;;  %v2122_v45 = vld [vmem:[%s9469_s11 + $0x20] sm:$0xff] }
 0x5ce   : > { %2644 = vmatpush.msra.mxu1 %v2426_v28  ;;  %2667 = vmatpush.msrb.mxu0 %v2517_v34  ;;  %v5729_v34 = vld [vmem:[%s9585_s27 + $0x60] sm:$0xff] }
 0x5cf   : > { %2564 = vmatpush.msra.mxu3 %v8094_v39 }
 0x5d0   : > { %2645 = vmatpush.msra.mxu1 %v8120_v17  ;;  %2668 = vmatpush.msrb.mxu0 %v2514_v58  ;;  %v2385_v55 = vpop.f32.mrf.mxu3  ;;  %v5730_v58 = vld [vmem:[%s9585_s27 + $0x68] sm:$0xff] }
 0x5d1   : > { %2565 = vmatpush.msra.mxu3 %v8088_v14 }
 0x5d2   : > { %2646 = vmatpush.msra.mxu1 %v8116_v22  ;;  %2669 = vmatpush.msrb.mxu0 %v2511_v41  ;;  %v5731_v41 = vld [vmem:[%s9585_s27 + $0x70] sm:$0xff] }
 0x5d3   : > { %2566 = vmatpush.msra.mxu3 %v8082_v47  ;;  %2803 = vmatpush.msra.mxu2 %v5731_v41 }
 0x5d4   : > { %2670 = vmatpush.msrb.mxu0 %v2508_v40  ;;  %v5742_v40 = vld [vmem:[%s9585_s27 + $0xb8] sm:$0xff] }
 0x5d5   : > { %2567 = vmatpush.msra.mxu3 %v8078_v63  ;;  %v2128_v63 = vld [vmem:[%s9469_s11 + $0x50] sm:$0x3]  ;;  %2834 = vmatpush.msrb.mxu1 %v5742_v40 }
 0x5d6   : > { %2671 = vmatpush.msrb.mxu0 %v8127_v38  ;;  %2804 = vmatpush.msra.mxu2 %v5730_v58 }
 0x5d7   : > { %2568 = vmatpush.msra.mxu3 %v8072_v57  ;;  %v2121_v57 = vld [vmem:[%s9469_s11 + $0x18] sm:$0xff]  ;;  %2835 = vmatpush.msrb.mxu1 %v5741_v33 }
 0x5d8   : > { %2672 = vmatpush.msrb.mxu0 %v8124_v29  ;;  %v2388_v14 = vpop.f32.mrf.mxu3  ;;  %2569 = vmatmul.f32.vlgmr.msra.gmra.mxu3 %v2118_v56  ;;  %v5737_v56 = vld [vmem:[%s9585_s27 + $0x90] sm:$0xff] }
 0x5d9   : > { %2647 = vmatmul.f32.vlgmr.msra.gmra.mxu1 %v2121_v57  ;;  %5716 = vmatmul.msk.f32.vlgmr.msrb.gmra.mxu0 %vm1003_vm4, %v2122_v45 }
 0x5da   : > { %2836 = vmatpush.msrb.mxu1 %v5740_v62  ;;  %2805 = vmatpush.msra.mxu2 %v5729_v34 }
 0x5dc   : > { %2806 = vmatpush.msra.mxu2 %v5728_v27 }
 0x5de   : > { %2807 = vmatpush.msra.mxu2 %v5727_v10 }
 0x5e0   : > { %v2391_v47 = vpop.f32.mrf.mxu3  ;;  %2572 = vmatmul.f32.gmra.mxu3 %v2123_v23  ;;  %v5726_v23 = vld [vmem:[%s9585_s27 + $0x48] sm:$0xff] }
 0x5e1   : > { %2650 = vmatmul.f32.gmra.mxu1 %v2126_v30  ;;  %5717 = vmatmul.msk.f32.gmra.mxu0 %vm1003_vm4, %v2127_v8  ;;  %v5752_v30 = vld [vmem:[%s9585_s27 + $0xf8] sm:$0xff]  ;;  %v5751_v8 = vld [vmem:[%s9585_s27 + $0xf0] sm:$0xff] }
 0x5e2   : > { %2808 = vmatpush.msra.mxu2 %v5726_v23 }
 0x5e8   : > { %v2394_v39 = vpop.f32.mrf.mxu3  ;;  %2575 = vmatmul.f32.gmra.mxu3 %v2128_v63  ;;  %v2748_v63 = vld [vmem:[%s9585_s27] sm:$0xff] }
 0x5e9   : > { %2653 = vmatmul.f32.gmra.mxu1 %v2131_v59  ;;  %5718 = vmatmul.msk.f32.gmra.mxu0 %vm1003_vm4, %v2132_v35  ;;  %v5750_v35 = vld [vmem:[%s9585_s27 + $0xe8] sm:$0xff] }
 0x5f0   : > { %v2397_v6 = vpop.f32.mrf.mxu3 }
 0x5f8   : > { %v2400_v0 = vpop.f32.mrf.mxu3 }
 0x5f9   : > { %2605 = vmatpush.msrb.mxu3 %v2400_v0 }
 0x5fb   : > { %2606 = vmatpush.msrb.mxu3 %v2397_v6  ;;  %v5735_v6 = vld [vmem:[%s9585_s27 + $0x80] sm:$0xff] }
 0x5fd   : > { %2607 = vmatpush.msrb.mxu3 %v2394_v39  ;;  %v5725_v39 = vld [vmem:[%s9585_s27 + $0x40] sm:$0xff] }
 0x5fe   : > { %2809 = vmatpush.msra.mxu2 %v5725_v39  ;;  %v8338_v39 = vld [vmem:[%s9587_s22] sm:$0xff] }
 0x5ff   : > { %2608 = vmatpush.msrb.mxu3 %v2391_v47  ;;  %v5736_v47 = vld [vmem:[%s9585_s27 + $0x88] sm:$0xff] }
 0x601   : > { %2609 = vmatpush.msrb.mxu3 %v2388_v14  ;;  %v2749_v14 = vld [vmem:[%s9585_s27 + $0x8] sm:$0xff] }
 0x603   : > { %2610 = vmatpush.msrb.mxu3 %v2385_v55  ;;  %v2750_v55 = vld [vmem:[%s9585_s27 + $0x10] sm:$0xff] }
 0x605   : > { %2611 = vmatpush.msrb.mxu3 %v2382_v42  ;;  %v2751_v42 = vld [vmem:[%s9585_s27 + $0x18] sm:$0xff] }
 0x607   : > { %2612 = vmatpush.msrb.mxu3 %v2379_v43  ;;  %v5739_v43 = vld [vmem:[%s9585_s27 + $0xa0] sm:$0xff] }
 0x608   : > { %2837 = vmatpush.msrb.mxu1 %v5739_v43 }
 0x609   : > { %2613 = vmatpush.msrb.mxu3 %v8122_v21 }
 0x60a   : > { %2838 = vmatpush.msrb.mxu1 %v5738_v9 }
 0x60b   : > { %2614 = vmatpush.msrb.mxu3 %v8118_v13 }
 0x60c   : > { %2839 = vmatpush.msrb.mxu1 %v5737_v56 }
 0x60d   : > { %2615 = vmatpush.msrb.mxu3 %v8114_v7 }
 0x60e   : > { %2840 = vmatpush.msrb.mxu1 %v5736_v47  ;;  %v8325_v47 = vld [vmem:[%s9587_s22 + $0x28] sm:$0xff] }
 0x60f   : > { %2616 = vmatpush.msrb.mxu3 %v8108_v54  ;;  %v2125_v54 = vld [vmem:[%s9469_s11 + $0x38] sm:$0xff] }
 0x610   : > { %2841 = vmatpush.msrb.mxu1 %v5735_v6  ;;  %v8343_v6 = vld [vmem:[%s9587_s22 + $0x20] sm:$0xff] }
 0x611   : > { %2617 = vmatpush.msrb.mxu3 %v8102_v26  ;;  %v2130_v26 = vld [vmem:[%s9469_s11 + $0x60] sm:$0x3] }
 0x612   : > { %3033 = vmatpush.msra.mxu1 %v8325_v47 }
 0x613   : > { %2618 = vmatpush.msrb.mxu3 %v8096_v1  ;;  %v2596_v1 = vpop.f32.mrf.mxu1 }
 0x614   : > { %3034 = vmatpush.msra.mxu1 %v8343_v6 }
 0x615   : > { %2619 = vmatpush.msrb.mxu3 %v8090_v19 }
 0x617   : > { %2620 = vmatpush.msrb.mxu3 %v8084_v51  ;;  %v2532_v51 = vpop.permute.xlu1 %2531 }
 0x618   : > { %2621 = vmatmul.f32.vlgmr.msrb.gmra.mxu3 %v2120_v49 }
 0x619   : > { %2770 = vmatpush.msra.mxu3 %v2755_v37 }
 0x61b   : > { %v2599_v19 = vpop.f32.mrf.mxu1  ;;  %2771 = vmatpush.msra.mxu3 %v2754_v48 }
 0x61d   : > { %2772 = vmatpush.msra.mxu3 %v2753_v53 }
 0x61f   : > { %2773 = vmatpush.msra.mxu3 %v2752_v31 }
 0x620   : > { %2624 = vmatmul.f32.gmra.mxu3 %v2125_v54 }
 0x621   : > { %2774 = vmatpush.msra.mxu3 %v2751_v42 }
 0x623   : > { %v8197_v18 = vpop.f32.mrf.mxu1  ;;  %2775 = vmatpush.msra.mxu3 %v2750_v55 }
 0x625   : > { %2776 = vmatpush.msra.mxu3 %v2749_v14  ;;  %v9586_v14 = vld [vmem:[#allocation26_spill] sm:$0xff] }
 0x627   : > { %2777 = vmatpush.msra.mxu3 %v2748_v63  ;;  %v8330_v63 = vld [vmem:[%s9587_s22 + $0x38] sm:$0xff] }
 0x628   : > { %2627 = vmatmul.f32.gmra.mxu3 %v2130_v26  ;;  %v5749_v26 = vld [vmem:[%s9585_s27 + $0xe0] sm:$0xff] }
 0x629   : > { %2866 = vmatpush.msrb.mxu3 %v5752_v30 }
 0x62b   : > { %2867 = vmatpush.msrb.mxu3 %v5751_v8  ;;  %v8366_v8 = vld [vmem:[%s9587_s22 + $0x10] sm:$0xff] }
 0x62d   : > { %2868 = vmatpush.msrb.mxu3 %v5750_v35 }
 0x62f   : > { %2869 = vmatpush.msrb.mxu3 %v5749_v26 }
 0x656   : > { %v2648_v13 = vpop.f32.mrf.mxu1  ;;  %v2674_v20 = vpop.f32.mrf.mxu0 }
 0x65b   : > { %v2570_v50 = vpop.f32.mrf.mxu3 }
 0x65c   : > { %v2571_v12 = vadd.f32 %v2570_v50, %v2532_v51 }
 0x65e   : > { %v2597_v16 = vadd.f32 %v2596_v1, %v2571_v12  ;;  %v2651_v5 = vpop.f32.mrf.mxu1  ;;  %v2677_v15 = vpop.f32.mrf.mxu0  ;;  %v5748_v12 = vld [vmem:[%s9585_s27 + $0xd8] sm:$0xff] }
 0x65f   : > { %2870 = vmatpush.msrb.mxu3 %v5748_v12  ;;  %v8394_v12 = vld [vmem:[%s9587_s22 + $0x40] sm:$0xff] }
 0x663   : > { %v2573_v7 = vpop.f32.mrf.mxu3 }
 0x664   : > { %v2574_v25 = vadd.f32 %v2573_v7, %v2537_v24 }
 0x666   : > { %v2600_v32 = vadd.f32 %v2599_v19, %v2574_v25  ;;  %v2654_v58 = vpop.f32.mrf.mxu1 }
 0x66b   : > { %v8199_v22 = vpop.f32.mrf.mxu3 }
 0x69b   : > { %v2622_v17 = vpop.f32.mrf.mxu3 }
 0x69c   : > { %v2623_v21 = vadd.f32 %v2622_v17, %v2597_v16 }
 0x69e   : > { %v2649_v28 = vadd.f32 %v2648_v13, %v2623_v21  ;;  %v5747_v13 = vld [vmem:[%s9585_s27 + $0xd0] sm:$0xff]  ;;  %v5746_v21 = vld [vmem:[%s9585_s27 + $0xc8] sm:$0xff] }
 0x69f   : > { %2871 = vmatpush.msrb.mxu3 %v5747_v13 }
 0x6a0   : > { %v2675_v29 = vadd.f32 %v2674_v20, %v2649_v28 }
 0x6a1   : > { %2872 = vmatpush.msrb.mxu3 %v5746_v21  ;;  %v8413_v21 = vld [vmem:[%s9587_s22 + $0x68] sm:$0xff] }
 0x6a2   : > { %v5719_v36 = vmul.f32 -1.442695, %v2675_v29  ;;  %v5745_v29 = vld [vmem:[%s9585_s27 + $0xc0] sm:$0xff] }
 0x6a3   : > { %v2625_v38 = vpop.f32.mrf.mxu3  ;;  %2873 = vmatpush.msrb.mxu3 %v5745_v29 }
 0x6a4   : > { %6007 = vpow2.f32 %v5719_v36  ;;  %v2626_v44 = vadd.f32 %v2625_v38, %v2600_v32  ;;  %v2542_v32 = vpop.permute.xlu0 %2541 }
 0x6a5   : > { %v2577_v37 = vadd.f32 %v8199_v22, %v2542_v32 }
 0x6a6   : > { %v2652_v52 = vadd.f32 %v2651_v5, %v2626_v44 }
 0x6a7   : > { %v2603_v41 = vadd.f32 %v8197_v18, %v2577_v37 }
 0x6a8   : > { %v8228_v3 = vadd.f32 %v2677_v15, %v2652_v52 }
 0x6aa   : > { %v6008_v46 = vpop.eup %6007  ;;  %v5720_v2 = vmul.f32 -1.442695, %v8228_v3 }
 0x6ab   : > { %v2689_v61 = vadd.f32 1.0, %v6008_v46  ;;  %v2628_v15 = vpop.f32.mrf.mxu3  ;;  %v2680_v46 = vpop.f32.mrf.mxu0 }
 0x6ac   : > { %6009 = vpow2.f32 %v5720_v2  ;;  %v2629_v53 = vadd.f32 %v2628_v15, %v2603_v41 }
 0x6ad   : > { %6011 = vrcp.f32 %v2689_v61  ;;  %v2702_v54 = vand.u32 2147483648, %v2689_v61  ;;  %v2700_v50 = vand.u32 2147483647, %v2689_v61  ;;  %vm2696_vm12 = vweird.f32 %v2689_v61 }
 0x6ae   : > { %v2655_v43 = vadd.f32 %v2654_v58, %v2629_v53  ;;  %v8493_v53 = vld [vmem:[%s9587_s22 + $0x88] sm:$0xff]  ;;  %v8498_v58 = vld [vmem:[%s9587_s22 + $0x80] sm:$0xff] }
 0x6af   : > { %v2703_v51 = vor.u32 1.1754944e-38, %v2702_v54  ;;  %vm2701_vm14 = vcmp.eq.f32.partialorder %v2700_v50, 8.507059e+37 }
 0x6b0   : > { %v2681_v27 = vadd.f32 %v2680_v46, %v2655_v43 }
 0x6b2   : > { %v6010_v0 = vpop.eup %6009  ;;  %v2741_v55 = vrot.slane %v2681_v27, 6 }
 0x6b3   : > { %v6012_v57 = vpop.eup %6011  ;;  %v2690_v45 = vadd.f32 1.0, %v6010_v0  ;;  %v8348_v0 = vld [vmem:[%s9587_s22 + $0x30] sm:$0xff] }
 0x6b4   : > { %v2692_v59 = vmul.f32 %v6012_v57, %v2689_v61  ;;  %vm2697_vm11 = vweird.f32 %v6012_v57  ;;  %v2740_v61 = vrot.slane %v8228_v3, 6 }
 0x6b5   : > { %6013 = vrcp.f32 %v2690_v45  ;;  %vm2698_vm13 = vmor %vm2696_vm12, %vm2697_vm11  ;;  %v2717_v28 = vand.u32 2147483648, %v2690_v45  ;;  %v2715_v38 = vand.u32 2147483647, %v2690_v45  ;;  %vm2711_vm8 = vweird.f32 %v2690_v45 }
 0x6b6   : > { %v2693_v49 = vsub.f32 1.0, %v2692_v59  ;;  %v2742_v3 = vsel %vm1296_vm7, %v2740_v61, %v2741_v55 }
 0x6b7   : > { %v2718_v44 = vor.u32 1.1754944e-38, %v2717_v28  ;;  %vm2716_vm12 = vcmp.eq.f32.partialorder %v2715_v38, 8.507059e+37  ;;  %v8430_v28 = vld [vmem:[%s9587_s22 + $0x70] sm:$0xff] }
 0x6b8   : > { %v2694_v1 = vmul.f32 %v6012_v57, %v2693_v49 }
 0x6ba   : > { %v2695_v19 = vadd.f32 %v6012_v57, %v2694_v1 }
 0x6bb   : > { %v6014_v7 = vpop.eup %6013 }
 0x6bc   : > { %v2699_v16 = vsel %vm2698_vm13, %v6012_v57, %v2695_v19  ;;  %v2707_v17 = vmul.f32 %v6014_v7, %v2690_v45  ;;  %vm2712_vm15 = vweird.f32 %v6014_v7  ;;  %v8358_v57 = vld [vmem:[%s9587_s22 + $0x18] sm:$0xff]  ;;  %vm2930_vm13 = vcmask 130048  }
 0x6bd   : > { %v2704_v20 = vsel %vm2701_vm14, %v2703_v51, %v2699_v16  ;;  %vm2713_vm11 = vmor %vm2711_vm8, %vm2712_vm15  ;;  %v8389_v51 = vld [vmem:[%s9587_s22 + $0x48] sm:$0xff]  ;;  %vm3478_vm14 = vcmask 171008  }
 0x6be   : > { %v2708_v24 = vsub.f32 1.0, %v2707_v17  ;;  %v2721_v25 = vmul.f32 2.0, %v2704_v20 }
 0x6c0   : > { %v2709_v36 = vmul.f32 %v6014_v7, %v2708_v24  ;;  %v5721_v5 = vadd.f32 -1.0, %v2721_v25  ;;  %v8418_v24 = vld [vmem:[%s9587_s22 + $0x78] sm:$0xff]  ;;  %v8423_v25 = vld [vmem:[%s9587_s22 + $0x60] sm:$0xff] }
 0x6c2   : > { %v2710_v11 = vadd.f32 %v6014_v7, %v2709_v36  ;;  %v2725_v40 = vmul.f32 1.442695, %v5721_v5 }
 0x6c4   : > { %6015 = vpow2.f32 %v2725_v40  ;;  %v2714_v48 = vsel %vm2713_vm11, %v6014_v7, %v2710_v11 }
 0x6c5   : > { %v2719_v33 = vsel %vm2716_vm12, %v2718_v44, %v2714_v48 }
 0x6c6   : > { %v2722_v52 = vmul.f32 2.0, %v2719_v33  ;;  %v8467_v33 = vld [vmem:[%s9587_s22 + $0x58] sm:$0xff] }
 0x6c8   : > { %v5722_v62 = vadd.f32 -1.0, %v2722_v52  ;;  %v8477_v52 = vld [vmem:[%s9587_s22 + $0x50] sm:$0xff] }
 0x6ca   : > { %v6016_v31 = vpop.eup %6015  ;;  %v2727_v34 = vmul.f32 1.442695, %v5722_v62 }
 0x6cb   : > { %v2731_v22 = vrot.slane %v6016_v31, 5 }
 0x6cc   : > { %6017 = vpow2.f32 %v2727_v34 }
 0x6cd   : > { %v2736_v2 = vmul.f32 %v2731_v22, %v9583_v60 }
 0x6cf   : > { %v2745_v42 = vadd.f32 %v2740_v61, %v2736_v2 }
 0x6d1   : > { %v2747_v18 = vsel %vm979_vm0, %v7672_v4, %v2745_v42  ;;  %v8320_v4 = vld [vmem:[%s9587_s22 + $0x8] sm:$0xff] }
 0x6d2   : > { %v6018_v9 = vpop.eup %6017  ;;  %5723 = vmatmul.msk.f32.vlgmr.msra.gmra.mxu3 %vm1003_vm4, %v2747_v18  ;;  %5733 = vmatmul.msk.f32.vlgmr.msra.gmra.mxu2 %vm1003_vm4, %v2747_v18 }
 0x6d3   : > { %5743 = vmatmul.msk.f32.vlgmr.msrb.gmra.mxu1 %vm1003_vm4, %v2747_v18  ;;  %v2732_v10 = vrot.slane %v6018_v9, 5  ;;  %2957 = vmatpush.msra.mxu0 %v8320_v4 }
 0x6d4   : > { %3071 = vmatpush.msra.mxu3 %v8330_v63  ;;  %5992 = vmatpush.msrb.mxu2 %v8320_v4 }
 0x6d5   : > { %v2733_v56 = vsel %vm979_vm0, %v2731_v22, %v2732_v10  ;;  %2958 = vmatpush.msra.mxu0 %v8338_v39  ;;  %3185 = vmatpush.msrb.mxu1 %v8413_v21 }
 0x6d6   : > { %v2737_v60 = vmul.f32 %v2733_v56, %v9586_v14  ;;  %3072 = vmatpush.msra.mxu3 %v8348_v0  ;;  %5993 = vmatpush.msrb.mxu2 %v8338_v39 }
 0x6d7   : > { %3109 = vmatpush.msrb.mxu0 %v8389_v51  ;;  %3186 = vmatpush.msrb.mxu1 %v8423_v25 }
 0x6d8   : > { %v2746_v23 = vadd.f32 %v2742_v3, %v2737_v60  ;;  %2995 = vmatpush.msra.mxu2 %v8358_v57 }
 0x6d9   : > { %3110 = vmatpush.msrb.mxu0 %v8394_v12 }
 0x6da   : > { %5724 = vmatmul.msk.f32.gmra.mxu3 %vm1003_vm4, %v2746_v23  ;;  %5734 = vmatmul.msk.f32.gmra.mxu2 %vm1003_vm4, %v2746_v23 }
 0x6db   : > { %5744 = vmatmul.msk.f32.gmra.mxu1 %vm1003_vm4, %v2746_v23  ;;  %2996 = vmatpush.msra.mxu2 %v8366_v8 }
 0x6e2   : > { %5753 = vmatmul.msk.f32.vlgmr.msrb.gmra.mxu3 %vm1003_vm4, %v2747_v18 }
 0x6e3   : > { %3223 = vmatpush.msrb.mxu3 %v8418_v24 }
 0x6e5   : > { %3224 = vmatpush.msrb.mxu3 %v8430_v28 }
 0x6ea   : > { %5754 = vmatmul.msk.f32.gmra.mxu3 %vm1003_vm4, %v2746_v23 }
 0x750   : > { %v8399_v17 = vpop.f32.mrf.mxu1 }
 0x751   : > { %v2924_v38 = vrot.slane %v8399_v17, 3 }
 0x755   : > { %v8361_v45 = vpop.f32.mrf.mxu3  ;;  %v2811_v30 = vpop.f32.mrf.mxu2 }
 0x756   : > { %v2883_v59 = vrot.slane %v2811_v30, 4  ;;  %v2919_v1 = vrot.slane %v8361_v45, 3 }
 0x758   : > { %v2846_v37 = vpop.f32.mrf.mxu1 }
 0x75d   : > { %v2782_v35 = vpop.f32.mrf.mxu3  ;;  %v2814_v49 = vpop.f32.mrf.mxu2 }
 0x75e   : > { %v8370_v54 = vsel %vm1311_vm6, %v2782_v35, %v2883_v59  ;;  %v2884_v26 = vrot.slane %v2814_v49, 4 }
 0x75f   : > { %v2920_v50 = vrot.slane %v8370_v54, 3 }
 0x760   : > { %v8378_v7 = vsel %vm1311_vm6, %v2883_v59, %v2884_v26 }
 0x761   : > { %v8375_v19 = vsel %vm999_vm3, %v2919_v1, %v2920_v50  ;;  %v2922_v13 = vrot.slane %v8378_v7, 3 }
 0x762   : > { %5755 = vmatmul.msk.f32.vlgmr.msra.gmra.mxu0 %vm2930_vm13, %v8375_v19  ;;  %5771 = vmatmul.msk.f32.vlgmr.msra.gmra.mxu1 %vm2930_vm13, %v8375_v19 }
 0x763   : > { %5779 = vmatmul.msk.f32.vlgmr.msra.gmra.mxu3 %vm2930_vm13, %v8375_v19  ;;  %v8402_v20 = vsel %vm999_vm3, %v2920_v50, %v2922_v13  ;;  %v2925_v11 = vsel %vm999_vm3, %v2922_v13, %v2924_v38  ;;  %3261 = vmatpush.msra.mxu0 %v8493_v53 }
 0x765   : > { %v2875_v16 = vpop.f32.mrf.mxu3  ;;  %3262 = vmatpush.msra.mxu0 %v8498_v58 }
 0x766   : > { %v2890_v32 = vrot.slane %v2875_v16, 4 }
 0x768   : > { %v8443_v44 = vsel %vm1311_vm6, %v2846_v37, %v2890_v32 }
 0x769   : > { %v2926_v15 = vrot.slane %v8443_v44, 3 }
 0x76a   : > { %5756 = vmatmul.msk.f32.gmra.mxu0 %vm2930_vm13, %v8402_v20  ;;  %5772 = vmatmul.msk.f32.gmra.mxu1 %vm2930_vm13, %v8402_v20 }
 0x76b   : > { %5780 = vmatmul.msk.f32.gmra.mxu3 %vm2930_vm13, %v8402_v20  ;;  %v2927_v48 = vsel %vm999_vm3, %v2924_v38, %v2926_v15 }
 0x76d   : > { %v2878_v29 = vpop.f32.mrf.mxu3 }
 0x76e   : > { %v2891_v36 = vrot.slane %v2878_v29, 4 }
 0x770   : > { %v8436_v5 = vsel %vm1311_vm6, %v2890_v32, %v2891_v36 }
 0x771   : > { %v8440_v40 = vrot.slane %v8436_v5, 3 }
 0x772   : > { %5757 = vmatmul.msk.f32.gmra.mxu0 %vm2930_vm13, %v2925_v11  ;;  %5773 = vmatmul.msk.f32.gmra.mxu1 %vm2930_vm13, %v2925_v11 }
 0x773   : > { %5781 = vmatmul.msk.f32.gmra.mxu3 %vm2930_vm13, %v2925_v11  ;;  %5760 = vmatmul.msk.f32.vlgmr.msrb.gmra.mxu2 %vm2930_vm13, %v8440_v40  ;;  %v2929_v41 = vsel %vm999_vm3, %v2926_v15, %v8440_v40 }
 0x774   : > { %3147 = vmatpush.msrb.mxu2 %v8467_v33 }
 0x776   : > { %3148 = vmatpush.msrb.mxu2 %v8477_v52 }
 0x77a   : > { %5758 = vmatmul.msk.f32.gmra.mxu0 %vm2930_vm13, %v2927_v48  ;;  %5774 = vmatmul.msk.f32.gmra.mxu1 %vm2930_vm13, %v2927_v48 }
 0x77b   : > { %5782 = vmatmul.msk.f32.gmra.mxu3 %vm2930_vm13, %v2927_v48  ;;  %5763 = vmatmul.msk.f32.vlgmr.msra.gmra.mxu2 %vm2930_vm13, %v8375_v19 }
 0x782   : > { %5759 = vmatmul.msk.f32.gmra.mxu0 %vm2930_vm13, %v2929_v41  ;;  %5775 = vmatmul.msk.f32.gmra.mxu1 %vm2930_vm13, %v2929_v41 }
 0x783   : > { %5783 = vmatmul.msk.f32.gmra.mxu3 %vm2930_vm13, %v2929_v41  ;;  %5764 = vmatmul.msk.f32.gmra.mxu2 %vm2930_vm13, %v8402_v20 }
 0x78a   : > { %5776 = vmatmul.msk.f32.gmra.mxu1 %vm2930_vm13, %v8440_v40  ;;  %5787 = vmatmul.msk.f32.vlgmr.msrb.gmra.mxu0 %vm2930_vm13, %v8375_v19 }
 0x78b   : > { %5784 = vmatmul.msk.f32.gmra.mxu3 %vm2930_vm13, %v8440_v40  ;;  %5765 = vmatmul.msk.f32.gmra.mxu2 %vm2930_vm13, %v2925_v11 }
 0x78c   : > { %3700 = vmatpush.msrb.mxu0 %v8325_v47 }
 0x78e   : > { %3701 = vmatpush.msrb.mxu0 %v8343_v6 }
 0x792   : > { %5788 = vmatmul.msk.f32.gmra.mxu0 %vm2930_vm13, %v8402_v20  ;;  %5803 = vmatmul.msk.f32.vlgmr.msrb.gmra.mxu1 %vm2930_vm13, %v8375_v19 }
 0x793   : > { %5811 = vmatmul.msk.f32.vlgmr.msrb.gmra.mxu3 %vm2930_vm13, %v8375_v19  ;;  %5766 = vmatmul.msk.f32.gmra.mxu2 %vm2930_vm13, %v2927_v48 }
 0x79a   : > { %5789 = vmatmul.msk.f32.gmra.mxu0 %vm2930_vm13, %v2925_v11  ;;  %5804 = vmatmul.msk.f32.gmra.mxu1 %vm2930_vm13, %v8402_v20 }
 0x79b   : > { %5812 = vmatmul.msk.f32.gmra.mxu3 %vm2930_vm13, %v8402_v20  ;;  %5767 = vmatmul.msk.f32.gmra.mxu2 %vm2930_vm13, %v2929_v41 }
 0x7a2   : > { %5790 = vmatmul.msk.f32.gmra.mxu0 %vm2930_vm13, %v2927_v48  ;;  %5805 = vmatmul.msk.f32.gmra.mxu1 %vm2930_vm13, %v2925_v11 }
 0x7a3   : > { %5813 = vmatmul.msk.f32.gmra.mxu3 %vm2930_vm13, %v2925_v11  ;;  %5768 = vmatmul.msk.f32.gmra.mxu2 %vm2930_vm13, %v8440_v40 }
 0x7aa   : > { %5791 = vmatmul.msk.f32.gmra.mxu0 %vm2930_vm13, %v2929_v41  ;;  %5806 = vmatmul.msk.f32.gmra.mxu1 %vm2930_vm13, %v2927_v48 }
 0x7ab   : > { %5814 = vmatmul.msk.f32.gmra.mxu3 %vm2930_vm13, %v2927_v48  ;;  %5795 = vmatmul.msk.f32.vlgmr.msrb.gmra.mxu2 %vm2930_vm13, %v8375_v19 }
 0x7b2   : > { %5792 = vmatmul.msk.f32.gmra.mxu0 %vm2930_vm13, %v8440_v40  ;;  %5807 = vmatmul.msk.f32.gmra.mxu1 %vm2930_vm13, %v2929_v41 }
 0x7b3   : > { %5815 = vmatmul.msk.f32.gmra.mxu3 %vm2930_vm13, %v2929_v41  ;;  %5796 = vmatmul.msk.f32.gmra.mxu2 %vm2930_vm13, %v8402_v20 }
 0x7ba   : > { %5808 = vmatmul.msk.f32.gmra.mxu1 %vm2930_vm13, %v8440_v40  ;;  %5819 = vmatmul.msk.f32.vlgmr.msra.gmra.mxu0 %vm2930_vm13, %v8375_v19 }
 0x7bb   : > { %5816 = vmatmul.msk.f32.gmra.mxu3 %vm2930_vm13, %v8440_v40  ;;  %5797 = vmatmul.msk.f32.gmra.mxu2 %vm2930_vm13, %v2925_v11 }
 0x7bc   : > { %3816 = vmatpush.msra.mxu0 %v8413_v21 }
 0x7be   : > { %3817 = vmatpush.msra.mxu0 %v8423_v25 }
 0x7c2   : > { %5820 = vmatmul.msk.f32.gmra.mxu0 %vm2930_vm13, %v8402_v20 }
 0x7c3   : > { %5798 = vmatmul.msk.f32.gmra.mxu2 %vm2930_vm13, %v2927_v48 }
 0x7ca   : > { %5821 = vmatmul.msk.f32.gmra.mxu0 %vm2930_vm13, %v2925_v11 }
 0x7cb   : > { %5799 = vmatmul.msk.f32.gmra.mxu2 %vm2930_vm13, %v2929_v41 }
 0x7d2   : > { %5822 = vmatmul.msk.f32.gmra.mxu0 %vm2930_vm13, %v2927_v48 }
 0x7d3   : > { %5800 = vmatmul.msk.f32.gmra.mxu2 %vm2930_vm13, %v8440_v40 }
 0x7da   : > { %5823 = vmatmul.msk.f32.gmra.mxu0 %vm2930_vm13, %v2929_v41 }
 0x7df   : > { %v8544_v62 = vpop.f32.mrf.mxu0  ;;  %v3036_v31 = vpop.f32.mrf.mxu1 }
 0x7e0   : > { %v3312_v59 = vrot.slane %v3036_v31, 6 }
 0x7e2   : > { %5824 = vmatmul.msk.f32.gmra.mxu0 %vm2930_vm13, %v8440_v40 }
 0x7e6   : > { %v8548_v34 = vpop.f32.mrf.mxu3 }
 0x7e7   : > { %v8550_v22 = vpop.f32.mrf.mxu0  ;;  %v3039_v43 = vpop.f32.mrf.mxu1 }
 0x7e8   : > { %v3313_v6 = vrot.slane %v3039_v43, 6 }
 0x7ea   : > { %v3314_v50 = vsel %vm1296_vm7, %v3312_v59, %v3313_v6 }
 0x7ee   : > { %v8552_v46 = vpop.f32.mrf.mxu3 }
 0x7ef   : > { %v8554_v2 = vpop.f32.mrf.mxu0  ;;  %v3042_v61 = vpop.f32.mrf.mxu1 }
 0x7f0   : > { %v3315_v23 = vrot.slane %v3042_v61, 6 }
 0x7f2   : > { %v3316_v26 = vsel %vm1296_vm7, %v3313_v6, %v3315_v23 }
 0x7f6   : > { %v8556_v42 = vpop.f32.mrf.mxu3  ;;  %v2975_v27 = vpop.f32.mrf.mxu2 }
 0x7f7   : > { %v8558_v18 = vpop.f32.mrf.mxu0  ;;  %v3045_v9 = vpop.f32.mrf.mxu1 }
 0x7f8   : > { %v3317_v60 = vrot.slane %v3045_v9, 6 }
 0x7fa   : > { %v3318_v30 = vsel %vm1296_vm7, %v3315_v23, %v3317_v60 }
 0x7fe   : > { %v8560_v55 = vpop.f32.mrf.mxu3  ;;  %v2998_v10 = vpop.f32.mrf.mxu2 }
 0x7ff   : > { %v2972_v56 = vpop.f32.mrf.mxu0  ;;  %v8562_v14 = vpop.f32.mrf.mxu1 }
 0x800   : > { %v9523_v3 = vrot.slane %v8562_v14, 6 }
 0x802   : > { %v3320_v47 = vsel %vm1296_vm7, %v3317_v60, %v9523_v3  ;;  %v3288_v3 = vrot.slane %v2998_v10, 3 }
 0x803   : > { %3494 = vmatpush.msra.mxu2 %v3320_v47 }
 0x805   : > { %3495 = vmatpush.msra.mxu2 %v3318_v30 }
 0x806   : > { %v8569_v35 = vpop.f32.mrf.mxu3  ;;  %v3001_v49 = vpop.f32.mrf.mxu2 }
 0x807   : > { %v8572_v1 = vpop.f32.mrf.mxu0  ;;  %3496 = vmatpush.msra.mxu2 %v3316_v26  ;;  %v8579_v20 = vpop.f32.mrf.mxu1  ;;  %v3289_v26 = vrot.slane %v3001_v49, 3 }
 0x809   : > { %3497 = vmatpush.msra.mxu2 %v3314_v50 }
 0x80e   : > { %v8575_v19 = vpop.f32.mrf.mxu3  ;;  %v3004_v13 = vpop.f32.mrf.mxu2 }
 0x80f   : > { %v8577_v16 = vpop.f32.mrf.mxu0  ;;  %v8585_v38 = vpop.f32.mrf.mxu1  ;;  %v3291_v47 = vrot.slane %v3004_v13, 3  ;;  %v3447_v13 = vsel %vm999_vm3, %v2975_v27, %v3288_v3 }
 0x816   : > { %v8581_v29 = vpop.f32.mrf.mxu3  ;;  %v3007_v32 = vpop.f32.mrf.mxu2 }
 0x817   : > { %v8583_v36 = vpop.f32.mrf.mxu0  ;;  %v8591_v48 = vpop.f32.mrf.mxu1  ;;  %v3293_v60 = vrot.slane %v3007_v32, 3 }
 0x81e   : > { %v8587_v37 = vpop.f32.mrf.mxu3  ;;  %v3010_v11 = vpop.f32.mrf.mxu2 }
 0x81f   : > { %v8589_v40 = vpop.f32.mrf.mxu0  ;;  %v3295_v61 = vrot.slane %v3010_v11, 3  ;;  %v8603_v11 = vpop.f32.mrf.mxu1 }
 0x821   : > { %v3296_v6 = vsel %vm999_vm3, %v3293_v60, %v3295_v61 }
 0x826   : > { %v3013_v15 = vpop.f32.mrf.mxu2  ;;  %v8595_v43 = vpop.f32.mrf.mxu3 }
 0x827   : > { %v3297_v41 = vrot.slane %v3013_v15, 3  ;;  %v8593_v31 = vpop.f32.mrf.mxu0  ;;  %v3294_v15 = vsel %vm999_vm3, %v3291_v47, %v3293_v60 }
 0x829   : > { %v3448_v9 = vsel %vm1296_vm7, %v3297_v41, %v3312_v59  ;;  %v3298_v23 = vsel %vm999_vm3, %v3295_v61, %v3297_v41  ;;  %v3292_v59 = vsel %vm999_vm3, %v3289_v26, %v3291_v47  ;;  %v3290_v41 = vsel %vm999_vm3, %v3288_v3, %v3289_v26 }
 0x82a   : > { %3498 = vmatpush.msra.mxu2 %v3448_v9  ;;  %v8609_v9 = vpop.f32.mrf.mxu1 }
 0x82c   : > { %3499 = vmatpush.msra.mxu2 %v3298_v23  ;;  %v2897_v23 = vld [vmem:[%s9471_s13] sm:$0xff] }
 0x82e   : > { %v3150_v30 = vpop.f32.mrf.mxu2  ;;  %3500 = vmatpush.msra.mxu2 %v3296_v6  ;;  %v3235_v32 = vpop.f32.mrf.mxu3 }
 0x82f   : > { %v8600_v50 = vpop.f32.mrf.mxu0 }
 0x830   : > { %3501 = vmatpush.msra.mxu2 %v3294_v15 }
 0x832   : > { %3502 = vmatpush.msra.mxu2 %v3292_v59  ;;  %v8617_v27 = vpop.f32.mrf.mxu1  ;;  %v3383_v59 = vrot.slane %v3150_v30, 7  ;;  %v3433_v30 = vrot.slane %v8595_v43, 5 }
 0x834   : > { %3503 = vmatpush.msra.mxu2 %v3290_v41  ;;  %v3368_v41 = vrot.slane %v8600_v50, 4  ;;  %v3366_v50 = vrot.slane %v8593_v31, 4 }
 0x836   : > { %v3153_v61 = vpop.f32.mrf.mxu2  ;;  %3504 = vmatpush.msra.mxu2 %v3447_v13  ;;  %v3238_v10 = vpop.f32.mrf.mxu3  ;;  %v3369_v43 = vsel %vm1311_vm6, %v3366_v50, %v3368_v41 }
 0x837   : > { %v3264_v49 = vpop.f32.mrf.mxu0  ;;  %v3384_v26 = vrot.slane %v3153_v61, 7  ;;  %v3437_v13 = vrot.slane %v3238_v10, 5 }
 0x838   : > { %3505 = vmatpush.msra.mxu2 %v2972_v56 }
 0x83a   : > { %3506 = vmatpush.msra.mxu2 %v8558_v18 }
 0x83c   : > { %3507 = vmatpush.msra.mxu2 %v8554_v2  ;;  %v2901_v2 = vld [vmem:[%s9471_s13 + $0x20] sm:$0xff] }
 0x83e   : > { %v3156_v60 = vpop.f32.mrf.mxu2  ;;  %3508 = vmatpush.msra.mxu2 %v8550_v22  ;;  %v3241_v56 = vpop.f32.mrf.mxu3 }
 0x83f   : > { %v3267_v47 = vpop.f32.mrf.mxu0  ;;  %v3386_v3 = vrot.slane %v3156_v60, 7  ;;  %v3439_v15 = vrot.slane %v3241_v56, 5  ;;  %v3435_v60 = vrot.slane %v3235_v32, 5  ;;  %v2905_v56 = vld [vmem:[%s9471_s13 + $0x40] sm:$0xff]  ;;  %v3451_v32 = vsel %vm983_vm2, %v3368_v41, %v3383_v59 }
 0x840   : > { %3509 = vmatpush.msra.mxu2 %v8544_v62 }
 0x841   : > { %3510 = vmatmul.f32.vlgmr.msra.gmra.mxu2 %v2897_v23  ;;  %v3387_v23 = vsel %vm983_vm2, %v3384_v26, %v3386_v3  ;;  %v3440_v61 = vsel %vm979_vm0, %v3437_v13, %v3439_v15  ;;  %v3436_v31 = vsel %vm979_vm0, %v3433_v30, %v3435_v60  ;;  %v3430_v15 = vrot.slane %v8581_v29, 5  ;;  %v2909_v29 = vld [vmem:[%s9471_s13 + $0x60] sm:$0xff] }
 0x846   : > { %v8619_v18 = vpop.f32.mrf.mxu2 }
 0x847   : > { %v3388_v22 = vrot.slane %v8619_v18, 7  ;;  %v3270_v6 = vpop.f32.mrf.mxu0  ;;  %v2903_v18 = vld [vmem:[%s9471_s13 + $0x30] sm:$0xff] }
 0x848   : > { %3552 = vmatpush.msra.mxu3 %v3270_v6  ;;  %v3385_v6 = vsel %vm983_vm2, %v3383_v59, %v3384_v26  ;;  %v3364_v26 = vrot.slane %v8589_v40, 4 }
 0x849   : > { %3513 = vmatmul.f32.gmra.mxu2 %v2901_v2  ;;  %v3389_v62 = vsel %vm983_vm2, %v3386_v3, %v3388_v22  ;;  %v3203_v2 = vpop.f32.mrf.mxu1  ;;  %v3431_v3 = vrot.slane %v8587_v37, 5  ;;  %v3360_v37 = vrot.slane %v8577_v16, 4 }
 0x84a   : > { %3523 = vmatpush.msra.mxu1 %v3389_v62  ;;  %3553 = vmatpush.msra.mxu3 %v3267_v47  ;;  %v3362_v62 = vrot.slane %v8583_v36, 4  ;;  %v3415_v59 = vrot.slane %v3203_v2, 2  ;;  %v3344_v36 = vrot.slane %v8575_v19, 1  ;;  %v3342_v19 = vrot.slane %v8569_v35, 1 }
 0x84b   : > { %v3432_v41 = vsel %vm979_vm0, %v3430_v15, %v3431_v3  ;;  %v3338_v35 = vrot.slane %v8556_v42, 1 }
 0x84c   : > { %3524 = vmatpush.msra.mxu1 %v3387_v23  ;;  %3554 = vmatpush.msra.mxu3 %v3264_v49  ;;  %v3438_v49 = vsel %vm979_vm0, %v3435_v60, %v3437_v13  ;;  %v3367_v13 = vsel %vm1311_vm6, %v3364_v26, %v3366_v50  ;;  %v3434_v23 = vsel %vm979_vm0, %v3431_v3, %v3433_v30  ;;  %v3359_v60 = vrot.slane %v8572_v1, 4 }
 0x84d   : > { %v3365_v40 = vsel %vm1311_vm6, %v3362_v62, %v3364_v26  ;;  %v3453_v16 = vsel %vm979_vm0, %v3415_v59, %v3430_v15  ;;  %v3411_v30 = vrot.slane %v8609_v9, 2  ;;  %v3340_v9 = vrot.slane %v8560_v55, 1 }
 0x84e   : > { %3525 = vmatpush.msra.mxu1 %v3385_v6  ;;  %3555 = vmatpush.msra.mxu3 %v3440_v61  ;;  %v8637_v10 = vpop.f32.mrf.mxu2  ;;  %v3413_v6 = vrot.slane %v8617_v27, 2  ;;  %v3361_v50 = vsel %vm1311_vm6, %v3359_v60, %v3360_v37  ;;  %v3409_v27 = vrot.slane %v8603_v11, 2  ;;  %v3407_v26 = vrot.slane %v8591_v48, 2 }
 0x84f   : > { %v8639_v47 = vpop.f32.mrf.mxu0  ;;  %v3390_v15 = vrot.slane %v8637_v10, 7  ;;  %v3406_v11 = vrot.slane %v8585_v38, 2  ;;  %v3321_v55 = vrot.slane %v8579_v20, 6  ;;  %v3341_v10 = vsel %vm1333_vm5, %v3338_v35, %v3340_v9 }
 0x850   : > { %3526 = vmatpush.msra.mxu1 %v3451_v32  ;;  %3556 = vmatpush.msra.mxu3 %v3438_v49  ;;  %v3416_v32 = vsel %vm981_vm1, %v3413_v6, %v3415_v59  ;;  %v3450_v49 = vsel %vm1311_vm6, %v3344_v36, %v3359_v60  ;;  %v3414_v2 = vsel %vm981_vm1, %v3411_v30, %v3413_v6  ;;  %v3335_v38 = vrot.slane %v8548_v34, 1  ;;  %v2900_v60 = vld [vmem:[%s9471_s13 + $0x18] sm:$0xff]  ;;  %v2906_v6 = vld [vmem:[%s9471_s13 + $0x48] sm:$0xff] }
 0x851   : > { %3516 = vmatmul.f32.gmra.mxu2 %v2905_v56  ;;  %v3363_v56 = vsel %vm1311_vm6, %v3360_v37, %v3362_v62  ;;  %v3343_v59 = vsel %vm1333_vm5, %v3340_v9, %v3342_v19  ;;  %v3408_v42 = vsel %vm981_vm1, %v3406_v11, %v3407_v26 }
 0x852   : > { %3527 = vmatpush.msra.mxu1 %v3369_v43  ;;  %3557 = vmatpush.msra.mxu3 %v3436_v31  ;;  %v3345_v43 = vsel %vm1333_vm5, %v3342_v19, %v3344_v36  ;;  %v3412_v31 = vsel %vm981_vm1, %v3409_v27, %v3411_v30  ;;  %v3461_v19 = vpop.permute.xlu1 %3460 }
 0x854   : > { %3528 = vmatpush.msra.mxu1 %v3367_v13  ;;  %3558 = vmatpush.msra.mxu3 %v3434_v23  ;;  %v3410_v13 = vsel %vm981_vm1, %v3407_v26, %v3409_v27  ;;  %v3336_v23 = vrot.slane %v8552_v46, 1  ;;  %v2899_v46 = vld [vmem:[%s9471_s13 + $0x10] sm:$0xff] }
 0x856   : > { %3529 = vmatpush.msra.mxu1 %v3365_v40  ;;  %3559 = vmatpush.msra.mxu3 %v3432_v41  ;;  %v3165_v1 = vpop.f32.mrf.mxu2  ;;  %v3339_v37 = vsel %vm1333_vm5, %v3336_v23, %v3338_v35  ;;  %v9588_v40 = vrot.slane %v8562_v14, 6  ;;  %v3337_v34 = vsel %vm1333_vm5, %v3335_v38, %v3336_v23  ;;  %v2898_v14 = vld [vmem:[%s9471_s13 + $0x8] sm:$0xff]  ;;  %v3471_v23 = vpop.permute.xlu0 %3470 }
 0x857   : > { %v3276_v61 = vpop.f32.mrf.mxu0  ;;  %v3392_v3 = vrot.slane %v3165_v1, 7 }
 0x858   : > { %3530 = vmatpush.msra.mxu1 %v3363_v56  ;;  %3560 = vmatpush.msra.mxu3 %v3453_v16  ;;  %v3322_v41 = vsel %vm1296_vm7, %v9588_v40, %v3321_v55  ;;  %v2912_v56 = vld [vmem:[%s9471_s13 + $0x78] sm:$0xff]  ;;  %v2910_v16 = vld [vmem:[%s9471_s13 + $0x68] sm:$0xff] }
 0x859   : > { %3519 = vmatmul.f32.gmra.mxu2 %v2909_v29  ;;  %v3393_v48 = vsel %vm983_vm2, %v3390_v15, %v3392_v3  ;;  %v3391_v29 = vsel %vm983_vm2, %v3388_v22, %v3390_v15  ;;  %v3449_v36 = vsel %vm1333_vm5, %v3322_v41, %v3335_v38  ;;  %v2904_v22 = vld [vmem:[%s9471_s13 + $0x38] sm:$0xff] }
 0x85a   : > { %3531 = vmatpush.msra.mxu1 %v3361_v50  ;;  %3561 = vmatpush.msra.mxu3 %v3416_v32  ;;  %v3452_v20 = vsel %vm981_vm1, %v3393_v48, %v3406_v11  ;;  %v3476_v41 = vpop.permute.xlu1 %3475 }
 0x85c   : > { %3532 = vmatpush.msra.mxu1 %v3450_v49  ;;  %3562 = vmatpush.msra.mxu3 %v3414_v2 }
 0x85e   : > { %3533 = vmatpush.msra.mxu1 %v3345_v43  ;;  %3563 = vmatpush.msra.mxu3 %v3412_v31  ;;  %v3466_v31 = vpop.permute.xlu2 %3465 }
 0x85f   : > { %v3279_v62 = vpop.f32.mrf.mxu0 }
 0x860   : > { %3534 = vmatpush.msra.mxu1 %v3343_v59  ;;  %3564 = vmatpush.msra.mxu3 %v3410_v13 }
 0x861   : > { %5825 = vmatpush.msk.msrb.mxu2 %vm999_vm3, %v3279_v62 }
 0x862   : > { %3535 = vmatpush.msra.mxu1 %v3341_v10  ;;  %3565 = vmatpush.msra.mxu3 %v3408_v42 }
 0x863   : > { %3595 = vmatpush.msrb.mxu2 %v3276_v61  ;;  %v2911_v61 = vld [vmem:[%s9471_s13 + $0x70] sm:$0xff] }
 0x864   : > { %3536 = vmatpush.msra.mxu1 %v3339_v37  ;;  %3566 = vmatpush.msra.mxu3 %v3452_v20 }
 0x865   : > { %3596 = vmatpush.msrb.mxu2 %v8639_v47  ;;  %v2908_v47 = vld [vmem:[%s9471_s13 + $0x58] sm:$0xff] }
 0x866   : > { %3537 = vmatpush.msra.mxu1 %v3337_v34  ;;  %3567 = vmatpush.msra.mxu3 %v3391_v29 }
 0x867   : > { %3568 = vmatmul.f32.vlgmr.msra.gmra.mxu3 %v2899_v46  ;;  %5826 = vmatmul.msk.f32.vlgmr.msrb.gmra.mxu2 %vm3478_vm14, %v2900_v60 }
 0x868   : > { %3538 = vmatpush.msra.mxu1 %v3449_v36  ;;  %3671 = vmatpush.msrb.mxu3 %v8358_v57 }
 0x869   : > { %3539 = vmatmul.f32.vlgmr.msra.gmra.mxu1 %v2898_v14  ;;  %3729 = vmatpush.msra.mxu2 %v8330_v63 }
 0x86a   : > { %3642 = vmatpush.msrb.mxu1 %v8320_v4  ;;  %3672 = vmatpush.msrb.mxu3 %v8366_v8  ;;  %v2902_v4 = vld [vmem:[%s9471_s13 + $0x28] sm:$0xff] }
 0x86b   : > { %3730 = vmatpush.msra.mxu2 %v8348_v0 }
 0x86c   : > { %3787 = vmatpush.msra.mxu3 %v8467_v33  ;;  %3643 = vmatpush.msrb.mxu1 %v8338_v39  ;;  %v2907_v39 = vld [vmem:[%s9471_s13 + $0x50] sm:$0xff] }
 0x86d   : > { %3845 = vmatpush.msrb.mxu2 %v8418_v24 }
 0x86e   : > { %3758 = vmatpush.msra.mxu1 %v8389_v51  ;;  %3788 = vmatpush.msra.mxu3 %v8477_v52 }
 0x86f   : > { %3846 = vmatpush.msrb.mxu2 %v8430_v28  ;;  %3571 = vmatmul.f32.gmra.mxu3 %v2903_v18 }
 0x870   : > { %5827 = vmatmul.msk.f32.gmra.mxu2 %vm3478_vm14, %v2904_v22  ;;  %3759 = vmatpush.msra.mxu1 %v8394_v12 }
 0x871   : > { %3542 = vmatmul.f32.gmra.mxu1 %v2902_v4 }
 0x877   : > { %3574 = vmatmul.f32.gmra.mxu3 %v2907_v39 }
 0x878   : > { %5828 = vmatmul.msk.f32.gmra.mxu2 %vm3478_vm14, %v2908_v47 }
 0x879   : > { %3545 = vmatmul.f32.gmra.mxu1 %v2906_v6 }
 0x87f   : > { %3577 = vmatmul.f32.gmra.mxu3 %v2911_v61 }
 0x880   : > { %5829 = vmatmul.msk.f32.gmra.mxu2 %vm3478_vm14, %v2912_v56 }
 0x881   : > { %3548 = vmatmul.f32.gmra.mxu1 %v2910_v16 }
 0x8c4   : > { %v3511_v30 = vpop.f32.mrf.mxu2 }
 0x8c5   : > { %v3512_v49 = vadd.f32 %v3511_v30, %v3461_v19 }
 0x8cc   : > { %v3514_v1 = vpop.f32.mrf.mxu2 }
 0x8cd   : > { %v3515_v35 = vadd.f32 %v3514_v1, %v3466_v31 }
 0x8d4   : > { %v3517_v50 = vpop.f32.mrf.mxu2 }
 0x8d5   : > { %v3518_v42 = vadd.f32 %v3517_v50, %v3471_v23  ;;  %v3614_v50 = vld [vmem:[%s9473_s15] sm:$0x77] }
 0x8d6   : > { %3897 = vst [vmem:[#allocation1] ss:$2 sm:$0xff] %v3614_v50 }
 0x8dc   : > { %v3520_v32 = vpop.f32.mrf.mxu2 }
 0x8e6   : > { %v3540_v27 = vpop.f32.mrf.mxu1 }
 0x8e7   : > { %v3541_v2 = vadd.f32 %v3540_v27, %v3512_v49 }
 0x8ea   : > { %v3569_v3 = vpop.f32.mrf.mxu3  ;;  %v3598_v9 = vpop.f32.mrf.mxu2 }
 0x8eb   : > { %v3570_v26 = vadd.f32 %v3569_v3, %v3541_v2 }
 0x8ed   : > { %v3599_v43 = vadd.f32 %v3598_v9, %v3570_v26 }
 0x8ee   : > { %v3543_v15 = vpop.f32.mrf.mxu1 }
 0x8ef   : > { %v8748_v11 = vmax.f32 %v3599_v43, 0.0  ;;  %v3544_v62 = vadd.f32 %v3543_v15, %v3515_v35 }
 0x8f1   : > { %5830 = vmatmul.msk.f32.vlgmr.msrb.gmra.mxu1 %vm2930_vm13, %v8748_v11  ;;  %5834 = vmatmul.msk.f32.vlgmr.msrb.gmra.mxu3 %vm2930_vm13, %v8748_v11 }
 0x8f2   : > { %5838 = vmatmul.msk.f32.vlgmr.msrb.gmra.mxu0 %vm2930_vm13, %v8748_v11  ;;  %5842 = vmatmul.msk.f32.vlgmr.msra.gmra.mxu2 %vm2930_vm13, %v8748_v11  ;;  %v3572_v59 = vpop.f32.mrf.mxu3 }
 0x8f3   : > { %v3601_v13 = vpop.f32.mrf.mxu2  ;;  %v3573_v55 = vadd.f32 %v3572_v59, %v3544_v62  ;;  %3874 = vmatpush.msrb.mxu1 %v8493_v53  ;;  %4053 = vmatpush.msra.mxu2 %v8330_v63 }
 0x8f5   : > { %v3602_v48 = vadd.f32 %v3601_v13, %v3573_v55  ;;  %3875 = vmatpush.msrb.mxu1 %v8498_v58  ;;  %4054 = vmatpush.msra.mxu2 %v8348_v0  ;;  %v3521_v0 = vadd.f32 %v3520_v32, %v3476_v41  ;;  %v3901_v41 = vld.sshfl [vmem:[#allocation1 + $0x8] sm:$0xff pattern:$0x75316420] }
 0x8f6   : > { %v3546_v10 = vpop.f32.mrf.mxu1 }
 0x8f7   : > { %v3611_v38 = vmax.f32 %v3602_v48, 0.0  ;;  %v3547_v37 = vadd.f32 %v3546_v10, %v3518_v42  ;;  %v3900_v48 = vld.sshfl [vmem:[#allocation1] sm:$0xff pattern:$0x75316420] }
 0x8f9   : > { %5831 = vmatmul.msk.f32.gmra.mxu1 %vm2930_vm13, %v3611_v38  ;;  %5835 = vmatmul.msk.f32.gmra.mxu3 %vm2930_vm13, %v3611_v38 }
 0x8fa   : > { %5839 = vmatmul.msk.f32.gmra.mxu0 %vm2930_vm13, %v3611_v38  ;;  %5843 = vmatmul.msk.f32.gmra.mxu2 %vm2930_vm13, %v3611_v38  ;;  %v3575_v20 = vpop.f32.mrf.mxu3 }
 0x8fb   : > { %v3604_v63 = vpop.f32.mrf.mxu2  ;;  %v3576_v46 = vadd.f32 %v3575_v20, %v3547_v37 }
 0x8fd   : > { %v3605_v40 = vadd.f32 %v3604_v63, %v3576_v46 }
 0x8fe   : > { %v3549_v60 = vpop.f32.mrf.mxu1 }
 0x8ff   : > { %v3612_v34 = vmax.f32 %v3605_v40, 0.0  ;;  %v3550_v29 = vadd.f32 %v3549_v60, %v3521_v0  ;;  %v3902_v60 = vld.sshfl [vmem:[#allocation1 + $0x10] sm:$0xff pattern:$0x75316420]  ;;  %v6127_v0 = vld [vmem:[%s9587_s22 + $0x8] sm:$0xff] }
 0x901   : > { %5832 = vmatmul.msk.f32.gmra.mxu1 %vm2930_vm13, %v3612_v34  ;;  %5836 = vmatmul.msk.f32.gmra.mxu3 %vm2930_vm13, %v3612_v34 }
 0x902   : > { %5840 = vmatmul.msk.f32.gmra.mxu0 %vm2930_vm13, %v3612_v34  ;;  %5844 = vmatmul.msk.f32.gmra.mxu2 %vm2930_vm13, %v3612_v34  ;;  %v3578_v14 = vpop.f32.mrf.mxu3 }
 0x903   : > { %v3607_v36 = vpop.f32.mrf.mxu2  ;;  %v3579_v18 = vadd.f32 %v3578_v14, %v3550_v29  ;;  %v6129_v29 = vld [vmem:[%s9587_s22 + $0x28] sm:$0xff]  ;;  %v6130_v14 = vld [vmem:[%s9587_s22 + $0x20] sm:$0xff] }
 0x905   : > { %v3608_v22 = vadd.f32 %v3607_v36, %v3579_v18  ;;  %v3893_v36 = vpop.permute.xlu2 %3892 }
 0x907   : > { %v3613_v4 = vmax.f32 %v3608_v22, 0.0 }
 0x909   : > { %5833 = vmatmul.msk.f32.gmra.mxu1 %vm2930_vm13, %v3613_v4  ;;  %5837 = vmatmul.msk.f32.gmra.mxu3 %vm2930_vm13, %v3613_v4 }
 0x90a   : > { %5841 = vmatmul.msk.f32.gmra.mxu0 %vm2930_vm13, %v3613_v4  ;;  %5845 = vmatmul.msk.f32.gmra.mxu2 %vm2930_vm13, %v3613_v4 }
 0x911   : > { %5846 = vmatmul.msk.f32.vlgmr.msra.gmra.mxu1 %vm2930_vm13, %v8748_v11  ;;  %5850 = vmatmul.msk.f32.vlgmr.msra.gmra.mxu3 %vm2930_vm13, %v8748_v11 }
 0x912   : > { %5854 = vmatmul.msk.f32.vlgmr.msra.gmra.mxu0 %vm2930_vm13, %v8748_v11  ;;  %5858 = vmatmul.msk.f32.vlgmr.msrb.gmra.mxu2 %vm2930_vm13, %v8748_v11 }
 0x913   : > { %4133 = vmatpush.msrb.mxu2 %v8418_v24 }
 0x915   : > { %4134 = vmatpush.msrb.mxu2 %v8430_v28 }
 0x919   : > { %5847 = vmatmul.msk.f32.gmra.mxu1 %vm2930_vm13, %v3611_v38  ;;  %5851 = vmatmul.msk.f32.gmra.mxu3 %vm2930_vm13, %v3611_v38 }
 0x91a   : > { %5855 = vmatmul.msk.f32.gmra.mxu0 %vm2930_vm13, %v3611_v38  ;;  %5859 = vmatmul.msk.f32.gmra.mxu2 %vm2930_vm13, %v3611_v38 }
 0x921   : > { %5848 = vmatmul.msk.f32.gmra.mxu1 %vm2930_vm13, %v3612_v34  ;;  %5852 = vmatmul.msk.f32.gmra.mxu3 %vm2930_vm13, %v3612_v34 }
 0x922   : > { %5856 = vmatmul.msk.f32.gmra.mxu0 %vm2930_vm13, %v3612_v34  ;;  %5860 = vmatmul.msk.f32.gmra.mxu2 %vm2930_vm13, %v3612_v34 }
 0x929   : > { %5849 = vmatmul.msk.f32.gmra.mxu1 %vm2930_vm13, %v3613_v4  ;;  %5853 = vmatmul.msk.f32.gmra.mxu3 %vm2930_vm13, %v3613_v4 }
 0x92a   : > { %5857 = vmatmul.msk.f32.gmra.mxu0 %vm2930_vm13, %v3613_v4  ;;  %5861 = vmatmul.msk.f32.gmra.mxu2 %vm2930_vm13, %v3613_v4 }
 0x931   : > { %5862 = vmatmul.msk.f32.vlgmr.msrb.gmra.mxu1 %vm2930_vm13, %v8748_v11 }
 0x939   : > { %5863 = vmatmul.msk.f32.gmra.mxu1 %vm2930_vm13, %v3611_v38 }
 0x941   : > { %5864 = vmatmul.msk.f32.gmra.mxu1 %vm2930_vm13, %v3612_v34  ;;  %v6128_v34 = vld [vmem:[%s9587_s22] sm:$0xff] }
 0x949   : > { %5865 = vmatmul.msk.f32.gmra.mxu1 %vm2930_vm13, %v3613_v4 }
 0x96e   : > { %v3645_v24 = vpop.f32.mrf.mxu1 }
 0x96f   : > { %v3703_v28 = vpop.f32.mrf.mxu0 }
 0x974   : > { %v3674_v6 = vpop.f32.mrf.mxu3 }
 0x975   : > { %v3732_v39 = vpop.f32.mrf.mxu2 }
 0x976   : > { %v3648_v47 = vpop.f32.mrf.mxu1 }
 0x977   : > { %v3706_v61 = vpop.f32.mrf.mxu0 }
 0x97c   : > { %v3677_v30 = vpop.f32.mrf.mxu3 }
 0x97d   : > { %v3735_v56 = vpop.f32.mrf.mxu2 }
 0x97e   : > { %v3651_v16 = vpop.f32.mrf.mxu1 }
 0x97f   : > { %v3709_v1 = vpop.f32.mrf.mxu0 }
 0x984   : > { %v3680_v27 = vpop.f32.mrf.mxu3 }
 0x985   : > { %v3738_v32 = vpop.f32.mrf.mxu2 }
 0x986   : > { %v3654_v19 = vpop.f32.mrf.mxu1 }
 0x987   : > { %v3712_v49 = vpop.f32.mrf.mxu0 }
 0x98c   : > { %v3683_v9 = vpop.f32.mrf.mxu3 }
 0x98d   : > { %v3741_v2 = vpop.f32.mrf.mxu2 }
 0x98e   : > { %3907 = vmatpush.msrb.mxu3 %v3741_v2  ;;  %v3761_v3 = vpop.f32.mrf.mxu1 }
 0x98f   : > { %v3819_v31 = vpop.f32.mrf.mxu0 }
 0x990   : > { %3908 = vmatpush.msrb.mxu3 %v3738_v32 }
 0x992   : > { %3909 = vmatpush.msrb.mxu3 %v3735_v56 }
 0x994   : > { %3910 = vmatpush.msrb.mxu3 %v3732_v39  ;;  %v3790_v11 = vpop.f32.mrf.mxu3 }
 0x995   : > { %v3848_v26 = vpop.f32.mrf.mxu2 }
 0x996   : > { %3911 = vmatpush.msrb.mxu3 %v3712_v49  ;;  %v3764_v43 = vpop.f32.mrf.mxu1 }
 0x997   : > { %v3822_v62 = vpop.f32.mrf.mxu0 }
 0x998   : > { %3912 = vmatpush.msrb.mxu3 %v3709_v1 }
 0x99a   : > { %3913 = vmatpush.msrb.mxu3 %v3706_v61 }
 0x99c   : > { %3914 = vmatpush.msrb.mxu3 %v3703_v28  ;;  %v3793_v55 = vpop.f32.mrf.mxu3 }
 0x99d   : > { %v3851_v15 = vpop.f32.mrf.mxu2 }
 0x99e   : > { %3915 = vmatpush.msrb.mxu3 %v3683_v9  ;;  %v3767_v35 = vpop.f32.mrf.mxu1 }
 0x99f   : > { %v3825_v23 = vpop.f32.mrf.mxu0 }
 0x9a0   : > { %3916 = vmatpush.msrb.mxu3 %v3680_v27 }
 0x9a2   : > { %3917 = vmatpush.msrb.mxu3 %v3677_v30 }
 0x9a4   : > { %3918 = vmatpush.msrb.mxu3 %v3674_v6  ;;  %v3796_v38 = vpop.f32.mrf.mxu3 }
 0x9a5   : > { %v3854_v59 = vpop.f32.mrf.mxu2 }
 0x9a6   : > { %3919 = vmatpush.msrb.mxu3 %v3654_v19  ;;  %v3770_v13 = vpop.f32.mrf.mxu1 }
 0x9a7   : > { %v3828_v37 = vpop.f32.mrf.mxu0 }
 0x9a8   : > { %3920 = vmatpush.msrb.mxu3 %v3651_v16 }
 0x9aa   : > { %3921 = vmatpush.msrb.mxu3 %v3648_v47 }
 0x9ac   : > { %3922 = vmatpush.msrb.mxu3 %v3645_v24  ;;  %v3799_v63 = vpop.f32.mrf.mxu3 }
 0x9ad   : > { %v3857_v10 = vpop.f32.mrf.mxu2  ;;  %3923 = vmatmul.f32.vlgmr.msrb.gmra.mxu3 %v3900_v48  ;;  %v6140_v48 = vld [vmem:[%s9587_s22 + $0x70] sm:$0xff] }
 0x9ae   : > { %3927 = vmatpush.msrb.mxu0 %v3857_v10  ;;  %v3877_v42 = vpop.f32.mrf.mxu1  ;;  %v3971_v10 = vld [vmem:[%s9475_s17 + $0x18] sm:$0xff] }
 0x9b0   : > { %3928 = vmatpush.msrb.mxu0 %v3854_v59  ;;  %v6138_v59 = vld [vmem:[%s9587_s22 + $0x30] sm:$0xff] }
 0x9b2   : > { %3929 = vmatpush.msrb.mxu0 %v3851_v15 }
 0x9b4   : > { %3930 = vmatpush.msrb.mxu0 %v3848_v26 }
 0x9b6   : > { %3931 = vmatpush.msrb.mxu0 %v3828_v37  ;;  %v3880_v20 = vpop.f32.mrf.mxu1  ;;  %v3974_v37 = vld [vmem:[%s9475_s17 + $0x30] sm:$0xff] }
 0x9b8   : > { %3932 = vmatpush.msrb.mxu0 %v3825_v23  ;;  %v3970_v23 = vld [vmem:[%s9475_s17 + $0x10] sm:$0xff] }
 0x9ba   : > { %3933 = vmatpush.msrb.mxu0 %v3822_v62  ;;  %v6137_v62 = vld [vmem:[%s9587_s22 + $0x38] sm:$0xff] }
 0x9bc   : > { %3934 = vmatpush.msrb.mxu0 %v3819_v31 }
 0x9be   : > { %3935 = vmatpush.msrb.mxu0 %v3799_v63  ;;  %v3883_v46 = vpop.f32.mrf.mxu1  ;;  %v4198_v63 = vpop.permute.xlu0 %4197 }
 0x9c0   : > { %3936 = vmatpush.msrb.mxu0 %v3796_v38  ;;  %v3973_v38 = vld [vmem:[%s9475_s17 + $0x28] sm:$0xff] }
 0x9c2   : > { %3937 = vmatpush.msrb.mxu0 %v3793_v55  ;;  %v3969_v55 = vld [vmem:[%s9475_s17 + $0x8] sm:$0xff] }
 0x9c4   : > { %3938 = vmatpush.msrb.mxu0 %v3790_v11 }
 0x9c6   : > { %3939 = vmatpush.msrb.mxu0 %v3770_v13  ;;  %v3886_v40 = vpop.f32.mrf.mxu1  ;;  %v6139_v13 = vld [vmem:[%s9587_s22 + $0x78] sm:$0xff] }
 0x9c7   : > { %3959 = vmatpush.msra.mxu3 %v3886_v40 }
 0x9c8   : > { %3940 = vmatpush.msrb.mxu0 %v3767_v35  ;;  %v3968_v35 = vld [vmem:[%s9475_s17] sm:$0xff] }
 0x9c9   : > { %3960 = vmatpush.msra.mxu3 %v3883_v46 }
 0x9ca   : > { %3941 = vmatpush.msrb.mxu0 %v3764_v43 }
 0x9cb   : > { %3961 = vmatpush.msra.mxu3 %v3880_v20  ;;  %v3975_v20 = vld [vmem:[%s9475_s17 + $0x38] sm:$0xff] }
 0x9cc   : > { %3942 = vmatpush.msrb.mxu0 %v3761_v3 }
 0x9cd   : > { %3943 = vmatmul.f32.vlgmr.msrb.gmra.mxu0 %v3901_v41  ;;  %3962 = vmatpush.msra.mxu3 %v3877_v42  ;;  %v3972_v42 = vld [vmem:[%s9475_s17 + $0x20] sm:$0xff] }
 0x9ce   : > { %5866 = vmatmul.msk.f32.vlgmr.msra.gmra.mxu3 %vm1710_vm9, %v3902_v60  ;;  %3993 = vmatpush.msra.mxu0 %v6127_v0  ;;  %v6141_v60 = vld [vmem:[%s9587_s22 + $0x88] sm:$0xff] }
 0x9cf   : > { %4013 = vmatpush.msrb.mxu3 %v8358_v57 }
 0x9d0   : > { %3994 = vmatpush.msra.mxu0 %v6128_v34 }
 0x9d1   : > { %4014 = vmatpush.msrb.mxu3 %v8366_v8 }
 0x9d2   : > { %4033 = vmatpush.msrb.mxu0 %v6129_v29 }
 0x9d3   : > { %4073 = vmatpush.msra.mxu3 %v8389_v51  ;;  %v6131_v51 = vld [vmem:[%s9587_s22 + $0x18] sm:$0xff] }
 0x9d4   : > { %4034 = vmatpush.msrb.mxu0 %v6130_v14 }
 0x9d5   : > { %4074 = vmatpush.msra.mxu3 %v8394_v12  ;;  %v6132_v12 = vld [vmem:[%s9587_s22 + $0x10] sm:$0xff] }
 0xa30   : > { %v3924_v57 = vpop.f32.mrf.mxu3 }
 0xa31   : > { %v3925_v22 = vadd.f32 %v3924_v57, %v3893_v36  ;;  %v4208_v36 = vpop.permute.xlu2 %4207 }
 0xa4a   : > { %v3944_v18 = vpop.f32.mrf.mxu0 }
 0xa4b   : > { %v3945_v4 = vadd.f32 %v3944_v18, %v3925_v22 }
 0xa51   : > { %v3964_v8 = vpop.f32.mrf.mxu3 }
 0xa52   : > { %v3965_v24 = vadd.f32 %v3964_v8, %v3945_v4  ;;  %v4213_v8 = vpop.permute.xlu0 %4212 }
 0xa54   : > { %v8822_v28 = vadd.f32 %v3965_v24, %v8361_v45 }
 0xa56   : > { %5867 = vmatmul.msk.f32.vlgmr.msra.gmra.mxu0 %vm2930_vm13, %v8822_v28  ;;  %5868 = vmatmul.msk.f32.vlgmr.msrb.gmra.mxu3 %vm2930_vm13, %v8822_v28 }
 0xa57   : > { %5870 = vmatmul.msk.f32.vlgmr.msra.gmra.mxu2 %vm2930_vm13, %v8822_v28  ;;  %4093 = vmatpush.msrb.mxu3 %v8467_v33 }
 0xa58   : > { %4113 = vmatpush.msra.mxu0 %v8413_v21  ;;  %4450 = vmatpush.msra.mxu2 %v6131_v51  ;;  %v6133_v21 = vld [vmem:[%s9587_s22 + $0x48] sm:$0xff] }
 0xa59   : > { %4094 = vmatpush.msrb.mxu3 %v8477_v52 }
 0xa5a   : > { %4114 = vmatpush.msra.mxu0 %v8423_v25  ;;  %4451 = vmatpush.msra.mxu2 %v6132_v12  ;;  %v6134_v25 = vld [vmem:[%s9587_s22 + $0x40] sm:$0xff] }
 0xa5e   : > { %5869 = vmatmul.msk.f32.vlgmr.msrb.gmra.mxu0 %vm2930_vm13, %v8822_v28  ;;  %5871 = vmatmul.msk.f32.vlgmr.msra.gmra.mxu3 %vm2930_vm13, %v8822_v28 }
 0xa5f   : > { %5874 = vmatmul.msk.f32.vlgmr.msrb.gmra.mxu2 %vm2930_vm13, %v8822_v28  ;;  %4153 = vmatpush.msra.mxu3 %v8493_v53 }
 0xa60   : > { %4409 = vmatpush.msrb.mxu0 %v6127_v0  ;;  %4614 = vmatpush.msrb.mxu2 %v8467_v33  ;;  %v6135_v33 = vld [vmem:[%s9587_s22 + $0x68] sm:$0xff]  ;;  %v4203_v0 = vpop.permute.xlu1 %4202 }
 0xa61   : > { %4154 = vmatpush.msra.mxu3 %v8498_v58 }
 0xa62   : > { %4410 = vmatpush.msrb.mxu0 %v6128_v34  ;;  %4615 = vmatpush.msrb.mxu2 %v8477_v52  ;;  %v6136_v52 = vld [vmem:[%s9587_s22 + $0x60] sm:$0xff] }
 0xa66   : > { %5872 = vmatmul.msk.f32.vlgmr.msrb.gmra.mxu3 %vm2930_vm13, %v8822_v28  ;;  %5873 = vmatmul.msk.f32.vlgmr.msra.gmra.mxu0 %vm2930_vm13, %v8822_v28 }
 0xa67   : > { %4491 = vmatpush.msrb.mxu3 %v6129_v29  ;;  %4573 = vmatpush.msra.mxu0 %v6133_v21 }
 0xa68   : > { %v4218_v21 = vpop.permute.xlu1 %4217 }
 0xa69   : > { %4492 = vmatpush.msrb.mxu3 %v6130_v14  ;;  %4574 = vmatpush.msra.mxu0 %v6134_v25  ;;  %v6142_v14 = vld [vmem:[%s9587_s22 + $0x80] sm:$0xff] }
 0xa6e   : > { %5875 = vmatmul.msk.f32.vlgmr.msra.gmra.mxu3 %vm2930_vm13, %v8822_v28 }
 0xa6f   : > { %4655 = vmatpush.msra.mxu3 %v6135_v33 }
 0xa71   : > { %4656 = vmatpush.msra.mxu3 %v6136_v52 }
 0xad3   : > { %v3996_v53 = vpop.f32.mrf.mxu0 }
 0xad9   : > { %v4016_v58 = vpop.f32.mrf.mxu3 }
 0xada   : > { %v4056_v6 = vpop.f32.mrf.mxu2  ;;  %v4160_v32 = vrot.slane %v4016_v58, 5 }
 0xadb   : > { %v4036_v39 = vpop.f32.mrf.mxu0  ;;  %v4166_v49 = vrot.slane %v4056_v6, 7  ;;  %v4228_v6 = vpop.permute.xlu0 %4227 }
 0xadc   : > { %v4163_v50 = vrot.slane %v4036_v39, 2  ;;  %v4180_v31 = vsel %vm979_vm0, %v3996_v53, %v4160_v32  ;;  %v4223_v53 = vpop.permute.xlu2 %4222 }
 0xade   : > { %v4182_v26 = vsel %vm983_vm2, %v4163_v50, %v4166_v49  ;;  %v4181_v11 = vsel %vm981_vm1, %v4180_v31, %v4163_v50 }
 0xae1   : > { %v4076_v47 = vpop.f32.mrf.mxu3 }
 0xae2   : > { %v4136_v30 = vpop.f32.mrf.mxu2  ;;  %v4169_v19 = vrot.slane %v4076_v47, 4 }
 0xae3   : > { %v4116_v56 = vpop.f32.mrf.mxu0  ;;  %v4178_v2 = vrot.slane %v4136_v30, 3  ;;  %v4233_v30 = vpop.permute.xlu1 %4232 }
 0xae4   : > { %v4175_v1 = vrot.slane %v4116_v56, 6  ;;  %v4183_v43 = vsel %vm1311_vm6, %v4182_v26, %v4169_v19 }
 0xae9   : > { %v4096_v61 = vpop.f32.mrf.mxu3 }
 0xaea   : > { %v4172_v16 = vrot.slane %v4096_v61, 1 }
 0xaec   : > { %v4185_v27 = vsel %vm1296_vm7, %v4172_v16, %v4175_v1  ;;  %v4184_v15 = vsel %vm1333_vm5, %v4183_v43, %v4172_v16 }
 0xaed   : > { %v4186_v9 = vsel %vm999_vm3, %v4185_v27, %v4178_v2 }
 0xaf1   : > { %v4156_v3 = vpop.f32.mrf.mxu3 }
 0xaf2   : > { %5876 = vmatpush.msk.msra.mxu1 %vm979_vm0, %v4156_v3 }
 0xaf4   : > { %4275 = vmatpush.msra.mxu1 %v4186_v9 }
 0xaf6   : > { %4276 = vmatpush.msra.mxu1 %v4184_v15 }
 0xaf8   : > { %4277 = vmatpush.msra.mxu1 %v4181_v11 }
 0xaf9   : > { %5877 = vmatmul.msk.f32.vlgmr.msra.gmra.mxu1 %vm2041_vm10, %v3968_v35 }
 0xafa   : > { %4532 = vmatpush.msrb.mxu1 %v6137_v62 }
 0xafc   : > { %4533 = vmatpush.msrb.mxu1 %v6138_v59 }
 0xafe   : > { %4696 = vmatpush.msra.mxu1 %v6139_v13 }
 0xb00   : > { %4697 = vmatpush.msra.mxu1 %v6140_v48 }
 0xb01   : > { %5878 = vmatmul.msk.f32.gmra.mxu1 %vm2041_vm10, %v3969_v55 }
 0xb09   : > { %5879 = vmatmul.msk.f32.gmra.mxu1 %vm2041_vm10, %v3970_v23 }
 0xb11   : > { %5880 = vmatmul.msk.f32.gmra.mxu1 %vm2041_vm10, %v3971_v10 }
 0xb19   : > { %5881 = vmatmul.msk.f32.gmra.mxu1 %vm2041_vm10, %v3972_v42 }
 0xb21   : > { %5882 = vmatmul.msk.f32.gmra.mxu1 %vm2041_vm10, %v3973_v38 }
 0xb29   : > { %5883 = vmatmul.msk.f32.gmra.mxu1 %vm2041_vm10, %v3974_v37 }
 0xb31   : > { %5884 = vmatmul.msk.f32.gmra.mxu1 %vm2041_vm10, %v3975_v20 }
 0xb76   : > { %v4279_v46 = vpop.f32.mrf.mxu1 }
 0xb77   : > { %v4280_v40 = vadd.f32 %v4279_v46, %v4198_v63 }
 0xb79   : > { %v8920_v41 = vmax.f32 %v4280_v40, 0.0 }
 0xb7b   : > { %5885 = vmatmul.msk.f32.vlgmr.msrb.gmra.mxu0 %vm2930_vm13, %v8920_v41  ;;  %5893 = vmatmul.msk.f32.vlgmr.msra.gmra.mxu2 %vm2930_vm13, %v8920_v41 }
 0xb7c   : > { %5901 = vmatmul.msk.f32.vlgmr.msrb.gmra.mxu3 %vm2930_vm13, %v8920_v41  ;;  %5909 = vmatmul.msk.f32.vlgmr.msrb.gmra.mxu1 %vm2930_vm13, %v8920_v41 }
 0xb7d   : > { %4737 = vmatpush.msrb.mxu0 %v6141_v60 }
 0xb7e   : > { %v4282_v34 = vpop.f32.mrf.mxu1 }
 0xb7f   : > { %v4283_v29 = vadd.f32 %v4282_v34, %v4203_v0  ;;  %4738 = vmatpush.msrb.mxu0 %v6142_v14 }
 0xb81   : > { %v8936_v57 = vmax.f32 %v4283_v29, 0.0 }
 0xb83   : > { %5886 = vmatmul.msk.f32.gmra.mxu0 %vm2930_vm13, %v8936_v57  ;;  %5894 = vmatmul.msk.f32.gmra.mxu2 %vm2930_vm13, %v8936_v57 }
 0xb84   : > { %5902 = vmatmul.msk.f32.gmra.mxu3 %vm2930_vm13, %v8936_v57  ;;  %5910 = vmatmul.msk.f32.gmra.mxu1 %vm2930_vm13, %v8936_v57 }
 0xb86   : > { %v4285_v18 = vpop.f32.mrf.mxu1 }
 0xb87   : > { %v4286_v22 = vadd.f32 %v4285_v18, %v4208_v36 }
 0xb89   : > { %v8946_v4 = vmax.f32 %v4286_v22, 0.0 }
 0xb8b   : > { %5887 = vmatmul.msk.f32.gmra.mxu0 %vm2930_vm13, %v8946_v4  ;;  %5895 = vmatmul.msk.f32.gmra.mxu2 %vm2930_vm13, %v8946_v4 }
 0xb8c   : > { %5903 = vmatmul.msk.f32.gmra.mxu3 %vm2930_vm13, %v8946_v4  ;;  %5911 = vmatmul.msk.f32.gmra.mxu1 %vm2930_vm13, %v8946_v4 }
 0xb8e   : > { %v4288_v24 = vpop.f32.mrf.mxu1 }
 0xb8f   : > { %v4289_v51 = vadd.f32 %v4288_v24, %v4213_v8 }
 0xb91   : > { %v8956_v12 = vmax.f32 %v4289_v51, 0.0 }
 0xb93   : > { %5888 = vmatmul.msk.f32.gmra.mxu0 %vm2930_vm13, %v8956_v12  ;;  %5896 = vmatmul.msk.f32.gmra.mxu2 %vm2930_vm13, %v8956_v12 }
 0xb94   : > { %5904 = vmatmul.msk.f32.gmra.mxu3 %vm2930_vm13, %v8956_v12  ;;  %5912 = vmatmul.msk.f32.gmra.mxu1 %vm2930_vm13, %v8956_v12 }
 0xb96   : > { %v4291_v25 = vpop.f32.mrf.mxu1 }
 0xb97   : > { %v4292_v33 = vadd.f32 %v4291_v25, %v4218_v21 }
 0xb99   : > { %v8966_v52 = vmax.f32 %v4292_v33, 0.0  ;;  %v4312_v33 = vld [vmem:[%s9477_s19 + $0x8] sm:$0xff] }
 0xb9b   : > { %5889 = vmatmul.msk.f32.gmra.mxu0 %vm2930_vm13, %v8966_v52  ;;  %5897 = vmatmul.msk.f32.gmra.mxu2 %vm2930_vm13, %v8966_v52 }
 0xb9c   : > { %5905 = vmatmul.msk.f32.gmra.mxu3 %vm2930_vm13, %v8966_v52  ;;  %5913 = vmatmul.msk.f32.gmra.mxu1 %vm2930_vm13, %v8966_v52 }
 0xb9e   : > { %v4294_v58 = vpop.f32.mrf.mxu1 }
 0xb9f   : > { %v4295_v39 = vadd.f32 %v4294_v58, %v4223_v53 }
 0xba1   : > { %v8976_v47 = vmax.f32 %v4295_v39, 0.0  ;;  %v4311_v39 = vld [vmem:[%s9477_s19] sm:$0xff] }
 0xba3   : > { %5890 = vmatmul.msk.f32.gmra.mxu0 %vm2930_vm13, %v8976_v47  ;;  %5898 = vmatmul.msk.f32.gmra.mxu2 %vm2930_vm13, %v8976_v47 }
 0xba4   : > { %5906 = vmatmul.msk.f32.gmra.mxu3 %vm2930_vm13, %v8976_v47  ;;  %5914 = vmatmul.msk.f32.gmra.mxu1 %vm2930_vm13, %v8976_v47 }
 0xba6   : > { %v4297_v61 = vpop.f32.mrf.mxu1 }
 0xba7   : > { %v4298_v56 = vadd.f32 %v4297_v61, %v4228_v6  ;;  %v4317_v6 = vld [vmem:[%s9477_s19 + $0x30] sm:$0xff] }
 0xba9   : > { %v8986_v16 = vmax.f32 %v4298_v56, 0.0 }
 0xbab   : > { %5891 = vmatmul.msk.f32.gmra.mxu0 %vm2930_vm13, %v8986_v16  ;;  %5899 = vmatmul.msk.f32.gmra.mxu2 %vm2930_vm13, %v8986_v16 }
 0xbac   : > { %5907 = vmatmul.msk.f32.gmra.mxu3 %vm2930_vm13, %v8986_v16  ;;  %5915 = vmatmul.msk.f32.gmra.mxu1 %vm2930_vm13, %v8986_v16 }
 0xbae   : > { %v4300_v1 = vpop.f32.mrf.mxu1 }
 0xbaf   : > { %v4301_v50 = vadd.f32 %v4300_v1, %v4233_v30  ;;  %v4316_v30 = vld [vmem:[%s9477_s19 + $0x28] sm:$0xff] }
 0xbb1   : > { %v8996_v32 = vmax.f32 %v4301_v50, 0.0  ;;  %v4322_v50 = vld [vmem:[%s9477_s19 + $0x58] sm:$0xff] }
 0xbb3   : > { %5892 = vmatmul.msk.f32.gmra.mxu0 %vm2930_vm13, %v8996_v32  ;;  %5900 = vmatmul.msk.f32.gmra.mxu2 %vm2930_vm13, %v8996_v32 }
 0xbb4   : > { %5908 = vmatmul.msk.f32.gmra.mxu3 %vm2930_vm13, %v8996_v32  ;;  %5916 = vmatmul.msk.f32.gmra.mxu1 %vm2930_vm13, %v8996_v32 }
 0xbbb   : > { %5917 = vmatmul.msk.f32.vlgmr.msra.gmra.mxu0 %vm2930_vm13, %v8920_v41  ;;  %5925 = vmatmul.msk.f32.vlgmr.msrb.gmra.mxu2 %vm2930_vm13, %v8920_v41 }
 0xbbc   : > { %5933 = vmatmul.msk.f32.vlgmr.msra.gmra.mxu3 %vm2930_vm13, %v8920_v41  ;;  %5941 = vmatmul.msk.f32.vlgmr.msra.gmra.mxu1 %vm2930_vm13, %v8920_v41 }
 0xbc3   : > { %5918 = vmatmul.msk.f32.gmra.mxu0 %vm2930_vm13, %v8936_v57  ;;  %5926 = vmatmul.msk.f32.gmra.mxu2 %vm2930_vm13, %v8936_v57 }
 0xbc4   : > { %5934 = vmatmul.msk.f32.gmra.mxu3 %vm2930_vm13, %v8936_v57  ;;  %5942 = vmatmul.msk.f32.gmra.mxu1 %vm2930_vm13, %v8936_v57 }
 0xbcb   : > { %5919 = vmatmul.msk.f32.gmra.mxu0 %vm2930_vm13, %v8946_v4  ;;  %5927 = vmatmul.msk.f32.gmra.mxu2 %vm2930_vm13, %v8946_v4 }
 0xbcc   : > { %5935 = vmatmul.msk.f32.gmra.mxu3 %vm2930_vm13, %v8946_v4  ;;  %5943 = vmatmul.msk.f32.gmra.mxu1 %vm2930_vm13, %v8946_v4 }
 0xbd3   : > { %5920 = vmatmul.msk.f32.gmra.mxu0 %vm2930_vm13, %v8956_v12  ;;  %5928 = vmatmul.msk.f32.gmra.mxu2 %vm2930_vm13, %v8956_v12 }
 0xbd4   : > { %5936 = vmatmul.msk.f32.gmra.mxu3 %vm2930_vm13, %v8956_v12  ;;  %5944 = vmatmul.msk.f32.gmra.mxu1 %vm2930_vm13, %v8956_v12 }
 0xbdb   : > { %5921 = vmatmul.msk.f32.gmra.mxu0 %vm2930_vm13, %v8966_v52  ;;  %5929 = vmatmul.msk.f32.gmra.mxu2 %vm2930_vm13, %v8966_v52 }
 0xbdc   : > { %5937 = vmatmul.msk.f32.gmra.mxu3 %vm2930_vm13, %v8966_v52  ;;  %5945 = vmatmul.msk.f32.gmra.mxu1 %vm2930_vm13, %v8966_v52 }
 0xbe3   : > { %5922 = vmatmul.msk.f32.gmra.mxu0 %vm2930_vm13, %v8976_v47  ;;  %5930 = vmatmul.msk.f32.gmra.mxu2 %vm2930_vm13, %v8976_v47 }
 0xbe4   : > { %5938 = vmatmul.msk.f32.gmra.mxu3 %vm2930_vm13, %v8976_v47  ;;  %5946 = vmatmul.msk.f32.gmra.mxu1 %vm2930_vm13, %v8976_v47 }
 0xbeb   : > { %5923 = vmatmul.msk.f32.gmra.mxu0 %vm2930_vm13, %v8986_v16  ;;  %5931 = vmatmul.msk.f32.gmra.mxu2 %vm2930_vm13, %v8986_v16 }
 0xbec   : > { %5939 = vmatmul.msk.f32.gmra.mxu3 %vm2930_vm13, %v8986_v16  ;;  %5947 = vmatmul.msk.f32.gmra.mxu1 %vm2930_vm13, %v8986_v16 }
 0xbf3   : > { %5924 = vmatmul.msk.f32.gmra.mxu0 %vm2930_vm13, %v8996_v32  ;;  %5932 = vmatmul.msk.f32.gmra.mxu2 %vm2930_vm13, %v8996_v32 }
 0xbf4   : > { %5940 = vmatmul.msk.f32.gmra.mxu3 %vm2930_vm13, %v8996_v32  ;;  %5948 = vmatmul.msk.f32.gmra.mxu1 %vm2930_vm13, %v8996_v32 }
 0xbf8   : > { %v9070_v19 = vpop.f32.mrf.mxu0 }
 0xbf9   : > { %v4535_v27 = vpop.f32.mrf.mxu1 }
 0xbfb   : > { %5949 = vmatmul.msk.f32.vlgmr.msrb.gmra.mxu0 %vm2930_vm13, %v8920_v41 }
 0xbfe   : > { %v4453_v49 = vpop.f32.mrf.mxu2 }
 0xbff   : > { %v9074_v2 = vpop.f32.mrf.mxu3 }
 0xc00   : > { %v9076_v3 = vpop.f32.mrf.mxu0 }
 0xc01   : > { %v4538_v9 = vpop.f32.mrf.mxu1 }
 0xc03   : > { %5950 = vmatmul.msk.f32.gmra.mxu0 %vm2930_vm13, %v8936_v57 }
 0xc06   : > { %v4456_v26 = vpop.f32.mrf.mxu2 }
 0xc07   : > { %v9080_v43 = vpop.f32.mrf.mxu3 }
 0xc08   : > { %v9082_v31 = vpop.f32.mrf.mxu0 }
 0xc09   : > { %v4541_v15 = vpop.f32.mrf.mxu1 }
 0xc0b   : > { %5951 = vmatmul.msk.f32.gmra.mxu0 %vm2930_vm13, %v8946_v4 }
 0xc0e   : > { %v4459_v35 = vpop.f32.mrf.mxu2 }
 0xc0f   : > { %v4500_v11 = vpop.f32.mrf.mxu3 }
 0xc10   : > { %v9086_v62 = vpop.f32.mrf.mxu0 }
 0xc11   : > { %v4544_v59 = vpop.f32.mrf.mxu1 }
 0xc13   : > { %5952 = vmatmul.msk.f32.gmra.mxu0 %vm2930_vm13, %v8956_v12 }
 0xc16   : > { %v4462_v13 = vpop.f32.mrf.mxu2 }
 0xc17   : > { %v4503_v55 = vpop.f32.mrf.mxu3 }
 0xc18   : > { %v4424_v48 = vpop.f32.mrf.mxu0 }
 0xc19   : > { %v4547_v23 = vpop.f32.mrf.mxu1 }
 0xc1b   : > { %5953 = vmatmul.msk.f32.gmra.mxu0 %vm2930_vm13, %v8966_v52 }
 0xc1e   : > { %v4465_v10 = vpop.f32.mrf.mxu2 }
 0xc1f   : > { %v4506_v42 = vpop.f32.mrf.mxu3 }
 0xc20   : > { %v4427_v38 = vpop.f32.mrf.mxu0 }
 0xc21   : > { %v4550_v37 = vpop.f32.mrf.mxu1 }
 0xc23   : > { %5954 = vmatmul.msk.f32.gmra.mxu0 %vm2930_vm13, %v8976_v47 }
 0xc26   : > { %v4468_v20 = vpop.f32.mrf.mxu2 }
 0xc27   : > { %v4509_v63 = vpop.f32.mrf.mxu3 }
 0xc28   : > { %v4430_v46 = vpop.f32.mrf.mxu0 }
 0xc29   : > { %v4553_v40 = vpop.f32.mrf.mxu1 }
 0xc2b   : > { %5955 = vmatmul.msk.f32.gmra.mxu0 %vm2930_vm13, %v8986_v16 }
 0xc2e   : > { %v4471_v41 = vpop.f32.mrf.mxu2 }
 0xc2f   : > { %v4512_v60 = vpop.f32.mrf.mxu3 }
 0xc30   : > { %v4433_v0 = vpop.f32.mrf.mxu0 }
 0xc31   : > { %v4556_v34 = vpop.f32.mrf.mxu1 }
 0xc32   : > { %4925 = vmatpush.msrb.mxu3 %v4556_v34  ;;  %v4351_v34 = vld [vmem:[%s9477_s19 + $0x140] sm:$0xff] }
 0xc33   : > { %5956 = vmatmul.msk.f32.gmra.mxu0 %vm2930_vm13, %v8996_v32 }
 0xc34   : > { %4926 = vmatpush.msrb.mxu3 %v4553_v40  ;;  %v4346_v40 = vld [vmem:[%s9477_s19 + $0x118] sm:$0xff] }
 0xc36   : > { %4927 = vmatpush.msrb.mxu3 %v4550_v37  ;;  %v4474_v29 = vpop.f32.mrf.mxu2 }
 0xc37   : > { %v4515_v14 = vpop.f32.mrf.mxu3  ;;  %4872 = vmatpush.msra.mxu2 %v4474_v29  ;;  %v4313_v29 = vld [vmem:[%s9477_s19 + $0x10] sm:$0xff] }
 0xc38   : > { %4928 = vmatpush.msrb.mxu3 %v4547_v23  ;;  %v9098_v57 = vpop.f32.mrf.mxu0 }
 0xc39   : > { %v9100_v36 = vpop.f32.mrf.mxu1  ;;  %4873 = vmatpush.msra.mxu2 %v4471_v41  ;;  %v4352_v41 = vld [vmem:[%s9477_s19 + $0x148] sm:$0xff] }
 0xc3a   : > { %4929 = vmatpush.msrb.mxu3 %v4544_v59  ;;  %v4331_v59 = vld [vmem:[%s9477_s19 + $0xa0] sm:$0xff] }
 0xc3b   : > { %4874 = vmatpush.msra.mxu2 %v4468_v20  ;;  %v4341_v20 = vld [vmem:[%s9477_s19 + $0xf0] sm:$0xff] }
 0xc3c   : > { %4930 = vmatpush.msrb.mxu3 %v4541_v15 }
 0xc3d   : > { %4875 = vmatpush.msra.mxu2 %v4465_v10  ;;  %v4336_v10 = vld [vmem:[%s9477_s19 + $0xc8] sm:$0xff] }
 0xc3e   : > { %4931 = vmatpush.msrb.mxu3 %v4538_v9  ;;  %v9102_v18 = vpop.f32.mrf.mxu2 }
 0xc3f   : > { %v9104_v22 = vpop.f32.mrf.mxu3  ;;  %4876 = vmatpush.msra.mxu2 %v4462_v13 }
 0xc40   : > { %4932 = vmatpush.msrb.mxu3 %v4535_v27  ;;  %v9106_v4 = vpop.f32.mrf.mxu0 }
 0xc41   : > { %v9108_v8 = vpop.f32.mrf.mxu1  ;;  %4877 = vmatpush.msra.mxu2 %v4459_v35  ;;  %v4332_v35 = vld [vmem:[%s9477_s19 + $0xa8] sm:$0xff] }
 0xc42   : > { %4933 = vmatpush.msrb.mxu3 %v4515_v14  ;;  %v4357_v14 = vld [vmem:[%s9477_s19 + $0x170] sm:$0xff] }
 0xc43   : > { %4878 = vmatpush.msra.mxu2 %v4456_v26 }
 0xc44   : > { %4934 = vmatpush.msrb.mxu3 %v4512_v60  ;;  %v4314_v60 = vld [vmem:[%s9477_s19 + $0x18] sm:$0xff] }
 0xc45   : > { %4879 = vmatpush.msra.mxu2 %v4453_v49  ;;  %v4321_v49 = vld [vmem:[%s9477_s19 + $0x50] sm:$0xff] }
 0xc46   : > { %4935 = vmatpush.msrb.mxu3 %v4509_v63  ;;  %v9110_v24 = vpop.f32.mrf.mxu2  ;;  %v4347_v63 = vld [vmem:[%s9477_s19 + $0x120] sm:$0xff] }
 0xc47   : > { %v9112_v51 = vpop.f32.mrf.mxu3  ;;  %4880 = vmatpush.msra.mxu2 %v4433_v0 }
 0xc48   : > { %4936 = vmatpush.msrb.mxu3 %v4506_v42  ;;  %v9114_v12 = vpop.f32.mrf.mxu0  ;;  %v4342_v42 = vld [vmem:[%s9477_s19 + $0xf8] sm:$0xff] }
 0xc49   : > { %v9116_v21 = vpop.f32.mrf.mxu1  ;;  %4881 = vmatpush.msra.mxu2 %v4430_v46 }
 0xc4a   : > { %4937 = vmatpush.msrb.mxu3 %v4503_v55  ;;  %v4337_v55 = vld [vmem:[%s9477_s19 + $0xd0] sm:$0xff] }
 0xc4b   : > { %4882 = vmatpush.msra.mxu2 %v4427_v38 }
 0xc4c   : > { %4938 = vmatpush.msrb.mxu3 %v4500_v11 }
 0xc4d   : > { %4883 = vmatpush.msra.mxu2 %v4424_v48 }
 0xc4e   : > { %4939 = vmatpush.msrb.mxu3 %v9080_v43  ;;  %v9119_v25 = vpop.f32.mrf.mxu2  ;;  %v4326_v43 = vld [vmem:[%s9477_s19 + $0x78] sm:$0xff] }
 0xc4f   : > { %v9124_v52 = vpop.f32.mrf.mxu3  ;;  %4884 = vmatpush.msra.mxu2 %v9086_v62 }
 0xc50   : > { %4940 = vmatpush.msrb.mxu3 %v9074_v2  ;;  %v9128_v53 = vpop.f32.mrf.mxu0 }
 0xc51   : > { %v4708_v58 = vpop.f32.mrf.mxu1  ;;  %4885 = vmatpush.msra.mxu2 %v9082_v31  ;;  %4941 = vmatmul.f32.vlgmr.msrb.gmra.mxu3 %v4312_v33 }
 0xc53   : > { %4886 = vmatpush.msra.mxu2 %v9076_v3  ;;  %v4327_v3 = vld [vmem:[%s9477_s19 + $0x80] sm:$0xff] }
 0xc55   : > { %4887 = vmatpush.msra.mxu2 %v9070_v19 }
 0xc56   : > { %v4626_v47 = vpop.f32.mrf.mxu2  ;;  %4888 = vmatmul.f32.vlgmr.msra.gmra.mxu2 %v4311_v39 }
 0xc57   : > { %v9141_v56 = vpop.f32.mrf.mxu3 }
 0xc58   : > { %v9139_v61 = vpop.f32.mrf.mxu0 }
 0xc59   : > { %v4711_v16 = vpop.f32.mrf.mxu1  ;;  %4944 = vmatmul.f32.gmra.mxu3 %v4317_v6  ;;  %v4339_v6 = vld [vmem:[%s9477_s19 + $0xe0] sm:$0xff] }
 0xc5e   : > { %v4629_v1 = vpop.f32.mrf.mxu2  ;;  %4891 = vmatmul.f32.gmra.mxu2 %v4316_v30  ;;  %v4343_v30 = vld [vmem:[%s9477_s19 + $0x100] sm:$0xff] }
 0xc5f   : > { %v4670_v27 = vpop.f32.mrf.mxu3 }
 0xc60   : > { %v4591_v32 = vpop.f32.mrf.mxu0 }
 0xc61   : > { %v4714_v19 = vpop.f32.mrf.mxu1  ;;  %4947 = vmatmul.f32.gmra.mxu3 %v4322_v50  ;;  %v4349_v50 = vld [vmem:[%s9477_s19 + $0x130] sm:$0xff] }
 0xc66   : > { %v4632_v2 = vpop.f32.mrf.mxu2  ;;  %4894 = vmatmul.f32.gmra.mxu2 %v4321_v49  ;;  %v4353_v49 = vld [vmem:[%s9477_s19 + $0x150] sm:$0xff] }
 0xc67   : > { %v4673_v31 = vpop.f32.mrf.mxu3 }
 0xc68   : > { %v4594_v9 = vpop.f32.mrf.mxu0 }
 0xc69   : > { %v4717_v26 = vpop.f32.mrf.mxu1  ;;  %4950 = vmatmul.f32.gmra.mxu3 %v4327_v3  ;;  %v4359_v3 = vld [vmem:[%s9477_s19 + $0x180] sm:$0xff] }
 0xc6e   : > { %v4635_v15 = vpop.f32.mrf.mxu2  ;;  %4897 = vmatmul.f32.gmra.mxu2 %v4326_v43  ;;  %v4335_v43 = vld [vmem:[%s9477_s19 + $0xc0] sm:$0xff] }
 0xc6f   : > { %v4676_v48 = vpop.f32.mrf.mxu3 }
 0xc70   : > { %v4597_v11 = vpop.f32.mrf.mxu0 }
 0xc71   : > { %v4720_v62 = vpop.f32.mrf.mxu1  ;;  %4953 = vmatmul.f32.gmra.mxu3 %v4332_v35  ;;  %v4363_v35 = vld [vmem:[%s9477_s19 + $0x1a0] sm:$0xff] }
 0xc72   : > { %5031 = vmatpush.msra.mxu0 %v4720_v62  ;;  %v4369_v62 = vld [vmem:[%s9477_s19 + $0x1d0] sm:$0x3] }
 0xc74   : > { %5032 = vmatpush.msra.mxu0 %v4717_v26  ;;  %v4358_v26 = vld [vmem:[%s9477_s19 + $0x178] sm:$0xff] }
 0xc76   : > { %5033 = vmatpush.msra.mxu0 %v4714_v19  ;;  %v4638_v13 = vpop.f32.mrf.mxu2  ;;  %4900 = vmatmul.f32.gmra.mxu2 %v4331_v59  ;;  %v4325_v19 = vld [vmem:[%s9477_s19 + $0x70] sm:$0xff] }
 0xc77   : > { %4978 = vmatpush.msrb.mxu1 %v4638_v13  ;;  %v4679_v37 = vpop.f32.mrf.mxu3  ;;  %v4368_v13 = vld [vmem:[%s9477_s19 + $0x1c8] sm:$0x3] }
 0xc78   : > { %5034 = vmatpush.msra.mxu0 %v4711_v16  ;;  %v9167_v23 = vpop.f32.mrf.mxu0  ;;  %v4344_v16 = vld [vmem:[%s9477_s19 + $0x108] sm:$0xff] }
 0xc79   : > { %4979 = vmatpush.msrb.mxu1 %v4635_v15  ;;  %4956 = vmatmul.f32.gmra.mxu3 %v4337_v55  ;;  %v4345_v55 = vld [vmem:[%s9477_s19 + $0x110] sm:$0xff] }
 0xc7a   : > { %5035 = vmatpush.msra.mxu0 %v4708_v58  ;;  %v4334_v58 = vld [vmem:[%s9477_s19 + $0xb8] sm:$0xff] }
 0xc7b   : > { %4980 = vmatpush.msrb.mxu1 %v4632_v2  ;;  %v4330_v2 = vld [vmem:[%s9477_s19 + $0x98] sm:$0xff] }
 0xc7c   : > { %5036 = vmatpush.msra.mxu0 %v9116_v21  ;;  %v4367_v21 = vld [vmem:[%s9477_s19 + $0x1c0] sm:$0x3] }
 0xc7d   : > { %4981 = vmatpush.msrb.mxu1 %v4629_v1  ;;  %v4320_v1 = vld [vmem:[%s9477_s19 + $0x48] sm:$0xff] }
 0xc7e   : > { %5037 = vmatpush.msra.mxu0 %v9108_v8  ;;  %4903 = vmatmul.f32.gmra.mxu2 %v4336_v10  ;;  %v4324_v8 = vld [vmem:[%s9477_s19 + $0x68] sm:$0xff] }
 0xc7f   : > { %4982 = vmatpush.msrb.mxu1 %v4626_v47  ;;  %v4333_v47 = vld [vmem:[%s9477_s19 + $0xb0] sm:$0xff] }
 0xc80   : > { %5038 = vmatpush.msra.mxu0 %v9100_v36  ;;  %v9178_v38 = vpop.f32.mrf.mxu0  ;;  %v4319_v36 = vld [vmem:[%s9477_s19 + $0x40] sm:$0xff] }
 0xc81   : > { %4983 = vmatpush.msrb.mxu1 %v9119_v25  ;;  %4959 = vmatmul.f32.gmra.mxu3 %v4342_v42  ;;  %v4329_v25 = vld [vmem:[%s9477_s19 + $0x90] sm:$0xff]  ;;  %v4355_v42 = vld [vmem:[%s9477_s19 + $0x160] sm:$0xff] }
 0xc82   : > { %5039 = vmatpush.msra.mxu0 %v4679_v37  ;;  %v4360_v37 = vld [vmem:[%s9477_s19 + $0x188] sm:$0xff] }
 0xc83   : > { %4984 = vmatpush.msrb.mxu1 %v9110_v24 }
 0xc84   : > { %5040 = vmatpush.msra.mxu0 %v4676_v48 }
 0xc85   : > { %4985 = vmatpush.msrb.mxu1 %v9102_v18 }
 0xc86   : > { %5041 = vmatpush.msra.mxu0 %v4673_v31  ;;  %4906 = vmatmul.f32.gmra.mxu2 %v4341_v20  ;;  %v4364_v31 = vld [vmem:[%s9477_s19 + $0x1a8] sm:$0xff] }
 0xc87   : > { %4986 = vmatpush.msrb.mxu1 %v4597_v11  ;;  %v4340_v11 = vld [vmem:[%s9477_s19 + $0xe8] sm:$0xff] }
 0xc88   : > { %5042 = vmatpush.msra.mxu0 %v4670_v27  ;;  %v4746_v46 = vpop.f32.mrf.mxu0  ;;  %v4354_v27 = vld [vmem:[%s9477_s19 + $0x158] sm:$0xff] }
 0xc89   : > { %4987 = vmatpush.msrb.mxu1 %v4594_v9  ;;  %4962 = vmatmul.f32.gmra.mxu3 %v4347_v63  ;;  %v4365_v63 = vld [vmem:[%s9477_s19 + $0x1b0] sm:$0xff] }
 0xc8a   : > { %5043 = vmatpush.msra.mxu0 %v9141_v56  ;;  %v4315_v56 = vld [vmem:[%s9477_s19 + $0x20] sm:$0xff] }
 0xc8b   : > { %4988 = vmatpush.msrb.mxu1 %v4591_v32  ;;  %v4348_v32 = vld [vmem:[%s9477_s19 + $0x128] sm:$0xff] }
 0xc8c   : > { %5044 = vmatpush.msra.mxu0 %v9124_v52  ;;  %v4366_v52 = vld [vmem:[%s9477_s19 + $0x1b8] sm:$0x3] }
 0xc8d   : > { %4989 = vmatpush.msrb.mxu1 %v9139_v61  ;;  %v4338_v61 = vld [vmem:[%s9477_s19 + $0xd8] sm:$0xff] }
 0xc8e   : > { %5045 = vmatpush.msra.mxu0 %v9112_v51  ;;  %4909 = vmatmul.f32.gmra.mxu2 %v4346_v40  ;;  %v4361_v51 = vld [vmem:[%s9477_s19 + $0x190] sm:$0xff]  ;;  %v4370_v40 = vld [vmem:[%s9477_s19 + $0x1d8] sm:$0x3] }
 0xc8f   : > { %4990 = vmatpush.msrb.mxu1 %v9128_v53  ;;  %v4328_v53 = vld [vmem:[%s9477_s19 + $0x88] sm:$0xff] }
 0xc90   : > { %5046 = vmatpush.msra.mxu0 %v9104_v22  ;;  %v4749_v0 = vpop.f32.mrf.mxu0  ;;  %v4356_v22 = vld [vmem:[%s9477_s19 + $0x168] sm:$0xff] }
 0xc91   : > { %4991 = vmatpush.msrb.mxu1 %v9114_v12  ;;  %4965 = vmatmul.f32.gmra.mxu3 %v4352_v41  ;;  %v4323_v12 = vld [vmem:[%s9477_s19 + $0x60] sm:$0xff] }
 0xc92   : > { %5047 = vmatmul.f32.vlgmr.msra.gmra.mxu0 %v4314_v60 }
 0xc93   : > { %4992 = vmatpush.msrb.mxu1 %v9106_v4  ;;  %v4362_v4 = vld [vmem:[%s9477_s19 + $0x198] sm:$0xff] }
 0xc95   : > { %4993 = vmatpush.msrb.mxu1 %v9098_v57  ;;  %v4318_v57 = vld [vmem:[%s9477_s19 + $0x38] sm:$0xff] }
 0xc96   : > { %4912 = vmatmul.f32.gmra.mxu2 %v4351_v34  ;;  %4994 = vmatmul.f32.vlgmr.msrb.gmra.mxu1 %v4313_v29 }
 0xc98   : > { %v4752_v18 = vpop.f32.mrf.mxu0 }
 0xc99   : > { %4968 = vmatmul.f32.gmra.mxu3 %v4357_v14 }
 0xc9a   : > { %5050 = vmatmul.f32.gmra.mxu0 %v4319_v36 }
 0xc9e   : > { %4915 = vmatmul.f32.gmra.mxu2 %v4356_v22  ;;  %4997 = vmatmul.f32.gmra.mxu1 %v4318_v57  ;;  %v4779_v57 = vpop.permute.xlu2 %4778 }
 0xca0   : > { %v4755_v24 = vpop.f32.mrf.mxu0 }
 0xca1   : > { %4971 = vmatmul.f32.gmra.mxu3 %v4362_v4 }
 0xca2   : > { %5053 = vmatmul.f32.gmra.mxu0 %v4324_v8 }
 0xca6   : > { %4918 = vmatmul.f32.gmra.mxu2 %v4361_v51  ;;  %5000 = vmatmul.f32.gmra.mxu1 %v4323_v12 }
 0xca8   : > { %v4758_v33 = vpop.f32.mrf.mxu0 }
 0xca9   : > { %4974 = vmatmul.f32.gmra.mxu3 %v4367_v21 }
 0xcaa   : > { %5056 = vmatmul.f32.gmra.mxu0 %v4329_v25 }
 0xcae   : > { %4921 = vmatmul.f32.gmra.mxu2 %v4366_v52  ;;  %5003 = vmatmul.f32.gmra.mxu1 %v4328_v53 }
 0xcb0   : > { %v4761_v39 = vpop.f32.mrf.mxu0 }
 0xcb1   : > { %5092 = vmatpush.msrb.mxu2 %v4761_v39 }
 0xcb2   : > { %5059 = vmatmul.f32.gmra.mxu0 %v4334_v58 }
 0xcb3   : > { %5093 = vmatpush.msrb.mxu2 %v4758_v33  ;;  %v4784_v33 = vpop.permute.xlu0 %4783 }
 0xcb5   : > { %5094 = vmatpush.msrb.mxu2 %v4755_v24 }
 0xcb6   : > { %5006 = vmatmul.f32.gmra.mxu1 %v4333_v47 }
 0xcb7   : > { %5095 = vmatpush.msrb.mxu2 %v4752_v18 }
 0xcb9   : > { %5096 = vmatpush.msrb.mxu2 %v4749_v0 }
 0xcba   : > { %5062 = vmatmul.f32.gmra.mxu0 %v4339_v6 }
 0xcbb   : > { %5097 = vmatpush.msrb.mxu2 %v4746_v46 }
 0xcbd   : > { %5098 = vmatpush.msrb.mxu2 %v9178_v38 }
 0xcbe   : > { %5009 = vmatmul.f32.gmra.mxu1 %v4338_v61 }
 0xcbf   : > { %5099 = vmatpush.msrb.mxu2 %v9167_v23  ;;  %v4350_v23 = vld [vmem:[%s9477_s19 + $0x138] sm:$0xff] }
 0xcc0   : > { %5957 = vmatmul.msk.f32.vlgmr.msrb.gmra.mxu2 %vm1003_vm4, %v4315_v56 }
 0xcc2   : > { %5065 = vmatmul.f32.gmra.mxu0 %v4344_v16 }
 0xcc6   : > { %5012 = vmatmul.f32.gmra.mxu1 %v4343_v30  ;;  %v4789_v30 = vpop.permute.xlu1 %4788 }
 0xcc8   : > { %5958 = vmatmul.msk.f32.gmra.mxu2 %vm1003_vm4, %v4320_v1 }
 0xcca   : > { %5068 = vmatmul.f32.gmra.mxu0 %v4349_v50 }
 0xcce   : > { %5015 = vmatmul.f32.gmra.mxu1 %v4348_v32 }
 0xcd0   : > { %5959 = vmatmul.msk.f32.gmra.mxu2 %vm1003_vm4, %v4325_v19 }
 0xcd2   : > { %5071 = vmatmul.f32.gmra.mxu0 %v4354_v27 }
 0xcd4   : > { %v4942_v60 = vpop.f32.mrf.mxu3 }
 0xcd6   : > { %5018 = vmatmul.f32.gmra.mxu1 %v4353_v49 }
 0xcd8   : > { %5960 = vmatmul.msk.f32.gmra.mxu2 %vm1003_vm4, %v4330_v2 }
 0xcd9   : > { %v4889_v9 = vpop.f32.mrf.mxu2 }
 0xcda   : > { %5074 = vmatmul.f32.gmra.mxu0 %v4359_v3  ;;  %v4890_v8 = vadd.f32 %v4889_v9, %v4779_v57 }
 0xcdc   : > { %v4945_v14 = vpop.f32.mrf.mxu3  ;;  %v4943_v12 = vadd.f32 %v4942_v60, %v4890_v8 }
 0xcde   : > { %5021 = vmatmul.f32.gmra.mxu1 %v4358_v26 }
 0xce0   : > { %5961 = vmatmul.msk.f32.gmra.mxu2 %vm1003_vm4, %v4335_v43 }
 0xce1   : > { %v4892_v15 = vpop.f32.mrf.mxu2 }
 0xce2   : > { %5077 = vmatmul.f32.gmra.mxu0 %v4364_v31  ;;  %v4893_v52 = vadd.f32 %v4892_v15, %v4784_v33  ;;  %v4794_v31 = vpop.permute.xlu2 %4793 }
 0xce4   : > { %v4948_v4 = vpop.f32.mrf.mxu3  ;;  %v4946_v6 = vadd.f32 %v4945_v14, %v4893_v52  ;;  %v4804_v52 = vpop.permute.xlu1 %4803 }
 0xce6   : > { %5024 = vmatmul.f32.gmra.mxu1 %v4363_v35 }
 0xce8   : > { %5962 = vmatmul.msk.f32.gmra.mxu2 %vm1003_vm4, %v4340_v11 }
 0xce9   : > { %v4895_v59 = vpop.f32.mrf.mxu2 }
 0xcea   : > { %5080 = vmatmul.f32.gmra.mxu0 %v4369_v62  ;;  %v4896_v50 = vadd.f32 %v4895_v59, %v4789_v30 }
 0xcec   : > { %v4951_v53 = vpop.f32.mrf.mxu3  ;;  %v4949_v49 = vadd.f32 %v4948_v4, %v4896_v50 }
 0xcee   : > { %5027 = vmatmul.f32.gmra.mxu1 %v4368_v13 }
 0xcf0   : > { %5963 = vmatmul.msk.f32.gmra.mxu2 %vm1003_vm4, %v4345_v55 }
 0xcf1   : > { %v4898_v48 = vpop.f32.mrf.mxu2 }
 0xcf2   : > { %v4899_v35 = vadd.f32 %v4898_v48, %v4794_v31 }
 0xcf4   : > { %v4954_v19 = vpop.f32.mrf.mxu3  ;;  %v4952_v55 = vadd.f32 %v4951_v53, %v4899_v35  ;;  %v4809_v35 = vpop.permute.xlu2 %4808 }
 0xcf8   : > { %5964 = vmatmul.msk.f32.gmra.mxu2 %vm1003_vm4, %v4350_v23 }
 0xcf9   : > { %v9331_v10 = vpop.f32.mrf.mxu2 }
 0xcfc   : > { %v4957_v23 = vpop.f32.mrf.mxu3 }
 0xd00   : > { %5965 = vmatmul.msk.f32.gmra.mxu2 %vm1003_vm4, %v4355_v42 }
 0xd01   : > { %v9337_v38 = vpop.f32.mrf.mxu2 }
 0xd08   : > { %5966 = vmatmul.msk.f32.gmra.mxu2 %vm1003_vm4, %v4360_v37  ;;  %v4799_v37 = vpop.permute.xlu0 %4798 }
 0xd09   : > { %v9343_v20 = vpop.f32.mrf.mxu2 }
 0xd0f   : > { %v5048_v29 = vpop.f32.mrf.mxu0 }
 0xd10   : > { %5967 = vmatmul.msk.f32.gmra.mxu2 %vm1003_vm4, %v4365_v63 }
 0xd11   : > { %v9349_v46 = vpop.f32.mrf.mxu2 }
 0xd13   : > { %v4995_v0 = vpop.f32.mrf.mxu1 }
 0xd14   : > { %v4996_v25 = vadd.f32 %v4995_v0, %v4943_v12  ;;  %v4902_v0 = vadd.f32 %v9331_v10, %v4799_v37 }
 0xd16   : > { %v5049_v58 = vadd.f32 %v5048_v29, %v4996_v25  ;;  %v4955_v57 = vadd.f32 %v4954_v19, %v4902_v0 }
 0xd17   : > { %v5051_v22 = vpop.f32.mrf.mxu0 }
 0xd18   : > { %5968 = vmatmul.msk.f32.gmra.mxu2 %vm1003_vm4, %v4370_v40 }
 0xd19   : > { %v9355_v41 = vpop.f32.mrf.mxu2 }
 0xd1b   : > { %v4998_v36 = vpop.f32.mrf.mxu1 }
 0xd1c   : > { %v4999_v56 = vadd.f32 %v4998_v36, %v4946_v6  ;;  %v4960_v6 = vpop.f32.mrf.mxu3 }
 0xd1e   : > { %v5052_v32 = vadd.f32 %v5051_v22, %v4999_v56 }
 0xd1f   : > { %v5054_v21 = vpop.f32.mrf.mxu0 }
 0xd21   : > { %v9357_v34 = vpop.f32.mrf.mxu2 }
 0xd23   : > { %v5001_v24 = vpop.f32.mrf.mxu1 }
 0xd24   : > { %v5002_v26 = vadd.f32 %v5001_v24, %v4949_v49 }
 0xd26   : > { %v5055_v62 = vadd.f32 %v5054_v21, %v5002_v26 }
 0xd27   : > { %v5057_v1 = vpop.f32.mrf.mxu0 }
 0xd29   : > { %v9359_v18 = vpop.f32.mrf.mxu2 }
 0xd2b   : > { %v5004_v39 = vpop.f32.mrf.mxu1 }
 0xd2c   : > { %v5005_v63 = vadd.f32 %v5004_v39, %v4952_v55 }
 0xd2e   : > { %v5058_v48 = vadd.f32 %v5057_v1, %v5005_v63 }
 0xd2f   : > { %v5060_v11 = vpop.f32.mrf.mxu0 }
 0xd31   : > { %v9361_v51 = vpop.f32.mrf.mxu2 }
 0xd33   : > { %v5007_v3 = vpop.f32.mrf.mxu1 }
 0xd34   : > { %v5008_v53 = vadd.f32 %v5007_v3, %v4955_v57 }
 0xd36   : > { %v5061_v50 = vadd.f32 %v5060_v11, %v5008_v53  ;;  %v4908_v11 = vadd.f32 %v9343_v20, %v4809_v35 }
 0xd37   : > { %v5063_v4 = vpop.f32.mrf.mxu0 }
 0xd3b   : > { %v5010_v29 = vpop.f32.mrf.mxu1 }
 0xd3f   : > { %v5066_v26 = vpop.f32.mrf.mxu0 }
 0xd43   : > { %v5101_v47 = vpop.f32.mrf.mxu2  ;;  %v5013_v1 = vpop.f32.mrf.mxu1 }
 0xd44   : > { %v5102_v61 = vadd.f32 %v5101_v47, %v5049_v58  ;;  %v4905_v47 = vadd.f32 %v9337_v38, %v4804_v52 }
 0xd46   : > { %v5969_v16 = vmul.f32 -1.442695, %v5102_v61 }
 0xd48   : > { %6019 = vpow2.f32 %v5969_v16 }
 0xd4b   : > { %v5104_v27 = vpop.f32.mrf.mxu2 }
 0xd4c   : > { %v5105_v2 = vadd.f32 %v5104_v27, %v5052_v32  ;;  %v4958_v27 = vadd.f32 %v4957_v23, %v4905_v47 }
 0xd4e   : > { %v6020_v9 = vpop.eup %6019  ;;  %v5970_v43 = vmul.f32 -1.442695, %v5105_v2 }
 0xd4f   : > { %v5155_v15 = vadd.f32 1.0, %v6020_v9 }
 0xd50   : > { %6021 = vpow2.f32 %v5970_v43 }
 0xd51   : > { %6023 = vrcp.f32 %v5155_v15  ;;  %v5172_v12 = vand.u32 2147483648, %v5155_v15  ;;  %v5170_v25 = vand.u32 2147483647, %v5155_v15  ;;  %vm5166_vm3 = vweird.f32 %v5155_v15 }
 0xd53   : > { %v5107_v13 = vpop.f32.mrf.mxu2  ;;  %v5173_v56 = vor.u32 1.1754944e-38, %v5172_v12  ;;  %vm5171_vm5 = vcmp.eq.f32.partialorder %v5170_v25, 8.507059e+37 }
 0xd54   : > { %v5108_v59 = vadd.f32 %v5107_v13, %v5055_v62  ;;  %v5011_v62 = vadd.f32 %v5010_v29, %v4958_v27 }
 0xd56   : > { %v6022_v42 = vpop.eup %6021  ;;  %v5971_v40 = vmul.f32 -1.442695, %v5108_v59  ;;  %v5064_v0 = vadd.f32 %v5063_v4, %v5011_v62 }
 0xd57   : > { %v6024_v60 = vpop.eup %6023  ;;  %v5156_v14 = vadd.f32 1.0, %v6022_v42 }
 0xd58   : > { %v5162_v36 = vmul.f32 %v6024_v60, %v5155_v15  ;;  %6025 = vpow2.f32 %v5971_v40  ;;  %vm5167_vm2 = vweird.f32 %v6024_v60 }
 0xd59   : > { %6027 = vrcp.f32 %v5156_v14  ;;  %vm5168_vm4 = vmor %vm5166_vm3, %vm5167_vm2  ;;  %v5187_v38 = vand.u32 2147483648, %v5156_v14  ;;  %v5185_v43 = vand.u32 2147483647, %v5156_v14  ;;  %vm5181_vm7 = vweird.f32 %v5156_v14 }
 0xd5a   : > { %v5163_v22 = vsub.f32 1.0, %v5162_v36  ;;  %v4961_v36 = vadd.f32 %v4960_v6, %v4908_v11 }
 0xd5b   : > { %v5110_v8 = vpop.f32.mrf.mxu2  ;;  %v5188_v63 = vor.u32 1.1754944e-38, %v5187_v38  ;;  %vm5186_vm10 = vcmp.eq.f32.partialorder %v5185_v43, 8.507059e+37 }
 0xd5c   : > { %v5164_v24 = vmul.f32 %v6024_v60, %v5163_v22  ;;  %v5111_v21 = vadd.f32 %v5110_v8, %v5058_v48  ;;  %v5016_v48 = vpop.f32.mrf.mxu1  ;;  %v5014_v52 = vadd.f32 %v5013_v1, %v4961_v36 }
 0xd5e   : > { %v6026_v33 = vpop.eup %6025  ;;  %v5165_v58 = vadd.f32 %v6024_v60, %v5164_v24  ;;  %v5972_v10 = vmul.f32 -1.442695, %v5111_v21 }
 0xd5f   : > { %v6028_v39 = vpop.eup %6027  ;;  %v9365_v61 = vadd.f32 1.0, %v6026_v33  ;;  %v4814_v33 = vpop.permute.xlu0 %4813 }
 0xd60   : > { %v5177_v16 = vmul.f32 %v6028_v39, %v5156_v14  ;;  %6029 = vpow2.f32 %v5972_v10  ;;  %v5169_v30 = vsel %vm5168_vm4, %v6024_v60, %v5165_v58  ;;  %vm5182_vm6 = vweird.f32 %v6028_v39  ;;  %v4963_v60 = vpop.f32.mrf.mxu3 }
 0xd61   : > { %6031 = vrcp.f32 %v9365_v61  ;;  %v5174_v19 = vsel %vm5171_vm5, %v5173_v56, %v5169_v30  ;;  %vm5183_vm9 = vmor %vm5181_vm7, %vm5182_vm6  ;;  %v5202_v8 = vand.u32 2147483648, %v9365_v61  ;;  %v5200_v12 = vand.u32 2147483647, %v9365_v61 }
 0xd62   : > { %v5178_v32 = vsub.f32 1.0, %v5177_v16  ;;  %v5251_v2 = vmul.f32 2.0, %v5174_v19  ;;  %vm5196_vm8 = vweird.f32 %v9365_v61  ;;  %v4911_v10 = vadd.f32 %v9349_v46, %v4814_v33 }
 0xd63   : > { %v5113_v49 = vpop.f32.mrf.mxu2  ;;  %v5203_v16 = vor.u32 1.1754944e-38, %v5202_v8  ;;  %vm5201_vm12 = vcmp.eq.f32.partialorder %v5200_v12, 8.507059e+37 }
 0xd64   : > { %v5179_v3 = vmul.f32 %v6028_v39, %v5178_v32  ;;  %v5114_v9 = vadd.f32 %v5113_v49, %v5061_v50  ;;  %v5975_v31 = vadd.f32 -1.0, %v5251_v2  ;;  %v5067_v50 = vadd.f32 %v5066_v26, %v5014_v52 }
 0xd65   : > { %v4964_v19 = vadd.f32 %v4963_v60, %v4911_v10 }
 0xd66   : > { %v6030_v15 = vpop.eup %6029  ;;  %v5180_v13 = vadd.f32 %v6028_v39, %v5179_v3  ;;  %v5973_v55 = vmul.f32 -1.442695, %v5114_v9  ;;  %v5263_v42 = vmul.f32 1.442695, %v5975_v31 }
 0xd67   : > { %v6032_v59 = vpop.eup %6031  ;;  %v9369_v23 = vadd.f32 1.0, %v6030_v15  ;;  %v5017_v31 = vadd.f32 %v5016_v48, %v4964_v19  ;;  %v5019_v15 = vpop.f32.mrf.mxu1 }
 0xd68   : > { %v5184_v37 = vsel %vm5183_vm9, %v6028_v39, %v5180_v13  ;;  %v5192_v40 = vmul.f32 %v6032_v59, %v9365_v61  ;;  %6033 = vpow2.f32 %v5973_v55  ;;  %vm5197_vm15 = vweird.f32 %v6032_v59  ;;  %v5069_v39 = vpop.f32.mrf.mxu0  ;;  %v4819_v61 = vpop.permute.xlu1 %4818 }
 0xd69   : > { %6035 = vrcp.f32 %v9369_v23  ;;  %v5189_v14 = vsel %vm5186_vm10, %v5188_v63, %v5184_v37  ;;  %vm5198_vm11 = vmor %vm5196_vm8, %vm5197_vm15  ;;  %v4914_v27 = vadd.f32 %v9355_v41, %v4819_v61  ;;  %v4966_v49 = vpop.f32.mrf.mxu3  ;;  %v5215_v26 = vand.u32 2147483647, %v9369_v23 }
 0xd6a   : > { %v5193_v29 = vsub.f32 1.0, %v5192_v40  ;;  %6037 = vpow2.f32 %v5263_v42  ;;  %v5252_v20 = vmul.f32 2.0, %v5189_v14  ;;  %v5217_v35 = vand.u32 2147483648, %v9369_v23 }
 0xd6b   : > { %v5116_v22 = vpop.f32.mrf.mxu2  ;;  %vm5211_vm2 = vweird.f32 %v9369_v23  ;;  %v4967_v42 = vadd.f32 %v4966_v49, %v4914_v27  ;;  %v5070_v36 = vadd.f32 %v5069_v39, %v5017_v31  ;;  %vm5216_vm4 = vcmp.eq.f32.partialorder %v5215_v26, 8.507059e+37 }
 0xd6c   : > { %v5194_v57 = vmul.f32 %v6032_v59, %v5193_v29  ;;  %v5117_v24 = vadd.f32 %v5116_v22, %v5064_v0  ;;  %v5976_v21 = vadd.f32 -1.0, %v5252_v20  ;;  %v5218_v22 = vor.u32 1.1754944e-38, %v5217_v35 }
 0xd6e   : > { %v6034_v25 = vpop.eup %6033  ;;  %v5195_v53 = vadd.f32 %v6032_v59, %v5194_v57  ;;  %v5974_v4 = vmul.f32 -1.442695, %v5117_v24  ;;  %v5265_v6 = vmul.f32 1.442695, %v5976_v21  ;;  %v5311_v55 = vrot.slane %v5117_v24, 2 }
 0xd6f   : > { %v9376_v58 = vpop.eup %6035  ;;  %v9379_v47 = vadd.f32 1.0, %v6034_v25  ;;  %v4824_v25 = vpop.permute.xlu2 %4823 }
 0xd70   : > { %v5199_v56 = vsel %vm5198_vm11, %v6032_v59, %v5195_v53  ;;  %v5207_v30 = vmul.f32 %v9376_v58, %v9369_v23  ;;  %6039 = vpow2.f32 %v5974_v4  ;;  %v6038_v1 = vpop.eup %6037  ;;  %vm5212_vm14 = vweird.f32 %v9376_v58  ;;  %v5072_v48 = vpop.f32.mrf.mxu0 }
 0xd71   : > { %6041 = vrcp.f32 %v9379_v47  ;;  %v5204_v46 = vsel %vm5201_vm12, %v5203_v16, %v5199_v56  ;;  %v5281_v43 = vrot.slane %v6038_v1, 5  ;;  %vm9397_vm3 = vmor %vm5211_vm2, %vm5212_vm14  ;;  %v5232_v24 = vand.u32 2147483648, %v9379_v47  ;;  %v4969_v10 = vpop.f32.mrf.mxu3  ;;  %v5022_v1 = vpop.f32.mrf.mxu1 }
 0xd72   : > { %v5208_v32 = vsub.f32 1.0, %v5207_v30  ;;  %6043 = vpow2.f32 %v5265_v6  ;;  %v5253_v3 = vmul.f32 2.0, %v5204_v46  ;;  %v5020_v6 = vadd.f32 %v5019_v15, %v4967_v42 }
 0xd73   : > { %v5119_v2 = vpop.f32.mrf.mxu2  ;;  %v5298_v29 = vmul.f32 %v5281_v43, %v8361_v45  ;;  %v5230_v45 = vand.u32 2147483647, %v9379_v47  ;;  %vm5226_vm6 = vweird.f32 %v9379_v47  ;;  %v5233_v61 = vor.u32 1.1754944e-38, %v5232_v24 }
 0xd74   : > { %v5209_v38 = vmul.f32 %v9376_v58, %v5208_v32  ;;  %v9387_v9 = vadd.f32 %v5119_v2, %v5067_v50  ;;  %v5977_v62 = vadd.f32 -1.0, %v5253_v3 }
 0xd75   : > { %vm5231_vm9 = vcmp.eq.f32.partialorder %v5230_v45, 8.507059e+37 }
 0xd76   : > { %v6040_v13 = vpop.eup %6039  ;;  %v5210_v41 = vadd.f32 %v9376_v58, %v5209_v38  ;;  %v5312_v59 = vrot.slane %v9387_v9, 2  ;;  %v5267_v40 = vmul.f32 1.442695, %v5977_v62  ;;  %v5073_v38 = vadd.f32 %v5072_v48, %v5020_v6 }
 0xd77   : > { %v6042_v11 = vpop.eup %6041  ;;  %v9401_v63 = vadd.f32 1.0, %v6040_v13 }
 0xd78   : > { %v6044_v60 = vpop.eup %6043  ;;  %v5214_v23 = vsel %vm9397_vm3, %v9376_v58, %v5210_v41  ;;  %v5222_v0 = vmul.f32 %v6042_v11, %v9379_v47  ;;  %v5313_v14 = vsel %vm981_vm1, %v5311_v55, %v5312_v59  ;;  %vm5227_vm5 = vweird.f32 %v6042_v11  ;;  %v5075_v31 = vpop.f32.mrf.mxu0 }
 0xd79   : > { %6045 = vrcp.f32 %v9401_v63  ;;  %v5330_v57 = vadd.f32 %v5313_v14, %v5298_v29  ;;  %v5282_v8 = vrot.slane %v6044_v60, 5  ;;  %v5219_v21 = vsel %vm5216_vm4, %v5218_v22, %v5214_v23  ;;  %vm5228_vm7 = vmor %vm5226_vm6, %vm5227_vm5  ;;  %v4972_v60 = vpop.f32.mrf.mxu3  ;;  %v5025_v48 = vpop.f32.mrf.mxu1 }
 0xd7a   : > { %v5223_v20 = vsub.f32 1.0, %v5222_v0  ;;  %6047 = vpow2.f32 %v5267_v40  ;;  %v4917_v58 = vadd.f32 %v9357_v34, %v4824_v25  ;;  %v5254_v39 = vmul.f32 2.0, %v5219_v21 }
 0xd7b   : > { %v5122_v12 = vpop.f32.mrf.mxu2  ;;  %v5336_v52 = vsel %vm979_vm0, %v8822_v28, %v5330_v57  ;;  %v5283_v4 = vsel %vm979_vm0, %v5281_v43, %v5282_v8  ;;  %v5247_v15 = vand.u32 2147483648, %v9401_v63  ;;  %vm5241_vm15 = vweird.f32 %v9401_v63 }
 0xd7c   : > { %v5224_v33 = vmul.f32 %v6042_v11, %v5223_v20  ;;  %v5123_v53 = vadd.f32 %v5122_v12, %v5070_v36  ;;  %5337 = vst.msk [vmem:[%s9413_s26] sm:$0xff] %vm2930_vm13, %v5336_v52  ;;  %v5299_v28 = vmul.f32 %v5283_v4, %v8370_v54  ;;  %v5978_v50 = vadd.f32 -1.0, %v5254_v39  ;;  %v4834_v4 = vpop.permute.xlu1 %4833 }
 0xd7d   : > { %v4970_v3 = vadd.f32 %v4969_v10, %v4917_v58  ;;  %v5245_v54 = vand.u32 2147483647, %v9401_v63  ;;  %v5248_v23 = vor.u32 1.1754944e-38, %v5247_v15  ;;  %v4923_v39 = vadd.f32 %v9361_v51, %v4834_v4 }
 0xd7e   : > { %v5225_v56 = vadd.f32 %v6042_v11, %v5224_v33  ;;  %v5314_v16 = vrot.slane %v5123_v53, 2  ;;  %v5269_v47 = vmul.f32 1.442695, %v5978_v50 }
 0xd7f   : > { %v6046_v30 = vpop.eup %6045  ;;  %v5023_v55 = vadd.f32 %v5022_v1, %v4970_v3  ;;  %vm5246_vm11 = vcmp.eq.f32.partialorder %v5245_v54, 8.507059e+37 }
 0xd80   : > { %v6048_v32 = vpop.eup %6047  ;;  %v5229_v34 = vsel %vm5228_vm7, %v6042_v11, %v5225_v56  ;;  %v5237_v46 = vmul.f32 %v6046_v30, %v9401_v63  ;;  %v5315_v19 = vsel %vm981_vm1, %v5312_v59, %v5314_v16  ;;  %6049 = vpow2.f32 %v5269_v47  ;;  %v4829_v59 = vpop.permute.xlu0 %4828 }
 0xd81   : > { %v5331_v27 = vadd.f32 %v5315_v19, %v5299_v28  ;;  %v5284_v49 = vrot.slane %v6048_v32, 5  ;;  %v5234_v2 = vsel %vm5231_vm9, %v5233_v61, %v5229_v34  ;;  %vm5242_vm10 = vweird.f32 %v6046_v30  ;;  %v5078_v21 = vpop.f32.mrf.mxu0  ;;  %v4975_v56 = vpop.f32.mrf.mxu3 }
 0xd82   : > { %v5238_v9 = vsub.f32 1.0, %v5237_v46  ;;  %v5255_v43 = vmul.f32 2.0, %v5234_v2  ;;  %v4920_v40 = vadd.f32 %v9359_v18, %v4829_v59  ;;  %vm5243_vm8 = vmor %vm5241_vm15, %vm5242_vm10  ;;  %v5076_v63 = vadd.f32 %v5075_v31, %v5023_v55  ;;  %v5028_v61 = vpop.f32.mrf.mxu1 }
 0xd83   : > { %5338 = vst.msk [vmem:[%s9413_s26 + $0x8] sm:$0xff] %vm2930_vm13, %v5331_v27  ;;  %v5125_v26 = vpop.f32.mrf.mxu2  ;;  %v5285_v35 = vsel %vm979_vm0, %v5282_v8, %v5284_v49  ;;  %v4976_v50 = vadd.f32 %v4975_v56, %v4923_v39 }
 0xd84   : > { %v5239_v62 = vmul.f32 %v6046_v30, %v5238_v9  ;;  %v5126_v13 = vadd.f32 %v5125_v26, %v5073_v38  ;;  %v5979_v41 = vadd.f32 -1.0, %v5255_v43  ;;  %v5300_v0 = vmul.f32 %v5285_v35, %v8378_v7 }
 0xd85   : > { %v4973_v45 = vadd.f32 %v4972_v60, %v4920_v40 }
 0xd86   : > { %v5240_v11 = vadd.f32 %v6046_v30, %v5239_v62  ;;  %v5316_v42 = vrot.slane %v5126_v13, 2  ;;  %v5271_v37 = vmul.f32 1.442695, %v5979_v41  ;;  %v6050_v36 = vpop.eup %6049 }
 0xd87   : > { %v5286_v57 = vrot.slane %v6050_v36, 5  ;;  %v5026_v33 = vadd.f32 %v5025_v48, %v4973_v45 }
 0xd88   : > { %v5317_v29 = vsel %vm981_vm1, %v5314_v16, %v5316_v42  ;;  %6051 = vpow2.f32 %v5271_v37  ;;  %v5244_v14 = vsel %vm5243_vm8, %v6046_v30, %v5240_v11 }
 0xd89   : > { %v5332_v22 = vadd.f32 %v5317_v29, %v5300_v0  ;;  %v5249_v20 = vsel %vm5246_vm11, %v5248_v23, %v5244_v14  ;;  %v5287_v12 = vsel %vm979_vm0, %v5284_v49, %v5286_v57  ;;  %v5079_v1 = vadd.f32 %v5078_v21, %v5026_v33  ;;  %v5081_v51 = vpop.f32.mrf.mxu0 }
 0xd8a   : > { %v5256_v8 = vmul.f32 2.0, %v5249_v20  ;;  %v5301_v58 = vmul.f32 %v5287_v12, %v8399_v17  ;;  %v5029_v17 = vadd.f32 %v5028_v61, %v4976_v50 }
 0xd8b   : > { %5339 = vst.msk [vmem:[%s9413_s26 + $0x10] sm:$0xff] %vm2930_vm13, %v5332_v22  ;;  %v5128_v18 = vpop.f32.mrf.mxu2 }
 0xd8c   : > { %v5129_v24 = vadd.f32 %v5128_v18, %v5076_v63  ;;  %v5980_v7 = vadd.f32 -1.0, %v5256_v8  ;;  %v5082_v3 = vadd.f32 %v5081_v51, %v5029_v17 }
 0xd8e   : > { %v6052_v25 = vpop.eup %6051  ;;  %v5318_v52 = vrot.slane %v5129_v24, 2  ;;  %v5273_v53 = vmul.f32 1.442695, %v5980_v7 }
 0xd8f   : > { %v5288_v10 = vrot.slane %v6052_v25, 5 }
 0xd90   : > { %v5319_v6 = vsel %vm981_vm1, %v5316_v42, %v5318_v52  ;;  %6053 = vpow2.f32 %v5273_v53 }
 0xd91   : > { %v5333_v16 = vadd.f32 %v5319_v6, %v5301_v58  ;;  %v5289_v30 = vsel %vm979_vm0, %v5286_v57, %v5288_v10 }
 0xd92   : > { %v5302_v19 = vmul.f32 %v5289_v30, %v8443_v44 }
 0xd93   : > { %5340 = vst.msk [vmem:[%s9413_s26 + $0x18] sm:$0xff] %vm2930_vm13, %v5333_v16  ;;  %v5131_v28 = vpop.f32.mrf.mxu2 }
 0xd94   : > { %v5132_v32 = vadd.f32 %v5131_v28, %v5079_v1 }
 0xd96   : > { %v6054_v34 = vpop.eup %6053  ;;  %v5320_v46 = vrot.slane %v5132_v32, 2 }
 0xd97   : > { %v5290_v27 = vrot.slane %v6054_v34, 5 }
 0xd98   : > { %v5321_v49 = vsel %vm981_vm1, %v5318_v52, %v5320_v46 }
 0xd99   : > { %v5334_v47 = vadd.f32 %v5321_v49, %v5302_v19  ;;  %v5291_v2 = vsel %vm979_vm0, %v5288_v10, %v5290_v27 }
 0xd9a   : > { %v5303_v31 = vmul.f32 %v5291_v2, %v8436_v5 }
 0xd9b   : > { %5341 = vst.msk [vmem:[%s9413_s26 + $0x20] sm:$0xff] %vm2930_vm13, %v5334_v47  ;;  %v5134_v38 = vpop.f32.mrf.mxu2 }
 0xd9c   : > { %v5135_v9 = vadd.f32 %v5134_v38, %v5082_v3 }
 0xd9e   : > { %v5322_v43 = vrot.slane %v5135_v9, 2 }
 0xda0   : > { %v5323_v54 = vsel %vm981_vm1, %v5320_v46, %v5322_v43 }
 0xda1   : > { %v5335_v15 = vadd.f32 %v5323_v54, %v5303_v31 }
 0xda3   : > { %5342 = vst.msk [vmem:[%s9413_s26 + $0x28] sm:$0xff] %vm2930_vm13, %v5335_v15 }
 0xda4 PF: > { %s9591_s2 = sld [smem:[#allocation2_spill]] }
 0xdaa   : > { %s31_s2 = sadd.s32 1, %s9591_s2  }
 0xdab   : > { %p28_p4 = scmp.ge.s32.totalorder %s31_s2, 4  }
 0xdad   :  { %30 = sbr.rel (!%p28_p4) target bundleno = 7 (0x7), region = 158 }

</bundles_post_ra>
